<compile_context>
chip_gen: v7x
topology: tpu7x:2x2x1
jax: 0.10.0
libtpu: 0.0.40
codegen_flags: <defaults>
</compile_context>

<pallas_src>
import jax
import jax.numpy as jnp
import numpy as np
from jax.experimental import pallas as pl
from jax.experimental.pallas import tpu as pltpu

K = 5      # conv kernel size
PAD = 2    # conv padding


# ---------------- Pallas kernels ----------------

def _conv_gemm_pool_kernel(x_ref, w_ref, b_ref, o_ref):
    """Fused conv-GEMM + 2x2 max-pool + bias + ReLU for one row-block.

    x_ref: (4, bm, Dp)  im2col patches, leading axis = pooling-window position
    w_ref: (Dp, C)      GEMM weight (contraction dim zero-padded to Dp)
    b_ref: (1, C)       bias (f32)
    o_ref: (bm, C)      pooled output (f32)
    """
    bm = o_ref.shape[0]
    # Merge the 4 pooling-position GEMMs into a single MXU matmul (one weight push).
    x = jnp.concatenate([x_ref[0], x_ref[1], x_ref[2], x_ref[3]], axis=0)   # (4*bm, Dp)
    r = jnp.dot(x, w_ref[...], preferred_element_type=jnp.float32)          # (4*bm, C)
    # 2x2 max-pool = max over the 4 row-slices; bias hoisted out of the max,
    # relu(max(.)+b) == max-pool(relu(conv+b)) since ReLU is monotone.
    y = jnp.maximum(jnp.maximum(r[:bm], r[bm:2 * bm]),
                    jnp.maximum(r[2 * bm:3 * bm], r[3 * bm:]))
    o_ref[...] = jnp.maximum(y + b_ref[...], 0.0)


def _mlp_kernel(x_ref, w1_ref, b1_ref, w2_ref, b2_ref, o_ref):
    """Two chained Linear layers (no activation between, matching the torch module)."""
    h = jnp.dot(x_ref[...], w1_ref[...], preferred_element_type=jnp.float32) + b1_ref[...]
    h = h.astype(x_ref.dtype)
    o_ref[...] = jnp.dot(h, w2_ref[...], preferred_element_type=jnp.float32) + b2_ref[...]


# ---------------- pallas_call wrappers ----------------

_VMEM_LIMIT = 32 * 1024 * 1024   # fits v5e/v6e (128 MiB phys) and v7x (64 MiB phys)


def _round_up(x, m):
    return (x + m - 1) // m * m


def _conv_relu_pool(patches, w, b, compute_dtype):
    """patches: (4, M, D) ; w: (D, C) ; b: (C,) -> (M, C) f32 pooled+ReLU output."""
    _, M, D = patches.shape
    C = w.shape[1]
    # Lane-friendly contraction dim: 25 -> 32, 800 -> 896 (zero padded => exact).
    Dp = 32 if D <= 32 else _round_up(D, 128)
    m8 = _round_up(M, 8)
    bm = m8 if m8 <= 512 else 256          # row block; keeps per-step VMEM well bounded
    Mp = _round_up(M, bm)

    patches = jnp.pad(patches, ((0, 0), (0, Mp - M), (0, Dp - D))).astype(compute_dtype)
    w = jnp.pad(w, ((0, Dp - D), (0, 0))).astype(compute_dtype)
    b = b.reshape(1, C).astype(jnp.float32)

    out = pl.pallas_call(
        _conv_gemm_pool_kernel,
        out_shape=jax.ShapeDtypeStruct((Mp, C), jnp.float32),
        grid=(Mp // bm,),
        in_specs=[
            pl.BlockSpec((4, bm, Dp), lambda i: (0, i, 0)),   # row-tiled patches
            pl.BlockSpec((Dp, C), lambda i: (0, 0)),          # resident weight
            pl.BlockSpec((1, C), lambda i: (0, 0)),           # resident bias
        ],
        out_specs=pl.BlockSpec((bm, C), lambda i: (i, 0)),
        compiler_params=pltpu.CompilerParams(
            dimension_semantics=("parallel",),                 # megacore on v7x
            vmem_limit_bytes=_VMEM_LIMIT),
    )(patches, w, b)
    return out[:M]


def _mlp(flat, w1, b1, w2, b2, compute_dtype):
    """flat: (N, F) ; w1: (F, H) ; w2: (H, C) -> (N, C) f32."""
    N, F = flat.shape
    H = w1.shape[1]
    C = w2.shape[1]
    bn = N if N <= 256 else 256
    Np = _round_up(N, bn)

    flat = jnp.pad(flat, ((0, Np - N), (0, 0))).astype(compute_dtype)
    w1 = w1.astype(compute_dtype)
    w2 = w2.astype(compute_dtype)
    b1 = b1.reshape(1, H).astype(jnp.float32)
    b2 = b2.reshape(1, C).astype(jnp.float32)

    out = pl.pallas_call(
        _mlp_kernel,
        out_shape=jax.ShapeDtypeStruct((Np, C), jnp.float32),
        grid=(Np // bn,),
        in_specs=[
            pl.BlockSpec((bn, F), lambda i: (i, 0)),
            pl.BlockSpec((F, H), lambda i: (0, 0)),
            pl.BlockSpec((1, H), lambda i: (0, 0)),
            pl.BlockSpec((H, C), lambda i: (0, 0)),
            pl.BlockSpec((1, C), lambda i: (0, 0)),
        ],
        out_specs=pl.BlockSpec((bn, C), lambda i: (i, 0)),
        compiler_params=pltpu.CompilerParams(
            dimension_semantics=("parallel",),
            vmem_limit_bytes=_VMEM_LIMIT),
    )(flat, w1, b1, w2, b2)
    return out[:N]


# ---------------- JAX glue (im2col, pool-window split, layout) ----------------
# TODO(synk): im2col / pool-position split still run as XLA glue (a ~25x patch expansion
# in HBM); fusing the 25 taps into the kernel would need element-offset BlockSpec windows.

def _im2col(x_nhwc):
    """(N,H,W,C) -> (N,H,W,C*K*K), 'same' padding, column order c*K*K + kh*K + kw
    (matches PyTorch OIHW weight flattening)."""
    N, H, W, C = x_nhwc.shape
    xp = jnp.pad(x_nhwc, ((0, 0), (PAD, PAD), (PAD, PAD), (0, 0)))
    taps = [xp[:, kh:kh + H, kw:kw + W, :] for kh in range(K) for kw in range(K)]
    p = jnp.stack(taps, axis=3)               # (N,H,W,K*K,C)
    p = jnp.transpose(p, (0, 1, 2, 4, 3))     # (N,H,W,C,K*K)
    return p.reshape(N, H, W, C * K * K)


def _pool_patches(p):
    """(N,H,W,D) -> (4, N*(H//2)*(W//2), D), pooling-window-position major."""
    N, H, W, D = p.shape
    p = p.reshape(N, H // 2, 2, W // 2, 2, D)
    p = jnp.transpose(p, (2, 4, 0, 1, 3, 5))  # (2,2,N,H/2,W/2,D)
    return p.reshape(4, N * (H // 2) * (W // 2), D)


def cnn_forward(x_nchw, params, compute_dtype=jnp.bfloat16):
    (w1, b1, w2, b2, wf1, bf1, wf2, bf2) = params
    N = x_nchw.shape[0]

    # NCHW -> NHWC is a pure reshape because Cin == 1 (no transpose needed).
    x = x_nchw.reshape(N, 28, 28, 1).astype(compute_dtype)

    # Conv2d(1,32,5,pad=2) + ReLU + MaxPool2d(2)
    p1 = _pool_patches(_im2col(x))                              # (4, N*196, 25)
    w1g = jnp.transpose(w1.reshape(32, 1 * K * K))              # (25, 32)
    y1 = _conv_relu_pool(p1, w1g, b1, compute_dtype)            # (N*196, 32) f32
    y1 = y1.reshape(N, 14, 14, 32).astype(compute_dtype)

    # Conv2d(32,32,5,pad=2) + ReLU + MaxPool2d(2)
    p2 = _pool_patches(_im2col(y1))                             # (4, N*49, 800)
    w2g = jnp.transpose(w2.reshape(32, 32 * K * K))             # (800, 32)
    y2 = _conv_relu_pool(p2, w2g, b2, compute_dtype)            # (N*49, 32) f32

    # Flatten: y2 rows are (n, h, w) ordered with channels minor, so a plain reshape is
    # the NHWC flatten; permute wf1's columns (NCHW -> NHWC order) to compensate, which
    # removes the transpose of y2 that the PyTorch NCHW flatten would otherwise need.
    flat = y2.reshape(N, 49 * 32)
    wf1_nhwc = jnp.transpose(wf1.reshape(32, 32, 7, 7), (0, 2, 3, 1)).reshape(32, 1568)
    wf1g = jnp.transpose(wf1_nhwc)                              # (1568, 32)
    wf2g = jnp.transpose(wf2)                                   # (32, 10)

    # Linear(1568,32) -> Linear(32,10), fused in one kernel
    return _mlp(flat, wf1g, bf1, wf2g, bf2, compute_dtype)


# ---------------- Reference (pure JAX, PyTorch semantics) ----------------

def reference_forward(x, params):
    (w1, b1, w2, b2, wf1, bf1, wf2, bf2) = params
    dn = ('NCHW', 'OIHW', 'NCHW')
    pad = ((PAD, PAD), (PAD, PAD))
    y = jax.lax.conv_general_dilated(x, w1, (1, 1), pad, dimension_numbers=dn)
    y = jnp.maximum(y + b1[None, :, None, None], 0.0)
    y = jax.lax.reduce_window(y, -jnp.inf, jax.lax.max, (1, 1, 2, 2), (1, 1, 2, 2), 'VALID')
    y = jax.lax.conv_general_dilated(y, w2, (1, 1), pad, dimension_numbers=dn)
    y = jnp.maximum(y + b2[None, :, None, None], 0.0)
    y = jax.lax.reduce_window(y, -jnp.inf, jax.lax.max, (1, 1, 2, 2), (1, 1, 2, 2), 'VALID')
    y = y.reshape(x.shape[0], -1)
    y = y @ wf1.T + bf1
    return y @ wf2.T + bf2


# ---------------- Deterministic parameter init (PyTorch-style shapes) ----------------

def init_params(key):
    ks = jax.random.split(key, 8)

    def u(k, shape, fan_in):
        bound = 1.0 / (fan_in ** 0.5)
        return jax.random.uniform(k, shape, jnp.float32, -bound, bound)

    w1 = u(ks[0], (32, 1, 5, 5), 25);       b1 = u(ks[1], (32,), 25)
    w2 = u(ks[2], (32, 32, 5, 5), 800);     b2 = u(ks[3], (32,), 800)
    wf1 = u(ks[4], (32, 1568), 1568);       bf1 = u(ks[5], (32,), 1568)
    wf2 = u(ks[6], (10, 32), 32);           bf2 = u(ks[7], (10,), 32)
    return (w1, b1, w2, b2, wf1, bf1, wf2, bf2)


if __name__ == "__main__":
    key = jax.random.PRNGKey(0)
    pkey, xkey = jax.random.split(key)
    params = init_params(pkey)
    x = jax.random.normal(xkey, (2, 1, 28, 28), jnp.float32)

    ref = jax.block_until_ready(reference_forward(x, params))

    # f32 path: tight structural/indexing check against the lax.conv reference.
    out_f32 = jax.block_until_ready(
        jax.jit(lambda a, p: cnn_forward(a, p, jnp.float32))(x, params))
    assert out_f32.shape == (2, 10), out_f32.shape
    np.testing.assert_allclose(np.asarray(out_f32), np.asarray(ref), rtol=1e-4, atol=1e-4)

    # bf16 fast path (MXU-native operands, f32 accumulation): bf16-level tolerance.
    out_bf16 = jax.block_until_ready(
        jax.jit(lambda a, p: cnn_forward(a, p, jnp.bfloat16))(x, params))
    assert out_bf16.shape == (2, 10), out_bf16.shape
    np.testing.assert_allclose(np.asarray(out_bf16), np.asarray(ref), rtol=5e-2, atol=2e-2)

    print("KERNEL_OK")
</pallas_src>

<mosaic_0001>
module attributes {stable_mosaic.version = 11 : i64} {
  func.func @_conv_gemm_pool_kernel(%arg0: i32, %arg1: memref<4x392x32xf32, #tpu.memory_space<vmem>>, %arg2: memref<32x32xf32, #tpu.memory_space<vmem>>, %arg3: memref<1x32xf32, #tpu.memory_space<vmem>>, %arg4: memref<392x32xf32, #tpu.memory_space<vmem>>) attributes {dimension_semantics = [#tpu.dimension_semantics<parallel>], iteration_bounds = array<i64: 1>, scalar_prefetch = 0 : i64, scratch_operands = 0 : i64, tpu.core_type = #tpu.core_type<tc>, window_params = [{transform_indices = @transform_0, window_bounds = array<i64: 4, 392, 32>}, {pipeline_mode = #tpu.pipeline_mode<synchronous>, transform_indices = @transform_1, window_bounds = array<i64: 32, 32>}, {pipeline_mode = #tpu.pipeline_mode<synchronous>, transform_indices = @transform_2, window_bounds = array<i64: 1, 32>}, {transform_indices = @transform_3, window_bounds = array<i64: 392, 32>}]} {
    %c0 = arith.constant 0 : index
    %c0_0 = arith.constant 0 : index
    %c0_1 = arith.constant 0 : index
    %0 = vector.load %arg1[%c0, %c0_0, %c0_1] : memref<4x392x32xf32, #tpu.memory_space<vmem>>, vector<1x392x32xf32>
    %1 = vector.shape_cast %0 : vector<1x392x32xf32> to vector<392x32xf32>
    %c1 = arith.constant 1 : index
    %c0_2 = arith.constant 0 : index
    %c0_3 = arith.constant 0 : index
    %2 = vector.load %arg1[%c1, %c0_2, %c0_3] : memref<4x392x32xf32, #tpu.memory_space<vmem>>, vector<1x392x32xf32>
    %3 = vector.shape_cast %2 : vector<1x392x32xf32> to vector<392x32xf32>
    %c2 = arith.constant 2 : index
    %c0_4 = arith.constant 0 : index
    %c0_5 = arith.constant 0 : index
    %4 = vector.load %arg1[%c2, %c0_4, %c0_5] : memref<4x392x32xf32, #tpu.memory_space<vmem>>, vector<1x392x32xf32>
    %5 = vector.shape_cast %4 : vector<1x392x32xf32> to vector<392x32xf32>
    %c3 = arith.constant 3 : index
    %c0_6 = arith.constant 0 : index
    %c0_7 = arith.constant 0 : index
    %6 = vector.load %arg1[%c3, %c0_6, %c0_7] : memref<4x392x32xf32, #tpu.memory_space<vmem>>, vector<1x392x32xf32>
    %7 = vector.shape_cast %6 : vector<1x392x32xf32> to vector<392x32xf32>
    %8 = tpu.concatenate %1, %3, %5, %7 in 0 : vector<392x32xf32>, vector<392x32xf32>, vector<392x32xf32>, vector<392x32xf32> -> vector<1568x32xf32>
    %c0_8 = arith.constant 0 : index
    %c0_9 = arith.constant 0 : index
    %9 = vector.load %arg2[%c0_8, %c0_9] : memref<32x32xf32, #tpu.memory_space<vmem>>, vector<32x32xf32>
    %cst = arith.constant dense<0.000000e+00> : vector<1568x32xf32>
    %10 = tpu.matmul %8, %9, %cst {dimension_numbers = #tpu.dot_dimension_numbers<[1], [0], [0], [1], [0, 0, 1, 1], [], []>} : vector<1568x32xf32>, vector<32x32xf32>, vector<1568x32xf32> -> vector<1568x32xf32>
    %11 = vector.extract_strided_slice %10 {offsets = [0, 0], sizes = [392, 32], strides = [1, 1]} : vector<1568x32xf32> to vector<392x32xf32>
    %12 = vector.extract_strided_slice %10 {offsets = [392, 0], sizes = [392, 32], strides = [1, 1]} : vector<1568x32xf32> to vector<392x32xf32>
    %13 = arith.maximumf %11, %12 : vector<392x32xf32>
    %14 = vector.extract_strided_slice %10 {offsets = [784, 0], sizes = [392, 32], strides = [1, 1]} : vector<1568x32xf32> to vector<392x32xf32>
    %15 = vector.extract_strided_slice %10 {offsets = [1176, 0], sizes = [392, 32], strides = [1, 1]} : vector<1568x32xf32> to vector<392x32xf32>
    %16 = arith.maximumf %14, %15 : vector<392x32xf32>
    %17 = arith.maximumf %13, %16 : vector<392x32xf32>
    %c0_10 = arith.constant 0 : index
    %c0_11 = arith.constant 0 : index
    %18 = vector.load %arg3[%c0_10, %c0_11] : memref<1x32xf32, #tpu.memory_space<vmem>>, vector<1x32xf32>
    %19 = vector.broadcast %18 : vector<1x32xf32> to vector<392x32xf32>
    %20 = arith.addf %17, %19 : vector<392x32xf32>
    %cst_12 = arith.constant 0.000000e+00 : f32
    %21 = vector.broadcast %cst_12 : f32 to vector<392x32xf32>
    %22 = arith.maximumf %20, %21 : vector<392x32xf32>
    %c0_13 = arith.constant 0 : index
    %c0_14 = arith.constant 0 : index
    %23 = vector.load %arg4[%c0_13, %c0_14] : memref<392x32xf32, #tpu.memory_space<vmem>>, vector<392x32xf32>
    tpu.vector_store %arg4[%c0_13, %c0_14], %22 {strides = array<i32>} : memref<392x32xf32, #tpu.memory_space<vmem>>, vector<392x32xf32>,
    return
  }
  func.func @transform_0(%arg0: i32) -> (i32, i32, i32) {
    %c0_i32 = arith.constant 0 : i32
    %c0_i32_0 = arith.constant 0 : i32
    %c0_i32_1 = arith.constant 0 : i32
    return %c0_i32, %arg0, %c0_i32_0 : i32, i32, i32
  }
  func.func @transform_1(%arg0: i32) -> (i32, i32) {
    %c0_i32 = arith.constant 0 : i32
    %c0_i32_0 = arith.constant 0 : i32
    %c0_i32_1 = arith.constant 0 : i32
    return %c0_i32, %c0_i32_0 : i32, i32
  }
  func.func @transform_2(%arg0: i32) -> (i32, i32) {
    %c0_i32 = arith.constant 0 : i32
    %c0_i32_0 = arith.constant 0 : i32
    %c0_i32_1 = arith.constant 0 : i32
    return %c0_i32, %c0_i32_0 : i32, i32
  }
  func.func @transform_3(%arg0: i32) -> (i32, i32) {
    %c0_i32 = arith.constant 0 : i32
    %c0_i32_0 = arith.constant 0 : i32
    return %arg0, %c0_i32 : i32, i32
  }
}

module attributes {stable_mosaic.version = 11 : i64} {
  func.func @_conv_gemm_pool_kernel(%arg0: i32, %arg1: memref<4x104x896xf32, #tpu.memory_space<vmem>>, %arg2: memref<896x32xf32, #tpu.memory_space<vmem>>, %arg3: memref<1x32xf32, #tpu.memory_space<vmem>>, %arg4: memref<104x32xf32, #tpu.memory_space<vmem>>) attributes {dimension_semantics = [#tpu.dimension_semantics<parallel>], iteration_bounds = array<i64: 1>, scalar_prefetch = 0 : i64, scratch_operands = 0 : i64, tpu.core_type = #tpu.core_type<tc>, window_params = [{transform_indices = @transform_0, window_bounds = array<i64: 4, 104, 896>}, {pipeline_mode = #tpu.pipeline_mode<synchronous>, transform_indices = @transform_1, window_bounds = array<i64: 896, 32>}, {pipeline_mode = #tpu.pipeline_mode<synchronous>, transform_indices = @transform_2, window_bounds = array<i64: 1, 32>}, {transform_indices = @transform_3, window_bounds = array<i64: 104, 32>}]} {
    %c0 = arith.constant 0 : index
    %c0_0 = arith.constant 0 : index
    %c0_1 = arith.constant 0 : index
    %0 = vector.load %arg1[%c0, %c0_0, %c0_1] : memref<4x104x896xf32, #tpu.memory_space<vmem>>, vector<1x104x896xf32>
    %1 = vector.shape_cast %0 : vector<1x104x896xf32> to vector<104x896xf32>
    %c1 = arith.constant 1 : index
    %c0_2 = arith.constant 0 : index
    %c0_3 = arith.constant 0 : index
    %2 = vector.load %arg1[%c1, %c0_2, %c0_3] : memref<4x104x896xf32, #tpu.memory_space<vmem>>, vector<1x104x896xf32>
    %3 = vector.shape_cast %2 : vector<1x104x896xf32> to vector<104x896xf32>
    %c2 = arith.constant 2 : index
    %c0_4 = arith.constant 0 : index
    %c0_5 = arith.constant 0 : index
    %4 = vector.load %arg1[%c2, %c0_4, %c0_5] : memref<4x104x896xf32, #tpu.memory_space<vmem>>, vector<1x104x896xf32>
    %5 = vector.shape_cast %4 : vector<1x104x896xf32> to vector<104x896xf32>
    %c3 = arith.constant 3 : index
    %c0_6 = arith.constant 0 : index
    %c0_7 = arith.constant 0 : index
    %6 = vector.load %arg1[%c3, %c0_6, %c0_7] : memref<4x104x896xf32, #tpu.memory_space<vmem>>, vector<1x104x896xf32>
    %7 = vector.shape_cast %6 : vector<1x104x896xf32> to vector<104x896xf32>
    %8 = tpu.concatenate %1, %3, %5, %7 in 0 : vector<104x896xf32>, vector<104x896xf32>, vector<104x896xf32>, vector<104x896xf32> -> vector<416x896xf32>
    %c0_8 = arith.constant 0 : index
    %c0_9 = arith.constant 0 : index
    %9 = vector.load %arg2[%c0_8, %c0_9] : memref<896x32xf32, #tpu.memory_space<vmem>>, vector<896x32xf32>
    %cst = arith.constant dense<0.000000e+00> : vector<416x32xf32>
    %10 = tpu.matmul %8, %9, %cst {dimension_numbers = #tpu.dot_dimension_numbers<[1], [0], [0], [1], [0, 0, 1, 1], [], []>} : vector<416x896xf32>, vector<896x32xf32>, vector<416x32xf32> -> vector<416x32xf32>
    %11 = vector.extract_strided_slice %10 {offsets = [0, 0], sizes = [104, 32], strides = [1, 1]} : vector<416x32xf32> to vector<104x32xf32>
    %12 = vector.extract_strided_slice %10 {offsets = [104, 0], sizes = [104, 32], strides = [1, 1]} : vector<416x32xf32> to vector<104x32xf32>
    %13 = arith.maximumf %11, %12 : vector<104x32xf32>
    %14 = vector.extract_strided_slice %10 {offsets = [208, 0], sizes = [104, 32], strides = [1, 1]} : vector<416x32xf32> to vector<104x32xf32>
    %15 = vector.extract_strided_slice %10 {offsets = [312, 0], sizes = [104, 32], strides = [1, 1]} : vector<416x32xf32> to vector<104x32xf32>
    %16 = arith.maximumf %14, %15 : vector<104x32xf32>
    %17 = arith.maximumf %13, %16 : vector<104x32xf32>
    %c0_10 = arith.constant 0 : index
    %c0_11 = arith.constant 0 : index
    %18 = vector.load %arg3[%c0_10, %c0_11] : memref<1x32xf32, #tpu.memory_space<vmem>>, vector<1x32xf32>
    %19 = vector.broadcast %18 : vector<1x32xf32> to vector<104x32xf32>
    %20 = arith.addf %17, %19 : vector<104x32xf32>
    %cst_12 = arith.constant 0.000000e+00 : f32
    %21 = vector.broadcast %cst_12 : f32 to vector<104x32xf32>
    %22 = arith.maximumf %20, %21 : vector<104x32xf32>
    %c0_13 = arith.constant 0 : index
    %c0_14 = arith.constant 0 : index
    %23 = vector.load %arg4[%c0_13, %c0_14] : memref<104x32xf32, #tpu.memory_space<vmem>>, vector<104x32xf32>
    tpu.vector_store %arg4[%c0_13, %c0_14], %22 {strides = array<i32>} : memref<104x32xf32, #tpu.memory_space<vmem>>, vector<104x32xf32>,
    return
  }
  func.func @transform_0(%arg0: i32) -> (i32, i32, i32) {
    %c0_i32 = arith.constant 0 : i32
    %c0_i32_0 = arith.constant 0 : i32
    %c0_i32_1 = arith.constant 0 : i32
    return %c0_i32, %arg0, %c0_i32_0 : i32, i32, i32
  }
  func.func @transform_1(%arg0: i32) -> (i32, i32) {
    %c0_i32 = arith.constant 0 : i32
    %c0_i32_0 = arith.constant 0 : i32
    %c0_i32_1 = arith.constant 0 : i32
    return %c0_i32, %c0_i32_0 : i32, i32
  }
  func.func @transform_2(%arg0: i32) -> (i32, i32) {
    %c0_i32 = arith.constant 0 : i32
    %c0_i32_0 = arith.constant 0 : i32
    %c0_i32_1 = arith.constant 0 : i32
    return %c0_i32, %c0_i32_0 : i32, i32
  }
  func.func @transform_3(%arg0: i32) -> (i32, i32) {
    %c0_i32 = arith.constant 0 : i32
    %c0_i32_0 = arith.constant 0 : i32
    return %arg0, %c0_i32 : i32, i32
  }
}

module attributes {stable_mosaic.version = 11 : i64} {
  func.func @_mlp_kernel(%arg0: i32, %arg1: memref<2x1568xf32, #tpu.memory_space<vmem>>, %arg2: memref<1568x32xf32, #tpu.memory_space<vmem>>, %arg3: memref<1x32xf32, #tpu.memory_space<vmem>>, %arg4: memref<32x10xf32, #tpu.memory_space<vmem>>, %arg5: memref<1x10xf32, #tpu.memory_space<vmem>>, %arg6: memref<2x10xf32, #tpu.memory_space<vmem>>) attributes {dimension_semantics = [#tpu.dimension_semantics<parallel>], iteration_bounds = array<i64: 1>, scalar_prefetch = 0 : i64, scratch_operands = 0 : i64, tpu.core_type = #tpu.core_type<tc>, window_params = [{transform_indices = @transform_0, window_bounds = array<i64: 2, 1568>}, {pipeline_mode = #tpu.pipeline_mode<synchronous>, transform_indices = @transform_1, window_bounds = array<i64: 1568, 32>}, {pipeline_mode = #tpu.pipeline_mode<synchronous>, transform_indices = @transform_2, window_bounds = array<i64: 1, 32>}, {pipeline_mode = #tpu.pipeline_mode<synchronous>, transform_indices = @transform_3, window_bounds = array<i64: 32, 10>}, {pipeline_mode = #tpu.pipeline_mode<synchronous>, transform_indices = @transform_4, window_bounds = array<i64: 1, 10>}, {transform_indices = @transform_5, window_bounds = array<i64: 2, 10>}]} {
    %c0 = arith.constant 0 : index
    %c0_0 = arith.constant 0 : index
    %0 = vector.load %arg1[%c0, %c0_0] : memref<2x1568xf32, #tpu.memory_space<vmem>>, vector<2x1568xf32>
    %c0_1 = arith.constant 0 : index
    %c0_2 = arith.constant 0 : index
    %1 = vector.load %arg2[%c0_1, %c0_2] : memref<1568x32xf32, #tpu.memory_space<vmem>>, vector<1568x32xf32>
    %cst = arith.constant dense<0.000000e+00> : vector<2x32xf32>
    %2 = tpu.matmul %0, %1, %cst {dimension_numbers = #tpu.dot_dimension_numbers<[1], [0], [0], [1], [0, 0, 1, 1], [], []>} : vector<2x1568xf32>, vector<1568x32xf32>, vector<2x32xf32> -> vector<2x32xf32>
    %c0_3 = arith.constant 0 : index
    %c0_4 = arith.constant 0 : index
    %3 = vector.load %arg3[%c0_3, %c0_4] : memref<1x32xf32, #tpu.memory_space<vmem>>, vector<1x32xf32>
    %4 = vector.broadcast %3 : vector<1x32xf32> to vector<2x32xf32>
    %5 = arith.addf %2, %4 : vector<2x32xf32>
    %c0_5 = arith.constant 0 : index
    %c0_6 = arith.constant 0 : index
    %6 = vector.load %arg4[%c0_5, %c0_6] : memref<32x10xf32, #tpu.memory_space<vmem>>, vector<32x10xf32>
    %cst_7 = arith.constant dense<0.000000e+00> : vector<2x10xf32>
    %7 = tpu.matmul %5, %6, %cst_7 {dimension_numbers = #tpu.dot_dimension_numbers<[1], [0], [0], [1], [0, 0, 1, 1], [], []>} : vector<2x32xf32>, vector<32x10xf32>, vector<2x10xf32> -> vector<2x10xf32>
    %c0_8 = arith.constant 0 : index
    %c0_9 = arith.constant 0 : index
    %8 = vector.load %arg5[%c0_8, %c0_9] : memref<1x10xf32, #tpu.memory_space<vmem>>, vector<1x10xf32>
    %9 = vector.broadcast %8 : vector<1x10xf32> to vector<2x10xf32>
    %10 = arith.addf %7, %9 : vector<2x10xf32>
    %c0_10 = arith.constant 0 : index
    %c0_11 = arith.constant 0 : index
    %11 = vector.load %arg6[%c0_10, %c0_11] : memref<2x10xf32, #tpu.memory_space<vmem>>, vector<2x10xf32>
    tpu.vector_store %arg6[%c0_10, %c0_11], %10 {strides = array<i32>} : memref<2x10xf32, #tpu.memory_space<vmem>>, vector<2x10xf32>,
    return
  }
  func.func @transform_0(%arg0: i32) -> (i32, i32) {
    %c0_i32 = arith.constant 0 : i32
    %c0_i32_0 = arith.constant 0 : i32
    return %arg0, %c0_i32 : i32, i32
  }
  func.func @transform_1(%arg0: i32) -> (i32, i32) {
    %c0_i32 = arith.constant 0 : i32
    %c0_i32_0 = arith.constant 0 : i32
    %c0_i32_1 = arith.constant 0 : i32
    return %c0_i32, %c0_i32_0 : i32, i32
  }
  func.func @transform_2(%arg0: i32) -> (i32, i32) {
    %c0_i32 = arith.constant 0 : i32
    %c0_i32_0 = arith.constant 0 : i32
    %c0_i32_1 = arith.constant 0 : i32
    return %c0_i32, %c0_i32_0 : i32, i32
  }
  func.func @transform_3(%arg0: i32) -> (i32, i32) {
    %c0_i32 = arith.constant 0 : i32
    %c0_i32_0 = arith.constant 0 : i32
    %c0_i32_1 = arith.constant 0 : i32
    return %c0_i32, %c0_i32_0 : i32, i32
  }
  func.func @transform_4(%arg0: i32) -> (i32, i32) {
    %c0_i32 = arith.constant 0 : i32
    %c0_i32_0 = arith.constant 0 : i32
    %c0_i32_1 = arith.constant 0 : i32
    return %c0_i32, %c0_i32_0 : i32, i32
  }
  func.func @transform_5(%arg0: i32) -> (i32, i32) {
    %c0_i32 = arith.constant 0 : i32
    %c0_i32_0 = arith.constant 0 : i32
    return %arg0, %c0_i32 : i32, i32
  }
}

</mosaic_0001>

<bundles_post_ra>
// kernel: _lambda_.3
= control target key start
LH: loop header
LB: loop body
LE: loop exit
PB: predicated region body
PF: predicated region fallthrough
CT: control target
= control target key end

     0   :  { %vm217_vm0 = vcmask 261120   ;;  %s4374_s1 = inlined_call_operand.vmem [shape: f32[32,32], index: 1, kind: input, shape index: {}]   ;;  %s4375_s0 = inlined_call_operand.vmem [shape: f32[4,392,32], index: 0, kind: input, shape index: {}]   ;;  %s4376_s2 = inlined_call_operand.vmem [shape: f32[1,32], index: 2, kind: input, shape index: {}]   ;;  %s4377_s3 = inlined_call_operand.vmem [shape: f32[392,32], index: 3, kind: output, shape index: {}]  }
   0x1   :  { %v213_v0 = vld [vmem:[%s4374_s1] sm:$0xff]  ;;  %v214_v1 = vld [vmem:[%s4374_s1 + $0x8] sm:$0xff]  ;;  %v215_v2 = vld [vmem:[%s4374_s1 + $0x10] sm:$0xff] }
   0x2   :  { %v3002_v3 = vpack.c.bf16 %v214_v1, %v213_v0  ;;  %v216_v4 = vld [vmem:[%s4374_s1 + $0x18] sm:$0xff]  ;;  %v14_v5 = vld [vmem:[%s4375_s0] sm:$0xff]  ;;  %v2205_v6 = vld [vmem:[%s4375_s0 + $0x310] sm:$0xff] }
   0x3   :  { %v3006_v7 = vpack.c.bf16 %v216_v4, %v215_v2  ;;  %2708 = vmatprep.mubr.msk.f32.mxu0 %vm217_vm0, %v14_v5  ;;  %2855 = vmatprep.mubr.msk.f32.mxu1 %vm217_vm0, %v2205_v6  ;;  %v15_v8 = vld [vmem:[%s4375_s0 + $0x8] sm:$0xff]  ;;  %v2206_v9 = vld [vmem:[%s4375_s0 + $0x318] sm:$0xff]  ;;  %v16_v10 = vld [vmem:[%s4375_s0 + $0x10] sm:$0xff] }
   0x4   :  { %3003 = vmatprep.subr.bf16.mxu0 %v3002_v3  ;;  %3010 = vmatprep.subr.bf16.mxu1 %v3002_v3  ;;  %v2207_v11 = vld [vmem:[%s4375_s0 + $0x320] sm:$0xff]  ;;  %v17_v12 = vld [vmem:[%s4375_s0 + $0x18] sm:$0xff]  ;;  %v2208_v13 = vld [vmem:[%s4375_s0 + $0x328] sm:$0xff] }
   0x5   :  { %3005 = vmatpush3.bf16.msra.mxu0 %v3002_v3  ;;  %3012 = vmatpush3.bf16.msra.mxu1 %v3002_v3  ;;  %v18_v14 = vld [vmem:[%s4375_s0 + $0x20] sm:$0xff]  ;;  %v2209_v15 = vld [vmem:[%s4375_s0 + $0x330] sm:$0xff]  ;;  %v19_v16 = vld [vmem:[%s4375_s0 + $0x28] sm:$0xff] }
   0x6   :  { %3007 = vmatprep.subr.bf16.mxu0 %v3006_v7  ;;  %3011 = vmatprep.subr.bf16.mxu1 %v3006_v7  ;;  %v2210_v17 = vld [vmem:[%s4375_s0 + $0x338] sm:$0xff]  ;;  %v20_v18 = vld [vmem:[%s4375_s0 + $0x30] sm:$0xff]  ;;  %v2211_v19 = vld [vmem:[%s4375_s0 + $0x340] sm:$0xff] }
   0x7   :  { %v21_v20 = vld [vmem:[%s4375_s0 + $0x38] sm:$0xff]  ;;  %v2212_v21 = vld [vmem:[%s4375_s0 + $0x348] sm:$0xff]  ;;  %v22_v22 = vld [vmem:[%s4375_s0 + $0x40] sm:$0xff] }
   0x8   :  { %v2213_v23 = vld [vmem:[%s4375_s0 + $0x350] sm:$0xff]  ;;  %v23_v24 = vld [vmem:[%s4375_s0 + $0x48] sm:$0xff]  ;;  %v2214_v25 = vld [vmem:[%s4375_s0 + $0x358] sm:$0xff] }
   0x9   :  { %3009 = vmatpush3.bf16.msra.mxu0 %v3006_v7  ;;  %3013 = vmatpush3.bf16.msra.mxu1 %v3006_v7  ;;  %v24_v26 = vld [vmem:[%s4375_s0 + $0x50] sm:$0xff]  ;;  %v2215_v27 = vld [vmem:[%s4375_s0 + $0x360] sm:$0xff]  ;;  %v25_v28 = vld [vmem:[%s4375_s0 + $0x58] sm:$0xff] }
   0xa   :  { %v2216_v29 = vld [vmem:[%s4375_s0 + $0x368] sm:$0xff]  ;;  %v26_v30 = vld [vmem:[%s4375_s0 + $0x60] sm:$0xff]  ;;  %v2217_v31 = vld [vmem:[%s4375_s0 + $0x370] sm:$0xff] }
   0xb   :  { %v27_v32 = vld [vmem:[%s4375_s0 + $0x68] sm:$0xff]  ;;  %v2218_v33 = vld [vmem:[%s4375_s0 + $0x378] sm:$0xff]  ;;  %v28_v34 = vld [vmem:[%s4375_s0 + $0x70] sm:$0xff] }
   0xc   :  { %2709 = vmatmul.mubr.msk.f32.vlgmr.msra.gmra.mrb[0].mxu0 %vm217_vm0, %v15_v8  ;;  %2856 = vmatmul.mubr.msk.f32.vlgmr.msra.gmra.mrb[0].mxu1 %vm217_vm0, %v2206_v9  ;;  %v2219_v35 = vld [vmem:[%s4375_s0 + $0x380] sm:$0xff]  ;;  %v29_v36 = vld [vmem:[%s4375_s0 + $0x78] sm:$0xff]  ;;  %v2220_v37 = vld [vmem:[%s4375_s0 + $0x388] sm:$0xff] }
   0xd   :  { %2711 = vmatprep.mubr.msk.f32.mxu0 %vm217_vm0, %v16_v10  ;;  %2858 = vmatprep.mubr.msk.f32.mxu1 %vm217_vm0, %v2207_v11  ;;  %v30_v38 = vld [vmem:[%s4375_s0 + $0x80] sm:$0xff]  ;;  %v2221_v39 = vld [vmem:[%s4375_s0 + $0x390] sm:$0xff]  ;;  %v31_v40 = vld [vmem:[%s4375_s0 + $0x88] sm:$0xff] }
   0xe   :  { %v2222_v41 = vld [vmem:[%s4375_s0 + $0x398] sm:$0xff]  ;;  %v32_v42 = vld [vmem:[%s4375_s0 + $0x90] sm:$0xff]  ;;  %v2223_v43 = vld [vmem:[%s4375_s0 + $0x3a0] sm:$0xff] }
   0xf   :  { %v33_v44 = vld [vmem:[%s4375_s0 + $0x98] sm:$0xff]  ;;  %v2224_v45 = vld [vmem:[%s4375_s0 + $0x3a8] sm:$0xff]  ;;  %v34_v46 = vld [vmem:[%s4375_s0 + $0xa0] sm:$0xff] }
  0x10   :  { %2712 = vmatmul.mubr.msk.f32.gmra.mrb[2].mxu0 %vm217_vm0, %v17_v12  ;;  %2859 = vmatmul.mubr.msk.f32.gmra.mrb[2].mxu1 %vm217_vm0, %v2208_v13  ;;  %v2225_v47 = vld [vmem:[%s4375_s0 + $0x3b0] sm:$0xff]  ;;  %v35_v48 = vld [vmem:[%s4375_s0 + $0xa8] sm:$0xff]  ;;  %v2226_v49 = vld [vmem:[%s4375_s0 + $0x3b8] sm:$0xff] }
  0x11   :  { %2714 = vmatprep.mubr.msk.f32.mxu0 %vm217_vm0, %v18_v14  ;;  %2861 = vmatprep.mubr.msk.f32.mxu1 %vm217_vm0, %v2209_v15  ;;  %v36_v50 = vld [vmem:[%s4375_s0 + $0xb0] sm:$0xff]  ;;  %v2227_v51 = vld [vmem:[%s4375_s0 + $0x3c0] sm:$0xff]  ;;  %v37_v52 = vld [vmem:[%s4375_s0 + $0xb8] sm:$0xff] }
  0x12   :  { %v2228_v53 = vld [vmem:[%s4375_s0 + $0x3c8] sm:$0xff]  ;;  %v38_v54 = vld [vmem:[%s4375_s0 + $0xc0] sm:$0xff]  ;;  %v2229_v55 = vld [vmem:[%s4375_s0 + $0x3d0] sm:$0xff] }
  0x13   :  { %v39_v56 = vld [vmem:[%s4375_s0 + $0xc8] sm:$0xff]  ;;  %v2230_v57 = vld [vmem:[%s4375_s0 + $0x3d8] sm:$0xff]  ;;  %v40_v58 = vld [vmem:[%s4375_s0 + $0xd0] sm:$0xff] }
  0x14   :  { %2715 = vmatmul.mubr.msk.f32.gmra.mrb[4].mxu0 %vm217_vm0, %v19_v16  ;;  %2862 = vmatmul.mubr.msk.f32.gmra.mrb[4].mxu1 %vm217_vm0, %v2210_v17  ;;  %v2231_v59 = vld [vmem:[%s4375_s0 + $0x3e0] sm:$0xff]  ;;  %v41_v60 = vld [vmem:[%s4375_s0 + $0xd8] sm:$0xff]  ;;  %v2232_v61 = vld [vmem:[%s4375_s0 + $0x3e8] sm:$0xff] }
  0x15   :  { %2717 = vmatprep.mubr.msk.f32.mxu0 %vm217_vm0, %v20_v18  ;;  %2864 = vmatprep.mubr.msk.f32.mxu1 %vm217_vm0, %v2211_v19  ;;  %v42_v62 = vld [vmem:[%s4375_s0 + $0xe0] sm:$0xff]  ;;  %v2233_v63 = vld [vmem:[%s4375_s0 + $0x3f0] sm:$0xff]  ;;  %v43_v0 = vld [vmem:[%s4375_s0 + $0xe8] sm:$0xff] }
  0x16   :  { %v2234_v1 = vld [vmem:[%s4375_s0 + $0x3f8] sm:$0xff]  ;;  %v44_v2 = vld [vmem:[%s4375_s0 + $0xf0] sm:$0xff]  ;;  %v2235_v3 = vld [vmem:[%s4375_s0 + $0x400] sm:$0xff] }
  0x17   :  { %v45_v4 = vld [vmem:[%s4375_s0 + $0xf8] sm:$0xff]  ;;  %v2236_v5 = vld [vmem:[%s4375_s0 + $0x408] sm:$0xff]  ;;  %v46_v6 = vld [vmem:[%s4375_s0 + $0x100] sm:$0xff] }
  0x18   :  { %2718 = vmatmul.mubr.msk.f32.gmra.mrb[6].mxu0 %vm217_vm0, %v21_v20  ;;  %2865 = vmatmul.mubr.msk.f32.gmra.mrb[6].mxu1 %vm217_vm0, %v2212_v21  ;;  %v2237_v7 = vld [vmem:[%s4375_s0 + $0x410] sm:$0xff]  ;;  %v47_v8 = vld [vmem:[%s4375_s0 + $0x108] sm:$0xff]  ;;  %v2238_v9 = vld [vmem:[%s4375_s0 + $0x418] sm:$0xff] }
  0x19   :  { %2720 = vmatprep.mubr.msk.f32.mxu0 %vm217_vm0, %v22_v22  ;;  %2867 = vmatprep.mubr.msk.f32.mxu1 %vm217_vm0, %v2213_v23  ;;  %v48_v10 = vld [vmem:[%s4375_s0 + $0x110] sm:$0xff]  ;;  %v2239_v11 = vld [vmem:[%s4375_s0 + $0x420] sm:$0xff]  ;;  %v49_v12 = vld [vmem:[%s4375_s0 + $0x118] sm:$0xff] }
  0x1a   :  { %v2240_v13 = vld [vmem:[%s4375_s0 + $0x428] sm:$0xff]  ;;  %v50_v14 = vld [vmem:[%s4375_s0 + $0x120] sm:$0xff]  ;;  %v2241_v15 = vld [vmem:[%s4375_s0 + $0x430] sm:$0xff] }
  0x1b   :  { %v51_v16 = vld [vmem:[%s4375_s0 + $0x128] sm:$0xff]  ;;  %v2242_v17 = vld [vmem:[%s4375_s0 + $0x438] sm:$0xff]  ;;  %v52_v18 = vld [vmem:[%s4375_s0 + $0x130] sm:$0xff] }
  0x1c   :  { %2721 = vmatmul.mubr.msk.f32.gmra.mrb[8].mxu0 %vm217_vm0, %v23_v24  ;;  %2868 = vmatmul.mubr.msk.f32.gmra.mrb[8].mxu1 %vm217_vm0, %v2214_v25  ;;  %v2243_v19 = vld [vmem:[%s4375_s0 + $0x440] sm:$0xff]  ;;  %v53_v20 = vld [vmem:[%s4375_s0 + $0x138] sm:$0xff]  ;;  %v2244_v21 = vld [vmem:[%s4375_s0 + $0x448] sm:$0xff] }
  0x1d   :  { %2723 = vmatprep.mubr.msk.f32.mxu0 %vm217_vm0, %v24_v26  ;;  %2870 = vmatprep.mubr.msk.f32.mxu1 %vm217_vm0, %v2215_v27  ;;  %v54_v22 = vld [vmem:[%s4375_s0 + $0x140] sm:$0xff]  ;;  %v2245_v23 = vld [vmem:[%s4375_s0 + $0x450] sm:$0xff]  ;;  %v55_v24 = vld [vmem:[%s4375_s0 + $0x148] sm:$0xff] }
  0x1e   :  { %v2246_v25 = vld [vmem:[%s4375_s0 + $0x458] sm:$0xff]  ;;  %v56_v26 = vld [vmem:[%s4375_s0 + $0x150] sm:$0xff]  ;;  %v2247_v27 = vld [vmem:[%s4375_s0 + $0x460] sm:$0xff] }
  0x20   :  { %2724 = vmatmul.mubr.msk.f32.gmra.mrb[10].mxu0 %vm217_vm0, %v25_v28  ;;  %2871 = vmatmul.mubr.msk.f32.gmra.mrb[10].mxu1 %vm217_vm0, %v2216_v29  ;;  %v57_v28 = vld [vmem:[%s4375_s0 + $0x158] sm:$0xff]  ;;  %v2248_v29 = vld [vmem:[%s4375_s0 + $0x468] sm:$0xff] }
  0x21   :  { %2726 = vmatprep.mubr.msk.f32.mxu0 %vm217_vm0, %v26_v30  ;;  %2873 = vmatprep.mubr.msk.f32.mxu1 %vm217_vm0, %v2217_v31  ;;  %v58_v30 = vld [vmem:[%s4375_s0 + $0x160] sm:$0xff]  ;;  %v2249_v31 = vld [vmem:[%s4375_s0 + $0x470] sm:$0xff] }
  0x24   :  { %2727 = vmatmul.mubr.msk.f32.gmra.mrb[12].mxu0 %vm217_vm0, %v27_v32  ;;  %2874 = vmatmul.mubr.msk.f32.gmra.mrb[12].mxu1 %vm217_vm0, %v2218_v33  ;;  %v59_v32 = vld [vmem:[%s4375_s0 + $0x168] sm:$0xff]  ;;  %v2250_v33 = vld [vmem:[%s4375_s0 + $0x478] sm:$0xff] }
  0x25   :  { %2729 = vmatprep.mubr.msk.f32.mxu0 %vm217_vm0, %v28_v34  ;;  %2876 = vmatprep.mubr.msk.f32.mxu1 %vm217_vm0, %v2219_v35  ;;  %v60_v34 = vld [vmem:[%s4375_s0 + $0x170] sm:$0xff]  ;;  %v2251_v35 = vld [vmem:[%s4375_s0 + $0x480] sm:$0xff] }
  0x28   :  { %2730 = vmatmul.mubr.msk.f32.gmra.mrb[14].mxu0 %vm217_vm0, %v29_v36  ;;  %2877 = vmatmul.mubr.msk.f32.gmra.mrb[14].mxu1 %vm217_vm0, %v2220_v37  ;;  %v61_v36 = vld [vmem:[%s4375_s0 + $0x178] sm:$0xff]  ;;  %v2252_v37 = vld [vmem:[%s4375_s0 + $0x488] sm:$0xff] }
  0x29   :  { %2732 = vmatprep.mubr.msk.f32.mxu0 %vm217_vm0, %v30_v38  ;;  %2879 = vmatprep.mubr.msk.f32.mxu1 %vm217_vm0, %v2221_v39  ;;  %v62_v38 = vld [vmem:[%s4375_s0 + $0x180] sm:$0xff]  ;;  %v2253_v39 = vld [vmem:[%s4375_s0 + $0x490] sm:$0xff] }
  0x2c   :  { %2733 = vmatmul.mubr.msk.f32.gmra.mrb[16].mxu0 %vm217_vm0, %v31_v40  ;;  %2880 = vmatmul.mubr.msk.f32.gmra.mrb[16].mxu1 %vm217_vm0, %v2222_v41  ;;  %v2156_v40 = vld [vmem:[%s4375_s0 + $0x188] sm:$0xff]  ;;  %v2254_v41 = vld [vmem:[%s4375_s0 + $0x498] sm:$0xff] }
  0x2d   :  { %2735 = vmatprep.mubr.msk.f32.mxu0 %vm217_vm0, %v32_v42  ;;  %2882 = vmatprep.mubr.msk.f32.mxu1 %vm217_vm0, %v2223_v43  ;;  %v2157_v42 = vld [vmem:[%s4375_s0 + $0x190] sm:$0xff]  ;;  %v2255_v43 = vld [vmem:[%s4375_s0 + $0x4a0] sm:$0xff] }
  0x30   :  { %2736 = vmatmul.mubr.msk.f32.gmra.mrb[18].mxu0 %vm217_vm0, %v33_v44  ;;  %2883 = vmatmul.mubr.msk.f32.gmra.mrb[18].mxu1 %vm217_vm0, %v2224_v45  ;;  %v2158_v44 = vld [vmem:[%s4375_s0 + $0x198] sm:$0xff]  ;;  %v2256_v45 = vld [vmem:[%s4375_s0 + $0x4a8] sm:$0xff] }
  0x31   :  { %2738 = vmatprep.mubr.msk.f32.mxu0 %vm217_vm0, %v34_v46  ;;  %2885 = vmatprep.mubr.msk.f32.mxu1 %vm217_vm0, %v2225_v47  ;;  %v2159_v46 = vld [vmem:[%s4375_s0 + $0x1a0] sm:$0xff]  ;;  %v2257_v47 = vld [vmem:[%s4375_s0 + $0x4b0] sm:$0xff] }
  0x34   :  { %2739 = vmatmul.mubr.msk.f32.gmra.mrb[20].mxu0 %vm217_vm0, %v35_v48  ;;  %2886 = vmatmul.mubr.msk.f32.gmra.mrb[20].mxu1 %vm217_vm0, %v2226_v49  ;;  %v2160_v48 = vld [vmem:[%s4375_s0 + $0x1a8] sm:$0xff]  ;;  %v2258_v49 = vld [vmem:[%s4375_s0 + $0x4b8] sm:$0xff] }
  0x35   :  { %2741 = vmatprep.mubr.msk.f32.mxu0 %vm217_vm0, %v36_v50  ;;  %2888 = vmatprep.mubr.msk.f32.mxu1 %vm217_vm0, %v2227_v51  ;;  %v2161_v50 = vld [vmem:[%s4375_s0 + $0x1b0] sm:$0xff]  ;;  %v2259_v51 = vld [vmem:[%s4375_s0 + $0x4c0] sm:$0xff] }
  0x38   :  { %2742 = vmatmul.mubr.msk.f32.gmra.mrb[22].mxu0 %vm217_vm0, %v37_v52  ;;  %2889 = vmatmul.mubr.msk.f32.gmra.mrb[22].mxu1 %vm217_vm0, %v2228_v53  ;;  %v2162_v52 = vld [vmem:[%s4375_s0 + $0x1b8] sm:$0xff]  ;;  %v2260_v53 = vld [vmem:[%s4375_s0 + $0x4c8] sm:$0xff] }
  0x39   :  { %2744 = vmatprep.mubr.msk.f32.mxu0 %vm217_vm0, %v38_v54  ;;  %2891 = vmatprep.mubr.msk.f32.mxu1 %vm217_vm0, %v2229_v55  ;;  %v2163_v54 = vld [vmem:[%s4375_s0 + $0x1c0] sm:$0xff]  ;;  %v2261_v55 = vld [vmem:[%s4375_s0 + $0x4d0] sm:$0xff] }
  0x3c   :  { %2745 = vmatmul.mubr.msk.f32.gmra.mrb[24].mxu0 %vm217_vm0, %v39_v56  ;;  %2892 = vmatmul.mubr.msk.f32.gmra.mrb[24].mxu1 %vm217_vm0, %v2230_v57  ;;  %v2164_v56 = vld [vmem:[%s4375_s0 + $0x1c8] sm:$0xff]  ;;  %v2262_v57 = vld [vmem:[%s4375_s0 + $0x4d8] sm:$0xff] }
  0x3d   :  { %2747 = vmatprep.mubr.msk.f32.mxu0 %vm217_vm0, %v40_v58  ;;  %2894 = vmatprep.mubr.msk.f32.mxu1 %vm217_vm0, %v2231_v59  ;;  %v2165_v58 = vld [vmem:[%s4375_s0 + $0x1d0] sm:$0xff]  ;;  %v2263_v59 = vld [vmem:[%s4375_s0 + $0x4e0] sm:$0xff] }
  0x40   :  { %2748 = vmatmul.mubr.msk.f32.gmra.mrb[26].mxu0 %vm217_vm0, %v41_v60  ;;  %2895 = vmatmul.mubr.msk.f32.gmra.mrb[26].mxu1 %vm217_vm0, %v2232_v61  ;;  %v2166_v60 = vld [vmem:[%s4375_s0 + $0x1d8] sm:$0xff]  ;;  %v2264_v61 = vld [vmem:[%s4375_s0 + $0x4e8] sm:$0xff] }
  0x41   :  { %2750 = vmatprep.mubr.msk.f32.mxu0 %vm217_vm0, %v42_v62  ;;  %2897 = vmatprep.mubr.msk.f32.mxu1 %vm217_vm0, %v2233_v63  ;;  %v2167_v62 = vld [vmem:[%s4375_s0 + $0x1e0] sm:$0xff]  ;;  %v2265_v63 = vld [vmem:[%s4375_s0 + $0x4f0] sm:$0xff] }
  0x44   :  { %2751 = vmatmul.mubr.msk.f32.gmra.mrb[28].mxu0 %vm217_vm0, %v43_v0  ;;  %2898 = vmatmul.mubr.msk.f32.gmra.mrb[28].mxu1 %vm217_vm0, %v2234_v1  ;;  %v2168_v0 = vld [vmem:[%s4375_s0 + $0x1e8] sm:$0xff]  ;;  %v2266_v1 = vld [vmem:[%s4375_s0 + $0x4f8] sm:$0xff] }
  0x45   :  { %2753 = vmatprep.mubr.msk.f32.mxu0 %vm217_vm0, %v44_v2  ;;  %2900 = vmatprep.mubr.msk.f32.mxu1 %vm217_vm0, %v2235_v3  ;;  %v2169_v2 = vld [vmem:[%s4375_s0 + $0x1f0] sm:$0xff]  ;;  %v2267_v3 = vld [vmem:[%s4375_s0 + $0x500] sm:$0xff] }
  0x48   :  { %2754 = vmatmul.mubr.msk.f32.gmra.mrb[30].mxu0 %vm217_vm0, %v45_v4  ;;  %2901 = vmatmul.mubr.msk.f32.gmra.mrb[30].mxu1 %vm217_vm0, %v2236_v5  ;;  %v2170_v4 = vld [vmem:[%s4375_s0 + $0x1f8] sm:$0xff]  ;;  %v2268_v5 = vld [vmem:[%s4375_s0 + $0x508] sm:$0xff] }
  0x49   :  { %2756 = vmatprep.mubr.msk.f32.mxu0 %vm217_vm0, %v46_v6  ;;  %2903 = vmatprep.mubr.msk.f32.mxu1 %vm217_vm0, %v2237_v7  ;;  %v2171_v6 = vld [vmem:[%s4375_s0 + $0x200] sm:$0xff]  ;;  %v2269_v7 = vld [vmem:[%s4375_s0 + $0x510] sm:$0xff] }
  0x4c   :  { %2757 = vmatmul.mubr.msk.f32.gmra.mrb[32].mxu0 %vm217_vm0, %v47_v8  ;;  %2904 = vmatmul.mubr.msk.f32.gmra.mrb[32].mxu1 %vm217_vm0, %v2238_v9  ;;  %v2172_v8 = vld [vmem:[%s4375_s0 + $0x208] sm:$0xff]  ;;  %v2270_v9 = vld [vmem:[%s4375_s0 + $0x518] sm:$0xff] }
  0x4d   :  { %2759 = vmatprep.mubr.msk.f32.mxu0 %vm217_vm0, %v48_v10  ;;  %2906 = vmatprep.mubr.msk.f32.mxu1 %vm217_vm0, %v2239_v11  ;;  %v2173_v10 = vld [vmem:[%s4375_s0 + $0x210] sm:$0xff]  ;;  %v2271_v11 = vld [vmem:[%s4375_s0 + $0x520] sm:$0xff] }
  0x50   :  { %2760 = vmatmul.mubr.msk.f32.gmra.mrb[34].mxu0 %vm217_vm0, %v49_v12  ;;  %2907 = vmatmul.mubr.msk.f32.gmra.mrb[34].mxu1 %vm217_vm0, %v2240_v13  ;;  %v2174_v12 = vld [vmem:[%s4375_s0 + $0x218] sm:$0xff]  ;;  %v2272_v13 = vld [vmem:[%s4375_s0 + $0x528] sm:$0xff] }
  0x51   :  { %2762 = vmatprep.mubr.msk.f32.mxu0 %vm217_vm0, %v50_v14  ;;  %2909 = vmatprep.mubr.msk.f32.mxu1 %vm217_vm0, %v2241_v15  ;;  %v2175_v14 = vld [vmem:[%s4375_s0 + $0x220] sm:$0xff]  ;;  %v2273_v15 = vld [vmem:[%s4375_s0 + $0x530] sm:$0xff] }
  0x54   :  { %2763 = vmatmul.mubr.msk.f32.gmra.mrb[36].mxu0 %vm217_vm0, %v51_v16  ;;  %2910 = vmatmul.mubr.msk.f32.gmra.mrb[36].mxu1 %vm217_vm0, %v2242_v17  ;;  %v2176_v16 = vld [vmem:[%s4375_s0 + $0x228] sm:$0xff]  ;;  %v2274_v17 = vld [vmem:[%s4375_s0 + $0x538] sm:$0xff] }
  0x55   :  { %2765 = vmatprep.mubr.msk.f32.mxu0 %vm217_vm0, %v52_v18  ;;  %2912 = vmatprep.mubr.msk.f32.mxu1 %vm217_vm0, %v2243_v19  ;;  %v2177_v18 = vld [vmem:[%s4375_s0 + $0x230] sm:$0xff]  ;;  %v2275_v19 = vld [vmem:[%s4375_s0 + $0x540] sm:$0xff] }
  0x58   :  { %2766 = vmatmul.mubr.msk.f32.gmra.mrb[38].mxu0 %vm217_vm0, %v53_v20  ;;  %2913 = vmatmul.mubr.msk.f32.gmra.mrb[38].mxu1 %vm217_vm0, %v2244_v21  ;;  %v2178_v20 = vld [vmem:[%s4375_s0 + $0x238] sm:$0xff]  ;;  %v2276_v21 = vld [vmem:[%s4375_s0 + $0x548] sm:$0xff] }
  0x59   :  { %2768 = vmatprep.mubr.msk.f32.mxu0 %vm217_vm0, %v54_v22  ;;  %2915 = vmatprep.mubr.msk.f32.mxu1 %vm217_vm0, %v2245_v23  ;;  %v2179_v22 = vld [vmem:[%s4375_s0 + $0x240] sm:$0xff]  ;;  %v2277_v23 = vld [vmem:[%s4375_s0 + $0x550] sm:$0xff] }
  0x5c   :  { %2769 = vmatmul.mubr.msk.f32.gmra.mrb[40].mxu0 %vm217_vm0, %v55_v24  ;;  %2916 = vmatmul.mubr.msk.f32.gmra.mrb[40].mxu1 %vm217_vm0, %v2246_v25  ;;  %v2180_v24 = vld [vmem:[%s4375_s0 + $0x248] sm:$0xff]  ;;  %v2278_v25 = vld [vmem:[%s4375_s0 + $0x558] sm:$0xff] }
  0x5d   :  { %2771 = vmatprep.mubr.msk.f32.mxu0 %vm217_vm0, %v56_v26  ;;  %2918 = vmatprep.mubr.msk.f32.mxu1 %vm217_vm0, %v2247_v27  ;;  %v2181_v26 = vld [vmem:[%s4375_s0 + $0x250] sm:$0xff]  ;;  %v2279_v27 = vld [vmem:[%s4375_s0 + $0x560] sm:$0xff] }
  0x60   :  { %2772 = vmatmul.mubr.msk.f32.gmra.mrb[42].mxu0 %vm217_vm0, %v57_v28  ;;  %2919 = vmatmul.mubr.msk.f32.gmra.mrb[42].mxu1 %vm217_vm0, %v2248_v29  ;;  %v2182_v28 = vld [vmem:[%s4375_s0 + $0x258] sm:$0xff]  ;;  %v2280_v29 = vld [vmem:[%s4375_s0 + $0x568] sm:$0xff] }
  0x61   :  { %2774 = vmatprep.mubr.msk.f32.mxu0 %vm217_vm0, %v58_v30  ;;  %2921 = vmatprep.mubr.msk.f32.mxu1 %vm217_vm0, %v2249_v31  ;;  %v2183_v30 = vld [vmem:[%s4375_s0 + $0x260] sm:$0xff]  ;;  %v2281_v31 = vld [vmem:[%s4375_s0 + $0x570] sm:$0xff] }
  0x64   :  { %2775 = vmatmul.mubr.msk.f32.gmra.mrb[44].mxu0 %vm217_vm0, %v59_v32  ;;  %2922 = vmatmul.mubr.msk.f32.gmra.mrb[44].mxu1 %vm217_vm0, %v2250_v33  ;;  %v2184_v32 = vld [vmem:[%s4375_s0 + $0x268] sm:$0xff]  ;;  %v2282_v33 = vld [vmem:[%s4375_s0 + $0x578] sm:$0xff] }
  0x65   :  { %2777 = vmatprep.mubr.msk.f32.mxu0 %vm217_vm0, %v60_v34  ;;  %2924 = vmatprep.mubr.msk.f32.mxu1 %vm217_vm0, %v2251_v35  ;;  %v2185_v34 = vld [vmem:[%s4375_s0 + $0x270] sm:$0xff]  ;;  %v2283_v35 = vld [vmem:[%s4375_s0 + $0x580] sm:$0xff] }
  0x68   :  { %2778 = vmatmul.mubr.msk.f32.gmra.mrb[46].mxu0 %vm217_vm0, %v61_v36  ;;  %2925 = vmatmul.mubr.msk.f32.gmra.mrb[46].mxu1 %vm217_vm0, %v2252_v37  ;;  %v2186_v36 = vld [vmem:[%s4375_s0 + $0x278] sm:$0xff]  ;;  %v2284_v37 = vld [vmem:[%s4375_s0 + $0x588] sm:$0xff] }
  0x69   :  { %2780 = vmatprep.mubr.msk.f32.mxu0 %vm217_vm0, %v62_v38  ;;  %2927 = vmatprep.mubr.msk.f32.mxu1 %vm217_vm0, %v2253_v39  ;;  %v2187_v38 = vld [vmem:[%s4375_s0 + $0x280] sm:$0xff]  ;;  %v2285_v39 = vld [vmem:[%s4375_s0 + $0x590] sm:$0xff] }
  0x6c   :  { %2781 = vmatmul.mubr.msk.f32.gmra.mrb[48].mxu0 %vm217_vm0, %v2156_v40  ;;  %2928 = vmatmul.mubr.msk.f32.gmra.mrb[48].mxu1 %vm217_vm0, %v2254_v41  ;;  %v2188_v40 = vld [vmem:[%s4375_s0 + $0x288] sm:$0xff]  ;;  %v2286_v41 = vld [vmem:[%s4375_s0 + $0x598] sm:$0xff] }
  0x6d   :  { %2783 = vmatprep.mubr.msk.f32.mxu0 %vm217_vm0, %v2157_v42  ;;  %2930 = vmatprep.mubr.msk.f32.mxu1 %vm217_vm0, %v2255_v43  ;;  %v2189_v42 = vld [vmem:[%s4375_s0 + $0x290] sm:$0xff]  ;;  %v2287_v43 = vld [vmem:[%s4375_s0 + $0x5a0] sm:$0xff] }
  0x70   :  { %2784 = vmatmul.mubr.msk.f32.gmra.mrb[50].mxu0 %vm217_vm0, %v2158_v44  ;;  %2931 = vmatmul.mubr.msk.f32.gmra.mrb[50].mxu1 %vm217_vm0, %v2256_v45  ;;  %v2190_v44 = vld [vmem:[%s4375_s0 + $0x298] sm:$0xff]  ;;  %v2288_v45 = vld [vmem:[%s4375_s0 + $0x5a8] sm:$0xff] }
  0x71   :  { %2786 = vmatprep.mubr.msk.f32.mxu0 %vm217_vm0, %v2159_v46  ;;  %2933 = vmatprep.mubr.msk.f32.mxu1 %vm217_vm0, %v2257_v47  ;;  %v2191_v46 = vld [vmem:[%s4375_s0 + $0x2a0] sm:$0xff]  ;;  %v2289_v47 = vld [vmem:[%s4375_s0 + $0x5b0] sm:$0xff] }
  0x74   :  { %2787 = vmatmul.mubr.msk.f32.gmra.mrb[52].mxu0 %vm217_vm0, %v2160_v48  ;;  %2934 = vmatmul.mubr.msk.f32.gmra.mrb[52].mxu1 %vm217_vm0, %v2258_v49  ;;  %v2192_v48 = vld [vmem:[%s4375_s0 + $0x2a8] sm:$0xff]  ;;  %v2290_v49 = vld [vmem:[%s4375_s0 + $0x5b8] sm:$0xff] }
  0x75   :  { %2789 = vmatprep.mubr.msk.f32.mxu0 %vm217_vm0, %v2161_v50  ;;  %2936 = vmatprep.mubr.msk.f32.mxu1 %vm217_vm0, %v2259_v51  ;;  %v2193_v50 = vld [vmem:[%s4375_s0 + $0x2b0] sm:$0xff]  ;;  %v2291_v51 = vld [vmem:[%s4375_s0 + $0x5c0] sm:$0xff] }
  0x78   :  { %2790 = vmatmul.mubr.msk.f32.gmra.mrb[54].mxu0 %vm217_vm0, %v2162_v52  ;;  %2937 = vmatmul.mubr.msk.f32.gmra.mrb[54].mxu1 %vm217_vm0, %v2260_v53  ;;  %v2194_v52 = vld [vmem:[%s4375_s0 + $0x2b8] sm:$0xff]  ;;  %v2292_v53 = vld [vmem:[%s4375_s0 + $0x5c8] sm:$0xff] }
  0x79   :  { %2792 = vmatprep.mubr.msk.f32.mxu0 %vm217_vm0, %v2163_v54  ;;  %2939 = vmatprep.mubr.msk.f32.mxu1 %vm217_vm0, %v2261_v55  ;;  %v2195_v54 = vld [vmem:[%s4375_s0 + $0x2c0] sm:$0xff]  ;;  %v2293_v55 = vld [vmem:[%s4375_s0 + $0x5d0] sm:$0xff] }
  0x7c   :  { %2793 = vmatmul.mubr.msk.f32.gmra.mrb[56].mxu0 %vm217_vm0, %v2164_v56  ;;  %2940 = vmatmul.mubr.msk.f32.gmra.mrb[56].mxu1 %vm217_vm0, %v2262_v57  ;;  %v2196_v56 = vld [vmem:[%s4375_s0 + $0x2c8] sm:$0xff]  ;;  %v2294_v57 = vld [vmem:[%s4375_s0 + $0x5d8] sm:$0xff] }
  0x7d   :  { %2795 = vmatprep.mubr.msk.f32.mxu0 %vm217_vm0, %v2165_v58  ;;  %2942 = vmatprep.mubr.msk.f32.mxu1 %vm217_vm0, %v2263_v59  ;;  %v2197_v58 = vld [vmem:[%s4375_s0 + $0x2d0] sm:$0xff]  ;;  %v2295_v59 = vld [vmem:[%s4375_s0 + $0x5e0] sm:$0xff] }
  0x80   :  { %2796 = vmatmul.mubr.msk.f32.gmra.mrb[58].mxu0 %vm217_vm0, %v2166_v60  ;;  %2943 = vmatmul.mubr.msk.f32.gmra.mrb[58].mxu1 %vm217_vm0, %v2264_v61  ;;  %v2198_v60 = vld [vmem:[%s4375_s0 + $0x2d8] sm:$0xff]  ;;  %v2296_v61 = vld [vmem:[%s4375_s0 + $0x5e8] sm:$0xff] }
  0x81   :  { %2798 = vmatprep.mubr.msk.f32.mxu0 %vm217_vm0, %v2167_v62  ;;  %2945 = vmatprep.mubr.msk.f32.mxu1 %vm217_vm0, %v2265_v63  ;;  %v2199_v62 = vld [vmem:[%s4375_s0 + $0x2e0] sm:$0xff]  ;;  %v2297_v63 = vld [vmem:[%s4375_s0 + $0x5f0] sm:$0xff] }
  0x84   :  { %2799 = vmatmul.mubr.msk.f32.gmra.mrb[60].mxu0 %vm217_vm0, %v2168_v0  ;;  %2946 = vmatmul.mubr.msk.f32.gmra.mrb[60].mxu1 %vm217_vm0, %v2266_v1  ;;  %v2200_v0 = vld [vmem:[%s4375_s0 + $0x2e8] sm:$0xff]  ;;  %v2298_v1 = vld [vmem:[%s4375_s0 + $0x5f8] sm:$0xff] }
  0x85   :  { %2801 = vmatprep.mubr.msk.f32.mxu0 %vm217_vm0, %v2169_v2  ;;  %2948 = vmatprep.mubr.msk.f32.mxu1 %vm217_vm0, %v2267_v3  ;;  %v2201_v2 = vld [vmem:[%s4375_s0 + $0x2f0] sm:$0xff]  ;;  %v2299_v3 = vld [vmem:[%s4375_s0 + $0x600] sm:$0xff] }
  0x88   :  { %2802 = vmatmul.mubr.msk.f32.gmra.mrb[62].mxu0 %vm217_vm0, %v2170_v4  ;;  %2949 = vmatmul.mubr.msk.f32.gmra.mrb[62].mxu1 %vm217_vm0, %v2268_v5  ;;  %v2202_v4 = vld [vmem:[%s4375_s0 + $0x2f8] sm:$0xff]  ;;  %v2300_v5 = vld [vmem:[%s4375_s0 + $0x608] sm:$0xff] }
  0x89   :  { %2804 = vmatprep.mubr.msk.f32.mxu0 %vm217_vm0, %v2171_v6  ;;  %2951 = vmatprep.mubr.msk.f32.mxu1 %vm217_vm0, %v2269_v7  ;;  %v2203_v6 = vld [vmem:[%s4375_s0 + $0x300] sm:$0xff]  ;;  %v2301_v7 = vld [vmem:[%s4375_s0 + $0x610] sm:$0xff] }
  0x8c   :  { %2805 = vmatmul.mubr.msk.f32.gmra.mrb[64].mxu0 %vm217_vm0, %v2172_v8  ;;  %2952 = vmatmul.mubr.msk.f32.gmra.mrb[64].mxu1 %vm217_vm0, %v2270_v9  ;;  %v2204_v8 = vld [vmem:[%s4375_s0 + $0x308] sm:$0xff]  ;;  %v2302_v9 = vld [vmem:[%s4375_s0 + $0x618] sm:$0xff] }
  0x8d   :  { %2807 = vmatprep.mubr.msk.f32.mxu0 %vm217_vm0, %v2173_v10  ;;  %2954 = vmatprep.mubr.msk.f32.mxu1 %vm217_vm0, %v2271_v11 }
  0x90   :  { %2808 = vmatmul.mubr.msk.f32.gmra.mrb[66].mxu0 %vm217_vm0, %v2174_v12  ;;  %2955 = vmatmul.mubr.msk.f32.gmra.mrb[66].mxu1 %vm217_vm0, %v2272_v13 }
  0x91   :  { %2810 = vmatprep.mubr.msk.f32.mxu0 %vm217_vm0, %v2175_v14  ;;  %2957 = vmatprep.mubr.msk.f32.mxu1 %vm217_vm0, %v2273_v15 }
  0x94   :  { %2811 = vmatmul.mubr.msk.f32.gmra.mrb[68].mxu0 %vm217_vm0, %v2176_v16  ;;  %2958 = vmatmul.mubr.msk.f32.gmra.mrb[68].mxu1 %vm217_vm0, %v2274_v17 }
  0x95   :  { %2813 = vmatprep.mubr.msk.f32.mxu0 %vm217_vm0, %v2177_v18  ;;  %2960 = vmatprep.mubr.msk.f32.mxu1 %vm217_vm0, %v2275_v19 }
  0x98   :  { %2814 = vmatmul.mubr.msk.f32.gmra.mrb[70].mxu0 %vm217_vm0, %v2178_v20  ;;  %2961 = vmatmul.mubr.msk.f32.gmra.mrb[70].mxu1 %vm217_vm0, %v2276_v21 }
  0x99   :  { %2816 = vmatprep.mubr.msk.f32.mxu0 %vm217_vm0, %v2179_v22  ;;  %2963 = vmatprep.mubr.msk.f32.mxu1 %vm217_vm0, %v2277_v23 }
  0x9c   :  { %2817 = vmatmul.mubr.msk.f32.gmra.mrb[72].mxu0 %vm217_vm0, %v2180_v24  ;;  %2964 = vmatmul.mubr.msk.f32.gmra.mrb[72].mxu1 %vm217_vm0, %v2278_v25 }
  0x9d   :  { %2819 = vmatprep.mubr.msk.f32.mxu0 %vm217_vm0, %v2181_v26  ;;  %2966 = vmatprep.mubr.msk.f32.mxu1 %vm217_vm0, %v2279_v27 }
  0xa0   :  { %2820 = vmatmul.mubr.msk.f32.gmra.mrb[74].mxu0 %vm217_vm0, %v2182_v28  ;;  %2967 = vmatmul.mubr.msk.f32.gmra.mrb[74].mxu1 %vm217_vm0, %v2280_v29 }
  0xa1   :  { %2822 = vmatprep.mubr.msk.f32.mxu0 %vm217_vm0, %v2183_v30  ;;  %2969 = vmatprep.mubr.msk.f32.mxu1 %vm217_vm0, %v2281_v31 }
  0xa4   :  { %2823 = vmatmul.mubr.msk.f32.gmra.mrb[76].mxu0 %vm217_vm0, %v2184_v32  ;;  %2970 = vmatmul.mubr.msk.f32.gmra.mrb[76].mxu1 %vm217_vm0, %v2282_v33 }
  0xa5   :  { %2825 = vmatprep.mubr.msk.f32.mxu0 %vm217_vm0, %v2185_v34  ;;  %2972 = vmatprep.mubr.msk.f32.mxu1 %vm217_vm0, %v2283_v35 }
  0xa8   :  { %2826 = vmatmul.mubr.msk.f32.gmra.mrb[78].mxu0 %vm217_vm0, %v2186_v36  ;;  %2973 = vmatmul.mubr.msk.f32.gmra.mrb[78].mxu1 %vm217_vm0, %v2284_v37 }
  0xa9   :  { %2828 = vmatprep.mubr.msk.f32.mxu0 %vm217_vm0, %v2187_v38  ;;  %2975 = vmatprep.mubr.msk.f32.mxu1 %vm217_vm0, %v2285_v39 }
  0xac   :  { %2829 = vmatmul.mubr.msk.f32.gmra.mrb[80].mxu0 %vm217_vm0, %v2188_v40  ;;  %2976 = vmatmul.mubr.msk.f32.gmra.mrb[80].mxu1 %vm217_vm0, %v2286_v41 }
  0xad   :  { %2831 = vmatprep.mubr.msk.f32.mxu0 %vm217_vm0, %v2189_v42  ;;  %2978 = vmatprep.mubr.msk.f32.mxu1 %vm217_vm0, %v2287_v43 }
  0xb0   :  { %2832 = vmatmul.mubr.msk.f32.gmra.mrb[82].mxu0 %vm217_vm0, %v2190_v44  ;;  %2979 = vmatmul.mubr.msk.f32.gmra.mrb[82].mxu1 %vm217_vm0, %v2288_v45 }
  0xb1   :  { %2834 = vmatprep.mubr.msk.f32.mxu0 %vm217_vm0, %v2191_v46  ;;  %2981 = vmatprep.mubr.msk.f32.mxu1 %vm217_vm0, %v2289_v47 }
  0xb4   :  { %2835 = vmatmul.mubr.msk.f32.gmra.mrb[84].mxu0 %vm217_vm0, %v2192_v48  ;;  %2982 = vmatmul.mubr.msk.f32.gmra.mrb[84].mxu1 %vm217_vm0, %v2290_v49 }
  0xb5   :  { %2837 = vmatprep.mubr.msk.f32.mxu0 %vm217_vm0, %v2193_v50  ;;  %2984 = vmatprep.mubr.msk.f32.mxu1 %vm217_vm0, %v2291_v51 }
  0xb8   :  { %2838 = vmatmul.mubr.msk.f32.gmra.mrb[86].mxu0 %vm217_vm0, %v2194_v52  ;;  %2985 = vmatmul.mubr.msk.f32.gmra.mrb[86].mxu1 %vm217_vm0, %v2292_v53 }
  0xb9   :  { %2840 = vmatprep.mubr.msk.f32.mxu0 %vm217_vm0, %v2195_v54  ;;  %2987 = vmatprep.mubr.msk.f32.mxu1 %vm217_vm0, %v2293_v55 }
  0xbc   :  { %2841 = vmatmul.mubr.msk.f32.gmra.mrb[88].mxu0 %vm217_vm0, %v2196_v56  ;;  %2988 = vmatmul.mubr.msk.f32.gmra.mrb[88].mxu1 %vm217_vm0, %v2294_v57 }
  0xbd   :  { %2843 = vmatprep.mubr.msk.f32.mxu0 %vm217_vm0, %v2197_v58  ;;  %2990 = vmatprep.mubr.msk.f32.mxu1 %vm217_vm0, %v2295_v59 }
  0xc0   :  { %2844 = vmatmul.mubr.msk.f32.gmra.mrb[90].mxu0 %vm217_vm0, %v2198_v60  ;;  %2991 = vmatmul.mubr.msk.f32.gmra.mrb[90].mxu1 %vm217_vm0, %v2296_v61 }
  0xc1   :  { %2846 = vmatprep.mubr.msk.f32.mxu0 %vm217_vm0, %v2199_v62  ;;  %2993 = vmatprep.mubr.msk.f32.mxu1 %vm217_vm0, %v2297_v63 }
  0xc4   :  { %2847 = vmatmul.mubr.msk.f32.gmra.mrb[92].mxu0 %vm217_vm0, %v2200_v0  ;;  %2994 = vmatmul.mubr.msk.f32.gmra.mrb[92].mxu1 %vm217_vm0, %v2298_v1 }
  0xc5   :  { %2849 = vmatprep.mubr.msk.f32.mxu0 %vm217_vm0, %v2201_v2  ;;  %2996 = vmatprep.mubr.msk.f32.mxu1 %vm217_vm0, %v2299_v3 }
  0xc8   :  { %2850 = vmatmul.mubr.msk.f32.gmra.mrb[94].mxu0 %vm217_vm0, %v2202_v4  ;;  %2997 = vmatmul.mubr.msk.f32.gmra.mrb[94].mxu1 %vm217_vm0, %v2300_v5 }
  0xc9   :  { %2852 = vmatprep.mubr.msk.f32.mxu0 %vm217_vm0, %v2203_v6  ;;  %2999 = vmatprep.mubr.msk.f32.mxu1 %vm217_vm0, %v2301_v7 }
  0xcc   :  { %2853 = vmatmul.mubr.msk.f32.gmra.mrb[96].mxu0 %vm217_vm0, %v2204_v8  ;;  %3000 = vmatmul.mubr.msk.f32.gmra.mrb[96].mxu1 %vm217_vm0, %v2302_v9 }
  0xdf   :  { %v3830_v10 = vpop.f32.mrb[0].mxu0  ;;  %v3832_v11 = vpop.f32.mrb[0].mxu1 }
  0xe0   :  { %v3834_v12 = vpop.f32.mrb[1].mxu0  ;;  %v3836_v13 = vpop.f32.mrb[1].mxu1 }
  0xe3   :  { %v3838_v14 = vpop.f32.mrb[2].mxu0  ;;  %v3840_v15 = vpop.f32.mrb[2].mxu1 }
  0xe4   :  { %v3842_v16 = vpop.f32.mrb[3].mxu0  ;;  %v3844_v17 = vpop.f32.mrb[3].mxu1 }
  0xe7   :  { %v3846_v18 = vpop.f32.mrb[4].mxu0  ;;  %v3848_v19 = vpop.f32.mrb[4].mxu1 }
  0xe8   :  { %v3850_v20 = vpop.f32.mrb[5].mxu0  ;;  %v3852_v21 = vpop.f32.mrb[5].mxu1 }
  0xeb   :  { %v3854_v22 = vpop.f32.mrb[6].mxu0  ;;  %v3856_v23 = vpop.f32.mrb[6].mxu1 }
  0xec   :  { %v3858_v24 = vpop.f32.mrb[7].mxu0  ;;  %v3860_v25 = vpop.f32.mrb[7].mxu1 }
  0xef   :  { %v3862_v26 = vpop.f32.mrb[8].mxu0  ;;  %v3864_v27 = vpop.f32.mrb[8].mxu1 }
  0xf0   :  { %v3866_v28 = vpop.f32.mrb[9].mxu0  ;;  %v3868_v29 = vpop.f32.mrb[9].mxu1 }
  0xf3   :  { %v3870_v30 = vpop.f32.mrb[10].mxu0  ;;  %v3872_v31 = vpop.f32.mrb[10].mxu1 }
  0xf4   :  { %v3874_v32 = vpop.f32.mrb[11].mxu0  ;;  %v3876_v33 = vpop.f32.mrb[11].mxu1 }
  0xf7   :  { %v3878_v34 = vpop.f32.mrb[12].mxu0  ;;  %v3880_v35 = vpop.f32.mrb[12].mxu1 }
  0xf8   :  { %v3882_v36 = vpop.f32.mrb[13].mxu0  ;;  %v3884_v37 = vpop.f32.mrb[13].mxu1 }
  0xfb   :  { %v3886_v38 = vpop.f32.mrb[14].mxu0  ;;  %v3888_v39 = vpop.f32.mrb[14].mxu1 }
  0xfc   :  { %v3890_v40 = vpop.f32.mrb[15].mxu0  ;;  %v3892_v41 = vpop.f32.mrb[15].mxu1 }
  0xff   :  { %v3894_v42 = vpop.f32.mrb[16].mxu0  ;;  %v3896_v43 = vpop.f32.mrb[16].mxu1 }
 0x100   :  { %v3898_v44 = vpop.f32.mrb[17].mxu0  ;;  %v3900_v45 = vpop.f32.mrb[17].mxu1 }
 0x103   :  { %v3902_v46 = vpop.f32.mrb[18].mxu0  ;;  %v3904_v47 = vpop.f32.mrb[18].mxu1 }
 0x104   :  { %v3906_v48 = vpop.f32.mrb[19].mxu0  ;;  %v3908_v49 = vpop.f32.mrb[19].mxu1 }
 0x107   :  { %v3910_v50 = vpop.f32.mrb[20].mxu0  ;;  %v3912_v51 = vpop.f32.mrb[20].mxu1 }
 0x108   :  { %v3914_v52 = vpop.f32.mrb[21].mxu0  ;;  %v3916_v53 = vpop.f32.mrb[21].mxu1 }
 0x10b   :  { %v3918_v54 = vpop.f32.mrb[22].mxu0  ;;  %v3920_v55 = vpop.f32.mrb[22].mxu1 }
 0x10c   :  { %4378 = vst [vmem:[#allocation2_spill] sm:$0xff] %v3918_v54  ;;  %4379 = vst [vmem:[#allocation3_spill] sm:$0xff] %v3920_v55  ;;  %v3922_v56 = vpop.f32.mrb[23].mxu0  ;;  %v3924_v57 = vpop.f32.mrb[23].mxu1 }
 0x10f   :  { %v3926_v58 = vpop.f32.mrb[24].mxu0  ;;  %v3928_v59 = vpop.f32.mrb[24].mxu1 }
 0x110   :  { %4380 = vst [vmem:[#allocation4_spill] sm:$0xff] %v3926_v58  ;;  %4381 = vst [vmem:[#allocation5_spill] sm:$0xff] %v3928_v59  ;;  %v3930_v60 = vpop.f32.mrb[25].mxu0  ;;  %v3932_v61 = vpop.f32.mrb[25].mxu1 }
 0x113   :  { %v3934_v62 = vpop.f32.mrb[26].mxu0  ;;  %v3936_v63 = vpop.f32.mrb[26].mxu1 }
 0x114   :  { %4382 = vst [vmem:[#allocation6_spill] sm:$0xff] %v3934_v62  ;;  %4383 = vst [vmem:[#allocation7_spill] sm:$0xff] %v3936_v63  ;;  %v3938_v0 = vpop.f32.mrb[27].mxu0  ;;  %v3940_v1 = vpop.f32.mrb[27].mxu1 }
 0x115   :  { %4384 = vst [vmem:[#allocation8_spill] sm:$0xff] %v3938_v0  ;;  %4385 = vst [vmem:[#allocation9_spill] sm:$0xff] %v3940_v1 }
 0x117   :  { %v3942_v2 = vpop.f32.mrb[28].mxu0  ;;  %v3944_v3 = vpop.f32.mrb[28].mxu1 }
 0x118   :  { %4386 = vst [vmem:[#allocation10_spill] sm:$0xff] %v3942_v2  ;;  %4387 = vst [vmem:[#allocation11_spill] sm:$0xff] %v3944_v3  ;;  %v3946_v4 = vpop.f32.mrb[29].mxu0  ;;  %v3948_v5 = vpop.f32.mrb[29].mxu1 }
 0x119   :  { %4388 = vst [vmem:[#allocation12_spill] sm:$0xff] %v3946_v4  ;;  %4389 = vst [vmem:[#allocation13_spill] sm:$0xff] %v3948_v5 }
 0x11b   :  { %v3950_v6 = vpop.f32.mrb[30].mxu0  ;;  %v3952_v7 = vpop.f32.mrb[30].mxu1 }
 0x11c   :  { %4390 = vst [vmem:[#allocation14_spill] sm:$0xff] %v3950_v6  ;;  %4391 = vst [vmem:[#allocation15_spill] sm:$0xff] %v3952_v7  ;;  %v3954_v8 = vpop.f32.mrb[31].mxu0  ;;  %v3956_v9 = vpop.f32.mrb[31].mxu1 }
 0x11d   :  { %4392 = vst [vmem:[#allocation16_spill] sm:$0xff] %v3954_v8  ;;  %4393 = vst [vmem:[#allocation17_spill] sm:$0xff] %v3956_v9 }
 0x11f   :  { %v3958_v63 = vpop.f32.mrb[32].mxu0  ;;  %v3960_v62 = vpop.f32.mrb[32].mxu1 }
 0x120   :  { %4394 = vst [vmem:[#allocation18_spill] sm:$0xff] %v3958_v63  ;;  %4395 = vst [vmem:[#allocation19_spill] sm:$0xff] %v3960_v62  ;;  %v3962_v59 = vpop.f32.mrb[33].mxu0  ;;  %v3964_v2 = vpop.f32.mrb[33].mxu1 }
 0x121   :  { %4396 = vst [vmem:[#allocation20_spill] sm:$0xff] %v3962_v59  ;;  %4397 = vst [vmem:[#allocation21_spill] sm:$0xff] %v3964_v2 }
 0x123   :  { %v3966_v3 = vpop.f32.mrb[34].mxu0  ;;  %v3968_v4 = vpop.f32.mrb[34].mxu1 }
 0x124   :  { %4398 = vst [vmem:[#allocation22_spill] sm:$0xff] %v3966_v3  ;;  %4399 = vst [vmem:[#allocation23_spill] sm:$0xff] %v3968_v4  ;;  %v3970_v5 = vpop.f32.mrb[35].mxu0  ;;  %v3972_v6 = vpop.f32.mrb[35].mxu1 }
 0x125   :  { %4400 = vst [vmem:[#allocation24_spill] sm:$0xff] %v3970_v5  ;;  %4401 = vst [vmem:[#allocation25_spill] sm:$0xff] %v3972_v6 }
 0x127   :  { %v3974_v7 = vpop.f32.mrb[36].mxu0  ;;  %v3976_v8 = vpop.f32.mrb[36].mxu1 }
 0x128   :  { %4402 = vst [vmem:[#allocation26_spill] sm:$0xff] %v3974_v7  ;;  %4403 = vst [vmem:[#allocation27_spill] sm:$0xff] %v3976_v8  ;;  %v3978_v9 = vpop.f32.mrb[37].mxu0  ;;  %v3980_v63 = vpop.f32.mrb[37].mxu1 }
 0x129   :  { %4404 = vst [vmem:[#allocation28_spill] sm:$0xff] %v3978_v9  ;;  %4405 = vst [vmem:[#allocation29_spill] sm:$0xff] %v3980_v63 }
 0x12b   :  { %v3982_v62 = vpop.f32.mrb[38].mxu0  ;;  %v3984_v59 = vpop.f32.mrb[38].mxu1 }
 0x12c   :  { %4406 = vst [vmem:[#allocation30_spill] sm:$0xff] %v3982_v62  ;;  %4407 = vst [vmem:[#allocation31_spill] sm:$0xff] %v3984_v59  ;;  %v3986_v2 = vpop.f32.mrb[39].mxu0  ;;  %v3988_v3 = vpop.f32.mrb[39].mxu1 }
 0x12d   :  { %4408 = vst [vmem:[#allocation32_spill] sm:$0xff] %v3986_v2  ;;  %4409 = vst [vmem:[#allocation33_spill] sm:$0xff] %v3988_v3 }
 0x12f   :  { %v3990_v4 = vpop.f32.mrb[40].mxu0  ;;  %v3992_v5 = vpop.f32.mrb[40].mxu1 }
 0x130   :  { %4410 = vst [vmem:[#allocation34_spill] sm:$0xff] %v3990_v4  ;;  %4411 = vst [vmem:[#allocation35_spill] sm:$0xff] %v3992_v5  ;;  %v3994_v6 = vpop.f32.mrb[41].mxu0  ;;  %v3996_v7 = vpop.f32.mrb[41].mxu1 }
 0x131   :  { %4412 = vst [vmem:[#allocation36_spill] sm:$0xff] %v3994_v6  ;;  %4413 = vst [vmem:[#allocation37_spill] sm:$0xff] %v3996_v7 }
 0x133   :  { %v3998_v8 = vpop.f32.mrb[42].mxu0  ;;  %v4000_v9 = vpop.f32.mrb[42].mxu1 }
 0x134   :  { %4414 = vst [vmem:[#allocation38_spill] sm:$0xff] %v3998_v8  ;;  %4415 = vst [vmem:[#allocation39_spill] sm:$0xff] %v4000_v9  ;;  %v4002_v63 = vpop.f32.mrb[43].mxu0  ;;  %v4004_v62 = vpop.f32.mrb[43].mxu1 }
 0x135   :  { %4416 = vst [vmem:[#allocation40_spill] sm:$0xff] %v4002_v63  ;;  %4417 = vst [vmem:[#allocation41_spill] sm:$0xff] %v4004_v62 }
 0x137   :  { %v4006_v59 = vpop.f32.mrb[44].mxu0  ;;  %v4008_v2 = vpop.f32.mrb[44].mxu1 }
 0x138   :  { %4418 = vst [vmem:[#allocation42_spill] sm:$0xff] %v4006_v59  ;;  %4419 = vst [vmem:[#allocation43_spill] sm:$0xff] %v4008_v2  ;;  %v4010_v3 = vpop.f32.mrb[45].mxu0  ;;  %v4012_v4 = vpop.f32.mrb[45].mxu1 }
 0x139   :  { %4420 = vst [vmem:[#allocation44_spill] sm:$0xff] %v4010_v3  ;;  %4421 = vst [vmem:[#allocation45_spill] sm:$0xff] %v4012_v4 }
 0x13b   :  { %v4014_v5 = vpop.f32.mrb[46].mxu0  ;;  %v4016_v6 = vpop.f32.mrb[46].mxu1 }
 0x13c   :  { %4422 = vst [vmem:[#allocation46_spill] sm:$0xff] %v4014_v5  ;;  %4423 = vst [vmem:[#allocation47_spill] sm:$0xff] %v4016_v6  ;;  %v4018_v7 = vpop.f32.mrb[47].mxu0  ;;  %v4020_v8 = vpop.f32.mrb[47].mxu1  ;;  %v4031_v5 = vld [vmem:[%s4376_s2] ss:$0 sm:$0xff] }
 0x13d   :  { %4424 = vst [vmem:[#allocation48_spill] sm:$0xff] %v4018_v7  ;;  %4425 = vst [vmem:[#allocation49_spill] sm:$0xff] %v4020_v8 }
 0x13f   :  { %v2782_v9 = vpop.f32.mrb[48].mxu0  ;;  %v2929_v63 = vpop.f32.mrb[48].mxu1 }
 0x140   :  { %v1851_v62 = vmax.f32 %v3834_v12, %v2782_v9  ;;  %v1900_v59 = vmax.f32 %v3836_v13, %v2929_v63  ;;  %v4024_v58 = vpop.f32.mrb[49].mxu0  ;;  %v4026_v2 = vpop.f32.mrb[49].mxu1 }
 0x141   :  { %4426 = vst [vmem:[#allocation50_spill] sm:$0xff] %v4024_v58  ;;  %4427 = vst [vmem:[#allocation51_spill] sm:$0xff] %v4026_v2 }
 0x142   :  { %v1949_v6 = vmax.f32 %v1851_v62, %v1900_v59 }
 0x143   :  { %v2785_v4 = vpop.f32.mrb[50].mxu0  ;;  %v2932_v7 = vpop.f32.mrb[50].mxu1 }
 0x144   :  { %v2005_v8 = vadd.f32 %v4031_v5, %v1949_v6  ;;  %v1853_v3 = vmax.f32 %v3842_v16, %v2785_v4  ;;  %v1902_v12 = vmax.f32 %v3844_v17, %v2932_v7  ;;  %v1122_v9 = vpop.f32.mrb[51].mxu0  ;;  %v1612_v13 = vpop.f32.mrb[51].mxu1 }
 0x145   :  { %v1852_v63 = vmax.f32 %v3830_v10, %v1122_v9  ;;  %v1901_v2 = vmax.f32 %v3832_v11, %v1612_v13 }
 0x146   :  { %v2054_v58 = vmax.f32 %v2005_v8, 0.0  ;;  %v1951_v1 = vmax.f32 %v1853_v3, %v1902_v12 }
 0x147   :  { %v1950_v0 = vmax.f32 %v1852_v63, %v1901_v2  ;;  %v2788_v55 = vpop.f32.mrb[52].mxu0  ;;  %v2935_v54 = vpop.f32.mrb[52].mxu1 }
 0x148   :  { %2103 = vst.msk [vmem:[%s4377_s3] sm:$0xff] %vm217_vm0, %v2054_v58  ;;  %v2007_v16 = vadd.f32 %v4031_v5, %v1951_v1  ;;  %v1855_v17 = vmax.f32 %v3850_v20, %v2788_v55  ;;  %v1904_v59 = vmax.f32 %v3852_v21, %v2935_v54  ;;  %v1132_v62 = vpop.f32.mrb[53].mxu0  ;;  %v1622_v10 = vpop.f32.mrb[53].mxu1 }
 0x149   :  { %v2006_v11 = vadd.f32 %v4031_v5, %v1950_v0  ;;  %v1854_v3 = vmax.f32 %v3838_v14, %v1132_v62  ;;  %v1903_v2 = vmax.f32 %v3840_v15, %v1622_v10 }
 0x14a   :  { %v2056_v4 = vmax.f32 %v2007_v16, 0.0  ;;  %v1953_v6 = vmax.f32 %v1855_v17, %v1904_v59 }
 0x14b   :  { %v2055_v7 = vmax.f32 %v2006_v11, 0.0  ;;  %v1952_v8 = vmax.f32 %v1854_v3, %v1903_v2  ;;  %v2791_v12 = vpop.f32.mrb[54].mxu0  ;;  %v2938_v58 = vpop.f32.mrb[54].mxu1 }
 0x14c   :  { %2105 = vst.msk [vmem:[%s4377_s3 + $0x10] sm:$0xff] %vm217_vm0, %v2056_v4  ;;  %v2009_v20 = vadd.f32 %v4031_v5, %v1953_v6  ;;  %v1857_v21 = vmax.f32 %v3858_v24, %v2791_v12  ;;  %v1906_v54 = vmax.f32 %v3860_v25, %v2938_v58  ;;  %v1142_v14 = vpop.f32.mrb[55].mxu0  ;;  %v1632_v55 = vpop.f32.mrb[55].mxu1 }
 0x14d   :  { %2104 = vst.msk [vmem:[%s4377_s3 + $0x8] sm:$0xff] %vm217_vm0, %v2055_v7  ;;  %v2008_v15 = vadd.f32 %v4031_v5, %v1952_v8  ;;  %v1856_v0 = vmax.f32 %v3846_v18, %v1142_v14  ;;  %v1905_v1 = vmax.f32 %v3848_v19, %v1632_v55 }
 0x14e   :  { %v2058_v9 = vmax.f32 %v2009_v20, 0.0  ;;  %v1955_v13 = vmax.f32 %v1857_v21, %v1906_v54 }
 0x14f   :  { %v2057_v63 = vmax.f32 %v2008_v15, 0.0  ;;  %v1954_v16 = vmax.f32 %v1856_v0, %v1905_v1  ;;  %v2794_v24 = vpop.f32.mrb[56].mxu0  ;;  %v2941_v17 = vpop.f32.mrb[56].mxu1 }
 0x150   :  { %2107 = vst.msk [vmem:[%s4377_s3 + $0x20] sm:$0xff] %vm217_vm0, %v2058_v9  ;;  %v2011_v25 = vadd.f32 %v4031_v5, %v1955_v13  ;;  %v1859_v59 = vmax.f32 %v3866_v28, %v2794_v24  ;;  %v1908_v62 = vmax.f32 %v3868_v29, %v2941_v17  ;;  %v1152_v18 = vpop.f32.mrb[57].mxu0  ;;  %v1642_v10 = vpop.f32.mrb[57].mxu1 }
 0x151   :  { %2106 = vst.msk [vmem:[%s4377_s3 + $0x18] sm:$0xff] %vm217_vm0, %v2057_v63  ;;  %v2010_v19 = vadd.f32 %v4031_v5, %v1954_v16  ;;  %v1858_v11 = vmax.f32 %v3854_v22, %v1152_v18  ;;  %v1907_v3 = vmax.f32 %v3856_v23, %v1642_v10 }
 0x152   :  { %v2060_v2 = vmax.f32 %v2011_v25, 0.0  ;;  %v1957_v4 = vmax.f32 %v1859_v59, %v1908_v62 }
 0x153   :  { %v2059_v6 = vmax.f32 %v2010_v19, 0.0  ;;  %v1956_v7 = vmax.f32 %v1858_v11, %v1907_v3  ;;  %v2797_v28 = vpop.f32.mrb[58].mxu0  ;;  %v2944_v8 = vpop.f32.mrb[58].mxu1 }
 0x154   :  { %2109 = vst.msk [vmem:[%s4377_s3 + $0x30] sm:$0xff] %vm217_vm0, %v2060_v2  ;;  %v2013_v29 = vadd.f32 %v4031_v5, %v1957_v4  ;;  %v1861_v12 = vmax.f32 %v3874_v32, %v2797_v28  ;;  %v1910_v58 = vmax.f32 %v3876_v33, %v2944_v8  ;;  %v1162_v22 = vpop.f32.mrb[59].mxu0  ;;  %v1652_v20 = vpop.f32.mrb[59].mxu1 }
 0x155   :  { %2108 = vst.msk [vmem:[%s4377_s3 + $0x28] sm:$0xff] %vm217_vm0, %v2059_v6  ;;  %v2012_v23 = vadd.f32 %v4031_v5, %v1956_v7  ;;  %v1860_v21 = vmax.f32 %v3862_v26, %v1162_v22  ;;  %v1909_v54 = vmax.f32 %v3864_v27, %v1652_v20 }
 0x156   :  { %v2062_v14 = vmax.f32 %v2013_v29, 0.0  ;;  %v1959_v55 = vmax.f32 %v1861_v12, %v1910_v58 }
 0x157   :  { %v2061_v15 = vmax.f32 %v2012_v23, 0.0  ;;  %v1958_v0 = vmax.f32 %v1860_v21, %v1909_v54  ;;  %v2800_v32 = vpop.f32.mrb[60].mxu0  ;;  %v2947_v1 = vpop.f32.mrb[60].mxu1 }
 0x158   :  { %2111 = vst.msk [vmem:[%s4377_s3 + $0x40] sm:$0xff] %vm217_vm0, %v2062_v14  ;;  %v2015_v33 = vadd.f32 %v4031_v5, %v1959_v55  ;;  %v1863_v9 = vmax.f32 %v3882_v36, %v2800_v32  ;;  %v1912_v13 = vmax.f32 %v3884_v37, %v2947_v1  ;;  %v1172_v26 = vpop.f32.mrb[61].mxu0  ;;  %v1662_v63 = vpop.f32.mrb[61].mxu1 }
 0x159   :  { %2110 = vst.msk [vmem:[%s4377_s3 + $0x38] sm:$0xff] %vm217_vm0, %v2061_v15  ;;  %v2014_v27 = vadd.f32 %v4031_v5, %v1958_v0  ;;  %v1862_v16 = vmax.f32 %v3870_v30, %v1172_v26  ;;  %v1911_v24 = vmax.f32 %v3872_v31, %v1662_v63 }
 0x15a   :  { %v2064_v17 = vmax.f32 %v2015_v33, 0.0  ;;  %v1961_v25 = vmax.f32 %v1863_v9, %v1912_v13 }
 0x15b   :  { %v2063_v59 = vmax.f32 %v2014_v27, 0.0  ;;  %v1960_v62 = vmax.f32 %v1862_v16, %v1911_v24  ;;  %v2803_v36 = vpop.f32.mrb[62].mxu0  ;;  %v2950_v18 = vpop.f32.mrb[62].mxu1 }
 0x15c   :  { %2113 = vst.msk [vmem:[%s4377_s3 + $0x50] sm:$0xff] %vm217_vm0, %v2064_v17  ;;  %v2017_v37 = vadd.f32 %v4031_v5, %v1961_v25  ;;  %v1865_v10 = vmax.f32 %v3890_v40, %v2803_v36  ;;  %v1914_v19 = vmax.f32 %v3892_v41, %v2950_v18  ;;  %v1182_v30 = vpop.f32.mrb[63].mxu0  ;;  %v1672_v11 = vpop.f32.mrb[63].mxu1 }
 0x15d   :  { %2112 = vst.msk [vmem:[%s4377_s3 + $0x48] sm:$0xff] %vm217_vm0, %v2063_v59  ;;  %v2016_v31 = vadd.f32 %v4031_v5, %v1960_v62  ;;  %v1864_v3 = vmax.f32 %v3878_v34, %v1182_v30  ;;  %v1913_v2 = vmax.f32 %v3880_v35, %v1672_v11 }
 0x15e   :  { %v2066_v4 = vmax.f32 %v2017_v37, 0.0  ;;  %v1963_v6 = vmax.f32 %v1865_v10, %v1914_v19 }
 0x15f   :  { %v2065_v7 = vmax.f32 %v2016_v31, 0.0  ;;  %v1962_v28 = vmax.f32 %v1864_v3, %v1913_v2  ;;  %v2806_v40 = vpop.f32.mrb[64].mxu0  ;;  %v2953_v8 = vpop.f32.mrb[64].mxu1 }
 0x160   :  { %2115 = vst.msk [vmem:[%s4377_s3 + $0x60] sm:$0xff] %vm217_vm0, %v2066_v4  ;;  %v2019_v41 = vadd.f32 %v4031_v5, %v1963_v6  ;;  %v1867_v29 = vmax.f32 %v3898_v44, %v2806_v40  ;;  %v1916_v12 = vmax.f32 %v3900_v45, %v2953_v8  ;;  %v1192_v34 = vpop.f32.mrb[65].mxu0  ;;  %v1682_v58 = vpop.f32.mrb[65].mxu1 }
 0x161   :  { %2114 = vst.msk [vmem:[%s4377_s3 + $0x58] sm:$0xff] %vm217_vm0, %v2065_v7  ;;  %v2018_v35 = vadd.f32 %v4031_v5, %v1962_v28  ;;  %v1866_v22 = vmax.f32 %v3886_v38, %v1192_v34  ;;  %v1915_v20 = vmax.f32 %v3888_v39, %v1682_v58  ;;  %v4429_v34 = vld [vmem:[#allocation3_spill] sm:$0xff] }
 0x162   :  { %v2068_v23 = vmax.f32 %v2019_v41, 0.0  ;;  %v1965_v21 = vmax.f32 %v1867_v29, %v1916_v12  ;;  %v4428_v29 = vld [vmem:[#allocation2_spill] sm:$0xff] }
 0x163   :  { %v2067_v54 = vmax.f32 %v2018_v35, 0.0  ;;  %v1964_v14 = vmax.f32 %v1866_v22, %v1915_v20  ;;  %v2809_v44 = vpop.f32.mrb[66].mxu0  ;;  %v2956_v55 = vpop.f32.mrb[66].mxu1 }
 0x164   :  { %2117 = vst.msk [vmem:[%s4377_s3 + $0x70] sm:$0xff] %vm217_vm0, %v2068_v23  ;;  %v2021_v45 = vadd.f32 %v4031_v5, %v1965_v21  ;;  %v1869_v15 = vmax.f32 %v3906_v48, %v2809_v44  ;;  %v1918_v0 = vmax.f32 %v3908_v49, %v2956_v55  ;;  %v1202_v38 = vpop.f32.mrb[67].mxu0  ;;  %v1692_v32 = vpop.f32.mrb[67].mxu1  ;;  %v4431_v44 = vld [vmem:[#allocation9_spill] sm:$0xff] }
 0x165   :  { %2116 = vst.msk [vmem:[%s4377_s3 + $0x68] sm:$0xff] %vm217_vm0, %v2067_v54  ;;  %v2020_v39 = vadd.f32 %v4031_v5, %v1964_v14  ;;  %v1868_v1 = vmax.f32 %v3894_v42, %v1202_v38  ;;  %v1917_v33 = vmax.f32 %v3896_v43, %v1692_v32  ;;  %v4430_v54 = vld [vmem:[#allocation8_spill] sm:$0xff] }
 0x166   :  { %v2070_v9 = vmax.f32 %v2021_v45, 0.0  ;;  %v1967_v13 = vmax.f32 %v1869_v15, %v1918_v0  ;;  %v4432_v38 = vld [vmem:[#allocation4_spill] sm:$0xff] }
 0x167   :  { %v2069_v26 = vmax.f32 %v2020_v39, 0.0  ;;  %v1966_v63 = vmax.f32 %v1868_v1, %v1917_v33  ;;  %v2812_v48 = vpop.f32.mrb[68].mxu0  ;;  %v2959_v27 = vpop.f32.mrb[68].mxu1  ;;  %v4433_v39 = vld [vmem:[#allocation5_spill] sm:$0xff] }
 0x168   :  { %2119 = vst.msk [vmem:[%s4377_s3 + $0x80] sm:$0xff] %vm217_vm0, %v2070_v9  ;;  %v2023_v49 = vadd.f32 %v4031_v5, %v1967_v13  ;;  %v1871_v16 = vmax.f32 %v3914_v52, %v2812_v48  ;;  %v1920_v24 = vmax.f32 %v3916_v53, %v2959_v27  ;;  %v1212_v42 = vpop.f32.mrb[69].mxu0  ;;  %v1702_v17 = vpop.f32.mrb[69].mxu1 }
 0x169   :  { %2118 = vst.msk [vmem:[%s4377_s3 + $0x78] sm:$0xff] %vm217_vm0, %v2069_v26  ;;  %v2022_v43 = vadd.f32 %v4031_v5, %v1966_v63  ;;  %v1870_v25 = vmax.f32 %v3902_v46, %v1212_v42  ;;  %v1919_v59 = vmax.f32 %v3904_v47, %v1702_v17 }
 0x16a   :  { %v2072_v62 = vmax.f32 %v2023_v49, 0.0  ;;  %v1969_v36 = vmax.f32 %v1871_v16, %v1920_v24  ;;  %v4434_v49 = vld [vmem:[#allocation12_spill] sm:$0xff]  ;;  %v4435_v24 = vld [vmem:[#allocation13_spill] sm:$0xff] }
 0x16b   :  { %v2071_v18 = vmax.f32 %v2022_v43, 0.0  ;;  %v1968_v37 = vmax.f32 %v1870_v25, %v1919_v59  ;;  %v2815_v52 = vpop.f32.mrb[70].mxu0  ;;  %v2962_v10 = vpop.f32.mrb[70].mxu1  ;;  %v4436_v59 = vld [vmem:[#allocation6_spill] sm:$0xff] }
 0x16c   :  { %2121 = vst.msk [vmem:[%s4377_s3 + $0x90] sm:$0xff] %vm217_vm0, %v2072_v62  ;;  %v2025_v53 = vadd.f32 %v4031_v5, %v1969_v36  ;;  %v1873_v19 = vmax.f32 %v3922_v56, %v2815_v52  ;;  %v1922_v30 = vmax.f32 %v3924_v57, %v2962_v10  ;;  %v1222_v46 = vpop.f32.mrb[71].mxu0  ;;  %v1712_v11 = vpop.f32.mrb[71].mxu1  ;;  %v4437_v36 = vld [vmem:[#allocation7_spill] sm:$0xff] }
 0x16d   :  { %2120 = vst.msk [vmem:[%s4377_s3 + $0x88] sm:$0xff] %vm217_vm0, %v2071_v18  ;;  %v2024_v47 = vadd.f32 %v4031_v5, %v1968_v37  ;;  %v1872_v31 = vmax.f32 %v3910_v50, %v1222_v46  ;;  %v1921_v3 = vmax.f32 %v3912_v51, %v1712_v11  ;;  %v4438_v11 = vld [vmem:[#allocation16_spill] sm:$0xff] }
 0x16e   :  { %v2074_v2 = vmax.f32 %v2025_v53, 0.0  ;;  %v1971_v4 = vmax.f32 %v1873_v19, %v1922_v30 }
 0x16f   :  { %v2073_v6 = vmax.f32 %v2024_v47, 0.0  ;;  %v1970_v7 = vmax.f32 %v1872_v31, %v1921_v3  ;;  %v2818_v56 = vpop.f32.mrb[72].mxu0  ;;  %v2965_v28 = vpop.f32.mrb[72].mxu1  ;;  %v4439_v31 = vld [vmem:[#allocation17_spill] sm:$0xff] }
 0x170   :  { %2123 = vst.msk [vmem:[%s4377_s3 + $0xa0] sm:$0xff] %vm217_vm0, %v2074_v2  ;;  %v2027_v57 = vadd.f32 %v4031_v5, %v1971_v4  ;;  %v1875_v40 = vmax.f32 %v3930_v60, %v2818_v56  ;;  %v1924_v8 = vmax.f32 %v3932_v61, %v2965_v28  ;;  %v1232_v50 = vpop.f32.mrb[73].mxu0  ;;  %v1722_v41 = vpop.f32.mrb[73].mxu1  ;;  %v4441_v28 = vld [vmem:[#allocation11_spill] sm:$0xff] }
 0x171   :  { %2122 = vst.msk [vmem:[%s4377_s3 + $0x98] sm:$0xff] %vm217_vm0, %v2073_v6  ;;  %v2026_v51 = vadd.f32 %v4031_v5, %v1970_v7  ;;  %v1874_v12 = vmax.f32 %v4428_v29, %v1232_v50  ;;  %v1923_v58 = vmax.f32 %v4429_v34, %v1722_v41  ;;  %v4440_v7 = vld [vmem:[#allocation10_spill] sm:$0xff]  ;;  %v4442_v34 = vld [vmem:[#allocation20_spill] sm:$0xff] }
 0x172   :  { %v2076_v35 = vmax.f32 %v2027_v57, 0.0  ;;  %v1973_v22 = vmax.f32 %v1875_v40, %v1924_v8 }
 0x173   :  { %v2075_v20 = vmax.f32 %v2026_v51, 0.0  ;;  %v1972_v23 = vmax.f32 %v1874_v12, %v1923_v58  ;;  %v2821_v60 = vpop.f32.mrb[74].mxu0  ;;  %v2968_v21 = vpop.f32.mrb[74].mxu1 }
 0x174   :  { %2125 = vst.msk [vmem:[%s4377_s3 + $0xb0] sm:$0xff] %vm217_vm0, %v2076_v35  ;;  %v2029_v61 = vadd.f32 %v4031_v5, %v1973_v22  ;;  %v1877_v14 = vmax.f32 %v4430_v54, %v2821_v60  ;;  %v1926_v55 = vmax.f32 %v4431_v44, %v2968_v21  ;;  %v1242_v45 = vpop.f32.mrb[75].mxu0  ;;  %v1732_v15 = vpop.f32.mrb[75].mxu1  ;;  %v4443_v35 = vld [vmem:[#allocation21_spill] sm:$0xff]  ;;  %v4444_v21 = vld [vmem:[#allocation14_spill] sm:$0xff]  ;;  %v4445_v54 = vld [vmem:[#allocation15_spill] sm:$0xff] }
 0x175   :  { %2124 = vst.msk [vmem:[%s4377_s3 + $0xa8] sm:$0xff] %vm217_vm0, %v2075_v20  ;;  %v2028_v0 = vadd.f32 %v4031_v5, %v1972_v23  ;;  %v1876_v32 = vmax.f32 %v4432_v38, %v1242_v45  ;;  %v1925_v1 = vmax.f32 %v4433_v39, %v1732_v15  ;;  %v4446_v39 = vld [vmem:[#allocation24_spill] sm:$0xff] }
 0x176   :  { %v2078_v33 = vmax.f32 %v2029_v61, 0.0  ;;  %v1975_v9 = vmax.f32 %v1877_v14, %v1926_v55 }
 0x177   :  { %v2077_v13 = vmax.f32 %v2028_v0, 0.0  ;;  %v1974_v26 = vmax.f32 %v1876_v32, %v1925_v1  ;;  %v2824_v63 = vpop.f32.mrb[76].mxu0  ;;  %v2971_v48 = vpop.f32.mrb[76].mxu1 }
 0x178   :  { %2127 = vst.msk [vmem:[%s4377_s3 + $0xc0] sm:$0xff] %vm217_vm0, %v2078_v33  ;;  %v2031_v27 = vadd.f32 %v4031_v5, %v1975_v9  ;;  %v1879_v16 = vmax.f32 %v4434_v49, %v2824_v63  ;;  %v1928_v42 = vmax.f32 %v4435_v24, %v2971_v48  ;;  %v1252_v17 = vpop.f32.mrb[77].mxu0  ;;  %v1742_v43 = vpop.f32.mrb[77].mxu1  ;;  %v4447_v33 = vld [vmem:[#allocation25_spill] sm:$0xff]  ;;  %v4448_v48 = vld [vmem:[#allocation18_spill] sm:$0xff]  ;;  %v4449_v49 = vld [vmem:[#allocation19_spill] sm:$0xff] }
 0x179   :  { %2126 = vst.msk [vmem:[%s4377_s3 + $0xb8] sm:$0xff] %vm217_vm0, %v2077_v13  ;;  %v2030_v25 = vadd.f32 %v4031_v5, %v1974_v26  ;;  %v1878_v62 = vmax.f32 %v4436_v59, %v1252_v17  ;;  %v1927_v18 = vmax.f32 %v4437_v36, %v1742_v43  ;;  %v4450_v36 = vld [vmem:[#allocation28_spill] sm:$0xff] }
 0x17a   :  { %v2080_v37 = vmax.f32 %v2031_v27, 0.0  ;;  %v1977_v52 = vmax.f32 %v1879_v16, %v1928_v42 }
 0x17b   :  { %v2079_v10 = vmax.f32 %v2030_v25, 0.0  ;;  %v1976_v53 = vmax.f32 %v1878_v62, %v1927_v18  ;;  %v2827_v19 = vpop.f32.mrb[78].mxu0  ;;  %v2974_v30 = vpop.f32.mrb[78].mxu1 }
 0x17c   :  { %2129 = vst.msk [vmem:[%s4377_s3 + $0xd0] sm:$0xff] %vm217_vm0, %v2080_v37  ;;  %v2033_v46 = vadd.f32 %v4031_v5, %v1977_v52  ;;  %v1881_v47 = vmax.f32 %v4438_v11, %v2827_v19  ;;  %v1930_v3 = vmax.f32 %v4439_v31, %v2974_v30  ;;  %v1262_v2 = vpop.f32.mrb[79].mxu0  ;;  %v1752_v4 = vpop.f32.mrb[79].mxu1  ;;  %v4451_v37 = vld [vmem:[#allocation29_spill] sm:$0xff]  ;;  %v4452_v30 = vld [vmem:[#allocation22_spill] sm:$0xff]  ;;  %v4453_v11 = vld [vmem:[#allocation23_spill] sm:$0xff] }
 0x17d   :  { %2128 = vst.msk [vmem:[%s4377_s3 + $0xc8] sm:$0xff] %vm217_vm0, %v2079_v10  ;;  %v2032_v6 = vadd.f32 %v4031_v5, %v1976_v53  ;;  %v1880_v56 = vmax.f32 %v4440_v7, %v1262_v2  ;;  %v1929_v57 = vmax.f32 %v4441_v28, %v1752_v4  ;;  %v4454_v28 = vld [vmem:[#allocation32_spill] sm:$0xff] }
 0x17e   :  { %v2082_v40 = vmax.f32 %v2033_v46, 0.0  ;;  %v1979_v8 = vmax.f32 %v1881_v47, %v1930_v3 }
 0x17f   :  { %v2081_v50 = vmax.f32 %v2032_v6, 0.0  ;;  %v1978_v41 = vmax.f32 %v1880_v56, %v1929_v57  ;;  %v2830_v51 = vpop.f32.mrb[80].mxu0  ;;  %v2977_v29 = vpop.f32.mrb[80].mxu1 }
 0x180   :  { %2131 = vst.msk [vmem:[%s4377_s3 + $0xe0] sm:$0xff] %vm217_vm0, %v2082_v40  ;;  %v2035_v12 = vadd.f32 %v4031_v5, %v1979_v8  ;;  %v1883_v58 = vmax.f32 %v4442_v34, %v2830_v51  ;;  %v1932_v22 = vmax.f32 %v4443_v35, %v2977_v29  ;;  %v1272_v20 = vpop.f32.mrb[81].mxu0  ;;  %v1762_v23 = vpop.f32.mrb[81].mxu1  ;;  %v4455_v40 = vld [vmem:[#allocation33_spill] sm:$0xff]  ;;  %v4456_v29 = vld [vmem:[#allocation26_spill] sm:$0xff]  ;;  %v4457_v34 = vld [vmem:[#allocation27_spill] sm:$0xff] }
 0x181   :  { %2130 = vst.msk [vmem:[%s4377_s3 + $0xd8] sm:$0xff] %vm217_vm0, %v2081_v50  ;;  %v2034_v60 = vadd.f32 %v4031_v5, %v1978_v41  ;;  %v1882_v61 = vmax.f32 %v4444_v21, %v1272_v20  ;;  %v1931_v14 = vmax.f32 %v4445_v54, %v1762_v23  ;;  %v4458_v54 = vld [vmem:[#allocation36_spill] sm:$0xff] }
 0x182   :  { %v2084_v44 = vmax.f32 %v2035_v12, 0.0  ;;  %v1981_v55 = vmax.f32 %v1883_v58, %v1932_v22 }
 0x183   :  { %v2083_v45 = vmax.f32 %v2034_v60, 0.0  ;;  %v1980_v15 = vmax.f32 %v1882_v61, %v1931_v14  ;;  %v2833_v0 = vpop.f32.mrb[82].mxu0  ;;  %v2980_v38 = vpop.f32.mrb[82].mxu1 }
 0x184   :  { %2133 = vst.msk [vmem:[%s4377_s3 + $0xf0] sm:$0xff] %vm217_vm0, %v2084_v44  ;;  %v2037_v32 = vadd.f32 %v4031_v5, %v1981_v55  ;;  %v1885_v1 = vmax.f32 %v4446_v39, %v2833_v0  ;;  %v1934_v9 = vmax.f32 %v4447_v33, %v2980_v38  ;;  %v1282_v13 = vpop.f32.mrb[83].mxu0  ;;  %v1772_v26 = vpop.f32.mrb[83].mxu1  ;;  %v4459_v44 = vld [vmem:[#allocation37_spill] sm:$0xff]  ;;  %v4460_v38 = vld [vmem:[#allocation30_spill] sm:$0xff]  ;;  %v4461_v39 = vld [vmem:[#allocation31_spill] sm:$0xff] }
 0x185   :  { %2132 = vst.msk [vmem:[%s4377_s3 + $0xe8] sm:$0xff] %vm217_vm0, %v2083_v45  ;;  %v2036_v63 = vadd.f32 %v4031_v5, %v1980_v15  ;;  %v1884_v27 = vmax.f32 %v4448_v48, %v1282_v13  ;;  %v1933_v16 = vmax.f32 %v4449_v49, %v1772_v26  ;;  %v4462_v49 = vld [vmem:[#allocation40_spill] sm:$0xff] }
 0x186   :  { %v2086_v24 = vmax.f32 %v2037_v32, 0.0  ;;  %v1983_v42 = vmax.f32 %v1885_v1, %v1934_v9 }
 0x187   :  { %v2085_v17 = vmax.f32 %v2036_v63, 0.0  ;;  %v1982_v43 = vmax.f32 %v1884_v27, %v1933_v16  ;;  %v2836_v25 = vpop.f32.mrb[84].mxu0  ;;  %v2983_v59 = vpop.f32.mrb[84].mxu1 }
 0x188   :  { %2135 = vst.msk [vmem:[%s4377_s3 + $0x100] sm:$0xff] %vm217_vm0, %v2086_v24  ;;  %v2039_v62 = vadd.f32 %v4031_v5, %v1983_v42  ;;  %v1887_v18 = vmax.f32 %v4450_v36, %v2836_v25  ;;  %v1936_v52 = vmax.f32 %v4451_v37, %v2983_v59  ;;  %v1292_v10 = vpop.f32.mrb[85].mxu0  ;;  %v1782_v53 = vpop.f32.mrb[85].mxu1  ;;  %v4463_v24 = vld [vmem:[#allocation41_spill] sm:$0xff]  ;;  %v4464_v59 = vld [vmem:[#allocation34_spill] sm:$0xff]  ;;  %v4465_v36 = vld [vmem:[#allocation35_spill] sm:$0xff] }
 0x189   :  { %2134 = vst.msk [vmem:[%s4377_s3 + $0xf8] sm:$0xff] %vm217_vm0, %v2085_v17  ;;  %v2038_v19 = vadd.f32 %v4031_v5, %v1982_v43  ;;  %v1886_v46 = vmax.f32 %v4452_v30, %v1292_v10  ;;  %v1935_v47 = vmax.f32 %v4453_v11, %v1782_v53  ;;  %v4466_v11 = vld [vmem:[#allocation44_spill] sm:$0xff] }
 0x18a   :  { %v2088_v31 = vmax.f32 %v2039_v62, 0.0  ;;  %v1985_v3 = vmax.f32 %v1887_v18, %v1936_v52 }
 0x18b   :  { %v2087_v2 = vmax.f32 %v2038_v19, 0.0  ;;  %v1984_v4 = vmax.f32 %v1886_v46, %v1935_v47  ;;  %v2839_v6 = vpop.f32.mrb[86].mxu0  ;;  %v2986_v7 = vpop.f32.mrb[86].mxu1 }
 0x18c   :  { %2137 = vst.msk [vmem:[%s4377_s3 + $0x110] sm:$0xff] %vm217_vm0, %v2088_v31  ;;  %v2041_v56 = vadd.f32 %v4031_v5, %v1985_v3  ;;  %v1889_v57 = vmax.f32 %v4454_v28, %v2839_v6  ;;  %v1938_v8 = vmax.f32 %v4455_v40, %v2986_v7  ;;  %v1302_v50 = vpop.f32.mrb[87].mxu0  ;;  %v1792_v41 = vpop.f32.mrb[87].mxu1  ;;  %v4467_v31 = vld [vmem:[#allocation45_spill] sm:$0xff]  ;;  %v4468_v7 = vld [vmem:[#allocation38_spill] sm:$0xff]  ;;  %v4469_v28 = vld [vmem:[#allocation39_spill] sm:$0xff] }
 0x18d   :  { %2136 = vst.msk [vmem:[%s4377_s3 + $0x108] sm:$0xff] %vm217_vm0, %v2087_v2  ;;  %v2040_v51 = vadd.f32 %v4031_v5, %v1984_v4  ;;  %v1888_v12 = vmax.f32 %v4456_v29, %v1302_v50  ;;  %v1937_v58 = vmax.f32 %v4457_v34, %v1792_v41  ;;  %v4470_v34 = vld [vmem:[#allocation48_spill] sm:$0xff] }
 0x18e   :  { %v2090_v35 = vmax.f32 %v2041_v56, 0.0  ;;  %v1987_v22 = vmax.f32 %v1889_v57, %v1938_v8 }
 0x18f   :  { %v2089_v20 = vmax.f32 %v2040_v51, 0.0  ;;  %v1986_v23 = vmax.f32 %v1888_v12, %v1937_v58  ;;  %v2842_v60 = vpop.f32.mrb[88].mxu0  ;;  %v2989_v21 = vpop.f32.mrb[88].mxu1 }
 0x190   :  { %2139 = vst.msk [vmem:[%s4377_s3 + $0x120] sm:$0xff] %vm217_vm0, %v2090_v35  ;;  %v2043_v61 = vadd.f32 %v4031_v5, %v1987_v22  ;;  %v1891_v14 = vmax.f32 %v4458_v54, %v2842_v60  ;;  %v1940_v55 = vmax.f32 %v4459_v44, %v2989_v21  ;;  %v1312_v45 = vpop.f32.mrb[89].mxu0  ;;  %v1802_v15 = vpop.f32.mrb[89].mxu1  ;;  %v4471_v35 = vld [vmem:[#allocation49_spill] sm:$0xff]  ;;  %v4472_v21 = vld [vmem:[#allocation42_spill] sm:$0xff]  ;;  %v4473_v54 = vld [vmem:[#allocation43_spill] sm:$0xff] }
 0x191   :  { %2138 = vst.msk [vmem:[%s4377_s3 + $0x118] sm:$0xff] %vm217_vm0, %v2089_v20  ;;  %v2042_v0 = vadd.f32 %v4031_v5, %v1986_v23  ;;  %v1890_v32 = vmax.f32 %v4460_v38, %v1312_v45  ;;  %v1939_v1 = vmax.f32 %v4461_v39, %v1802_v15  ;;  %v4474_v39 = vld [vmem:[#allocation50_spill] sm:$0xff] }
 0x192   :  { %v2092_v33 = vmax.f32 %v2043_v61, 0.0  ;;  %v1989_v9 = vmax.f32 %v1891_v14, %v1940_v55 }
 0x193   :  { %v2091_v13 = vmax.f32 %v2042_v0, 0.0  ;;  %v1988_v26 = vmax.f32 %v1890_v32, %v1939_v1  ;;  %v2845_v63 = vpop.f32.mrb[90].mxu0  ;;  %v2992_v48 = vpop.f32.mrb[90].mxu1 }
 0x194   :  { %2141 = vst.msk [vmem:[%s4377_s3 + $0x130] sm:$0xff] %vm217_vm0, %v2092_v33  ;;  %v2045_v27 = vadd.f32 %v4031_v5, %v1989_v9  ;;  %v1893_v16 = vmax.f32 %v4462_v49, %v2845_v63  ;;  %v1942_v42 = vmax.f32 %v4463_v24, %v2992_v48  ;;  %v1322_v17 = vpop.f32.mrb[91].mxu0  ;;  %v1812_v43 = vpop.f32.mrb[91].mxu1  ;;  %v4475_v33 = vld [vmem:[#allocation51_spill] sm:$0xff]  ;;  %v4476_v48 = vld [vmem:[#allocation46_spill] sm:$0xff] }
 0x195   :  { %2140 = vst.msk [vmem:[%s4377_s3 + $0x128] sm:$0xff] %vm217_vm0, %v2091_v13  ;;  %v2044_v25 = vadd.f32 %v4031_v5, %v1988_v26  ;;  %v1892_v62 = vmax.f32 %v4464_v59, %v1322_v17  ;;  %v1941_v18 = vmax.f32 %v4465_v36, %v1812_v43  ;;  %v4477_v49 = vld [vmem:[#allocation47_spill] sm:$0xff] }
 0x196   :  { %v2094_v37 = vmax.f32 %v2045_v27, 0.0  ;;  %v1991_v52 = vmax.f32 %v1893_v16, %v1942_v42 }
 0x197   :  { %v2093_v10 = vmax.f32 %v2044_v25, 0.0  ;;  %v1990_v53 = vmax.f32 %v1892_v62, %v1941_v18  ;;  %v2848_v19 = vpop.f32.mrb[92].mxu0  ;;  %v2995_v30 = vpop.f32.mrb[92].mxu1 }
 0x198   :  { %2143 = vst.msk [vmem:[%s4377_s3 + $0x140] sm:$0xff] %vm217_vm0, %v2094_v37  ;;  %v2047_v46 = vadd.f32 %v4031_v5, %v1991_v52  ;;  %v1895_v47 = vmax.f32 %v4466_v11, %v2848_v19  ;;  %v1944_v3 = vmax.f32 %v4467_v31, %v2995_v30  ;;  %v1332_v2 = vpop.f32.mrb[93].mxu0  ;;  %v1822_v4 = vpop.f32.mrb[93].mxu1 }
 0x199   :  { %2142 = vst.msk [vmem:[%s4377_s3 + $0x138] sm:$0xff] %vm217_vm0, %v2093_v10  ;;  %v2046_v6 = vadd.f32 %v4031_v5, %v1990_v53  ;;  %v1894_v56 = vmax.f32 %v4468_v7, %v1332_v2  ;;  %v1943_v57 = vmax.f32 %v4469_v28, %v1822_v4 }
 0x19a   :  { %v2096_v40 = vmax.f32 %v2047_v46, 0.0  ;;  %v1993_v8 = vmax.f32 %v1895_v47, %v1944_v3 }
 0x19b   :  { %v2095_v50 = vmax.f32 %v2046_v6, 0.0  ;;  %v1992_v41 = vmax.f32 %v1894_v56, %v1943_v57  ;;  %v2851_v51 = vpop.f32.mrb[94].mxu0  ;;  %v2998_v29 = vpop.f32.mrb[94].mxu1 }
 0x19c   :  { %2145 = vst.msk [vmem:[%s4377_s3 + $0x150] sm:$0xff] %vm217_vm0, %v2096_v40  ;;  %v2049_v12 = vadd.f32 %v4031_v5, %v1993_v8  ;;  %v1897_v58 = vmax.f32 %v4470_v34, %v2851_v51  ;;  %v1946_v22 = vmax.f32 %v4471_v35, %v2998_v29  ;;  %v1342_v20 = vpop.f32.mrb[95].mxu0  ;;  %v1832_v23 = vpop.f32.mrb[95].mxu1 }
 0x19d   :  { %2144 = vst.msk [vmem:[%s4377_s3 + $0x148] sm:$0xff] %vm217_vm0, %v2095_v50  ;;  %v2048_v60 = vadd.f32 %v4031_v5, %v1992_v41  ;;  %v1896_v61 = vmax.f32 %v4472_v21, %v1342_v20  ;;  %v1945_v14 = vmax.f32 %v4473_v54, %v1832_v23 }
 0x19e   :  { %v2098_v44 = vmax.f32 %v2049_v12, 0.0  ;;  %v1995_v55 = vmax.f32 %v1897_v58, %v1946_v22 }
 0x19f   :  { %v2097_v45 = vmax.f32 %v2048_v60, 0.0  ;;  %v1994_v15 = vmax.f32 %v1896_v61, %v1945_v14  ;;  %v2854_v0 = vpop.f32.mrb[96].mxu0  ;;  %v3001_v38 = vpop.f32.mrb[96].mxu1 }
 0x1a0   :  { %2147 = vst.msk [vmem:[%s4377_s3 + $0x160] sm:$0xff] %vm217_vm0, %v2098_v44  ;;  %v2051_v32 = vadd.f32 %v4031_v5, %v1995_v55  ;;  %v1899_v1 = vmax.f32 %v4474_v39, %v2854_v0  ;;  %v1948_v9 = vmax.f32 %v4475_v33, %v3001_v38  ;;  %v1352_v13 = vpop.f32.mrb[97].mxu0  ;;  %v1842_v26 = vpop.f32.mrb[97].mxu1 }
 0x1a1   :  { %2146 = vst.msk [vmem:[%s4377_s3 + $0x158] sm:$0xff] %vm217_vm0, %v2097_v45  ;;  %v2050_v63 = vadd.f32 %v4031_v5, %v1994_v15  ;;  %v1898_v27 = vmax.f32 %v4476_v48, %v1352_v13  ;;  %v1947_v16 = vmax.f32 %v4477_v49, %v1842_v26 }
 0x1a2   :  { %v2100_v24 = vmax.f32 %v2051_v32, 0.0  ;;  %v1997_v42 = vmax.f32 %v1899_v1, %v1948_v9 }
 0x1a3   :  { %v2099_v17 = vmax.f32 %v2050_v63, 0.0  ;;  %v1996_v43 = vmax.f32 %v1898_v27, %v1947_v16 }
 0x1a4   :  { %2149 = vst.msk [vmem:[%s4377_s3 + $0x170] sm:$0xff] %vm217_vm0, %v2100_v24  ;;  %v2053_v25 = vadd.f32 %v4031_v5, %v1997_v42 }
 0x1a5   :  { %2148 = vst.msk [vmem:[%s4377_s3 + $0x168] sm:$0xff] %vm217_vm0, %v2099_v17  ;;  %v2052_v59 = vadd.f32 %v4031_v5, %v1996_v43 }
 0x1a6   :  { %v2102_v62 = vmax.f32 %v2053_v25, 0.0 }
 0x1a7   :  { %v2101_v36 = vmax.f32 %v2052_v59, 0.0 }
 0x1a8   :  { %2151 = vst.msk [vmem:[%s4377_s3 + $0x180] sm:$0xff] %vm217_vm0, %v2102_v62 }
 0x1a9   :  { %2150 = vst.msk [vmem:[%s4377_s3 + $0x178] sm:$0xff] %vm217_vm0, %v2101_v36 }

// kernel: _lambda_.4
= control target key start
LH: loop header
LB: loop body
LE: loop exit
PB: predicated region body
PF: predicated region fallthrough
CT: control target
= control target key end

     0   :  { %v2700_v0 = vmov 0.0|0.0   ;;  %vm1865_vm0 = vcmask 261120   ;;  %s4765_s1 = inlined_call_operand.vmem [shape: f32[896,32], index: 1, kind: input, shape index: {}]   ;;  %s4766_s0 = inlined_call_operand.vmem [shape: f32[4,104,896], index: 0, kind: input, shape index: {}]   ;;  %s4767_s2 = inlined_call_operand.vmem [shape: f32[1,32], index: 2, kind: input, shape index: {}]   ;;  %s4768_s3 = inlined_call_operand.vmem [shape: f32[104,32], index: 3, kind: output, shape index: {}]  }
   0x1   :  { %2335 = vmatprep.subr.bf16.mxu1 %v2700_v0  ;;  %2383 = vmatprep.subr.bf16.mxu0 %v2700_v0  ;;  %v381_v1 = vld [vmem:[%s4765_s1] sm:$0xff]  ;;  %v382_v2 = vld [vmem:[%s4765_s1 + $0x8] sm:$0xff]  ;;  %v383_v6 = vld [vmem:[%s4765_s1 + $0x10] sm:$0xff] }
   0x2   :  { %v413_v3 = vld [vmem:[%s4765_s1 + $0x100] sm:$0xff]  ;;  %v2336_v4 = vpack.c.bf16 %v382_v2, %v381_v1  ;;  %v414_v5 = vld [vmem:[%s4765_s1 + $0x108] sm:$0xff]  ;;  %v384_v7 = vld [vmem:[%s4765_s1 + $0x18] sm:$0xff] }
   0x3   :  { %v2741_v8 = vpack.c.bf16 %v414_v5, %v413_v3  ;;  %v415_v9 = vld [vmem:[%s4765_s1 + $0x110] sm:$0xff]  ;;  %v416_v10 = vld [vmem:[%s4765_s1 + $0x118] sm:$0xff]  ;;  %v2339_v11 = vpack.c.bf16 %v384_v7, %v383_v6  ;;  %v385_v13 = vld [vmem:[%s4765_s1 + $0x20] sm:$0xff] }
   0x4   :  { %2337 = vmatpush1.bf16.msra.mxu1 %v2336_v4  ;;  %v2751_v12 = vpack.c.bf16 %v416_v10, %v415_v9  ;;  %v386_v14 = vld [vmem:[%s4765_s1 + $0x28] sm:$0xff]  ;;  %v417_v15 = vld [vmem:[%s4765_s1 + $0x120] sm:$0xff]  ;;  %v387_v19 = vld [vmem:[%s4765_s1 + $0x30] sm:$0xff] }
   0x5   :  { %2385 = vmatpush1.bf16.msra.mxu0 %v2741_v8  ;;  %2338 = vmatprep.subr.bf16.mxu1 %v2700_v0  ;;  %v418_v16 = vld [vmem:[%s4765_s1 + $0x128] sm:$0xff]  ;;  %v2342_v17 = vpack.c.bf16 %v386_v14, %v385_v13  ;;  %v388_v20 = vld [vmem:[%s4765_s1 + $0x38] sm:$0xff]  ;;  %v419_v21 = vld [vmem:[%s4765_s1 + $0x130] sm:$0xff] }
   0x6   :  { %2386 = vmatprep.subr.bf16.mxu0 %v2700_v0  ;;  %v2768_v18 = vpack.c.bf16 %v418_v16, %v417_v15  ;;  %v420_v22 = vld [vmem:[%s4765_s1 + $0x138] sm:$0xff]  ;;  %v2345_v23 = vpack.c.bf16 %v388_v20, %v387_v19  ;;  %v389_v25 = vld [vmem:[%s4765_s1 + $0x40] sm:$0xff]  ;;  %v390_v26 = vld [vmem:[%s4765_s1 + $0x48] sm:$0xff] }
   0x7   :  { %v2785_v24 = vpack.c.bf16 %v420_v22, %v419_v21  ;;  %v421_v27 = vld [vmem:[%s4765_s1 + $0x140] sm:$0xff]  ;;  %v422_v28 = vld [vmem:[%s4765_s1 + $0x148] sm:$0xff]  ;;  %v2348_v29 = vpack.c.bf16 %v390_v26, %v389_v25  ;;  %v391_v31 = vld [vmem:[%s4765_s1 + $0x50] sm:$0xff] }
   0x8   :  { %2340 = vmatpush1.bf16.msra.mxu1 %v2339_v11  ;;  %v2802_v30 = vpack.c.bf16 %v422_v28, %v421_v27  ;;  %v392_v32 = vld [vmem:[%s4765_s1 + $0x58] sm:$0xff]  ;;  %v423_v33 = vld [vmem:[%s4765_s1 + $0x150] sm:$0xff]  ;;  %v393_v37 = vld [vmem:[%s4765_s1 + $0x60] sm:$0xff] }
   0x9   :  { %2388 = vmatpush1.bf16.msra.mxu0 %v2751_v12  ;;  %2341 = vmatprep.subr.bf16.mxu1 %v2700_v0  ;;  %v424_v34 = vld [vmem:[%s4765_s1 + $0x158] sm:$0xff]  ;;  %v2351_v35 = vpack.c.bf16 %v392_v32, %v391_v31  ;;  %v394_v38 = vld [vmem:[%s4765_s1 + $0x68] sm:$0xff]  ;;  %v425_v39 = vld [vmem:[%s4765_s1 + $0x160] sm:$0xff] }
   0xa   :  { %2389 = vmatprep.subr.bf16.mxu0 %v2700_v0  ;;  %v2819_v36 = vpack.c.bf16 %v424_v34, %v423_v33  ;;  %v426_v40 = vld [vmem:[%s4765_s1 + $0x168] sm:$0xff]  ;;  %v17_v42 = vld [vmem:[%s4766_s0 + $0x18] sm:$0xff]  ;;  %v2354_v43 = vpack.c.bf16 %v394_v38, %v393_v37  ;;  %v395_v45 = vld [vmem:[%s4765_s1 + $0x70] sm:$0xff] }
   0xb   :  { %v15_v41 = vld [vmem:[%s4766_s0 + $0x8] sm:$0xff]  ;;  %882 = vmatprep.mubr.f32.mxu0 %v17_v42  ;;  %v2842_v44 = vpack.c.bf16 %v426_v40, %v425_v39  ;;  %v396_v46 = vld [vmem:[%s4765_s1 + $0x78] sm:$0xff]  ;;  %v427_v47 = vld [vmem:[%s4765_s1 + $0x170] sm:$0xff] }
   0xc   :  { %2343 = vmatpush1.bf16.msra.mxu1 %v2342_v17  ;;  %557 = vmatprep.mubr.f32.mxu1 %v15_v41  ;;  %v428_v48 = vld [vmem:[%s4765_s1 + $0x178] sm:$0xff]  ;;  %v2357_v49 = vpack.c.bf16 %v396_v46, %v395_v45  ;;  %v397_v51 = vld [vmem:[%s4765_s1 + $0x80] sm:$0xff]  ;;  %v398_v52 = vld [vmem:[%s4765_s1 + $0x88] sm:$0xff] }
   0xd   :  { %2391 = vmatpush1.bf16.msra.mxu0 %v2768_v18  ;;  %2344 = vmatprep.subr.bf16.mxu1 %v2700_v0  ;;  %v2859_v50 = vpack.c.bf16 %v428_v48, %v427_v47  ;;  %v429_v53 = vld [vmem:[%s4765_s1 + $0x180] sm:$0xff]  ;;  %v430_v54 = vld [vmem:[%s4765_s1 + $0x188] sm:$0xff]  ;;  %v2360_v55 = vpack.c.bf16 %v398_v52, %v397_v51  ;;  %v399_v57 = vld [vmem:[%s4765_s1 + $0x90] sm:$0xff] }
   0xe   :  { %2392 = vmatprep.subr.bf16.mxu0 %v2700_v0  ;;  %v2876_v56 = vpack.c.bf16 %v430_v54, %v429_v53  ;;  %v400_v58 = vld [vmem:[%s4765_s1 + $0x98] sm:$0xff]  ;;  %v431_v59 = vld [vmem:[%s4765_s1 + $0x190] sm:$0xff]  ;;  %v401_v63 = vld [vmem:[%s4765_s1 + $0xa0] sm:$0xff] }
   0xf   :  { %v432_v60 = vld [vmem:[%s4765_s1 + $0x198] sm:$0xff]  ;;  %v2363_v61 = vpack.c.bf16 %v400_v58, %v399_v57  ;;  %v402_v1 = vld [vmem:[%s4765_s1 + $0xa8] sm:$0xff]  ;;  %v433_v2 = vld [vmem:[%s4765_s1 + $0x1a0] sm:$0xff] }
  0x10   :  { %2346 = vmatpush1.bf16.msra.mxu1 %v2345_v23  ;;  %v2893_v62 = vpack.c.bf16 %v432_v60, %v431_v59  ;;  %v434_v3 = vld [vmem:[%s4765_s1 + $0x1a8] sm:$0xff]  ;;  %v2366_v4 = vpack.c.bf16 %v402_v1, %v401_v63  ;;  %v403_v6 = vld [vmem:[%s4765_s1 + $0xb0] sm:$0xff]  ;;  %v404_v7 = vld [vmem:[%s4765_s1 + $0xb8] sm:$0xff] }
  0x11   :  { %2394 = vmatpush1.bf16.msra.mxu0 %v2785_v24  ;;  %2347 = vmatprep.subr.bf16.mxu1 %v2700_v0  ;;  %v2910_v5 = vpack.c.bf16 %v434_v3, %v433_v2  ;;  %v435_v9 = vld [vmem:[%s4765_s1 + $0x1b0] sm:$0xff]  ;;  %v436_v10 = vld [vmem:[%s4765_s1 + $0x1b8] sm:$0xff]  ;;  %v2369_v11 = vpack.c.bf16 %v404_v7, %v403_v6  ;;  %v405_v14 = vld [vmem:[%s4765_s1 + $0xc0] sm:$0xff] }
  0x12   :  { %2395 = vmatprep.subr.bf16.mxu0 %v2700_v0  ;;  %v2927_v13 = vpack.c.bf16 %v436_v10, %v435_v9  ;;  %v406_v15 = vld [vmem:[%s4765_s1 + $0xc8] sm:$0xff]  ;;  %v437_v16 = vld [vmem:[%s4765_s1 + $0x1c0] sm:$0xff]  ;;  %v407_v21 = vld [vmem:[%s4765_s1 + $0xd0] sm:$0xff] }
  0x13   :  { %v438_v17 = vld [vmem:[%s4765_s1 + $0x1c8] sm:$0xff]  ;;  %v2372_v19 = vpack.c.bf16 %v406_v15, %v405_v14  ;;  %v408_v22 = vld [vmem:[%s4765_s1 + $0xd8] sm:$0xff]  ;;  %v439_v23 = vld [vmem:[%s4765_s1 + $0x1d0] sm:$0xff] }
  0x14   :  { %2349 = vmatpush1.bf16.msra.mxu1 %v2348_v29  ;;  %v2944_v20 = vpack.c.bf16 %v438_v17, %v437_v16  ;;  %v440_v25 = vld [vmem:[%s4765_s1 + $0x1d8] sm:$0xff]  ;;  %v2375_v26 = vpack.c.bf16 %v408_v22, %v407_v21  ;;  %v409_v28 = vld [vmem:[%s4765_s1 + $0xe0] sm:$0xff]  ;;  %v410_v29 = vld [vmem:[%s4765_s1 + $0xe8] sm:$0xff] }
  0x15   :  { %2397 = vmatpush1.bf16.msra.mxu0 %v2802_v30  ;;  %2350 = vmatprep.subr.bf16.mxu1 %v2700_v0  ;;  %v2961_v27 = vpack.c.bf16 %v440_v25, %v439_v23  ;;  %v441_v31 = vld [vmem:[%s4765_s1 + $0x1e0] sm:$0xff]  ;;  %v442_v32 = vld [vmem:[%s4765_s1 + $0x1e8] sm:$0xff]  ;;  %v2378_v33 = vpack.c.bf16 %v410_v29, %v409_v28  ;;  %v412_v37 = vld [vmem:[%s4765_s1 + $0xf8] sm:$0xff] }
  0x16   :  { %2398 = vmatprep.subr.bf16.mxu0 %v2700_v0  ;;  %v2978_v34 = vpack.c.bf16 %v442_v32, %v441_v31  ;;  %v443_v38 = vld [vmem:[%s4765_s1 + $0x1f0] sm:$0xff]  ;;  %v444_v39 = vld [vmem:[%s4765_s1 + $0x1f8] sm:$0xff]  ;;  %v445_v42 = vld [vmem:[%s4765_s1 + $0x200] sm:$0xff] }
  0x17   :  { %v2995_v41 = vpack.c.bf16 %v444_v39, %v443_v38  ;;  %v14_v45 = vld [vmem:[%s4766_s0] sm:$0xff]  ;;  %v16_v46 = vld [vmem:[%s4766_s0 + $0x10] sm:$0xff]  ;;  %v448_v51 = vld [vmem:[%s4765_s1 + $0x218] sm:$0xff] }
  0x18   :  { %2352 = vmatpush1.bf16.msra.mxu1 %v2351_v35  ;;  %v411_v35 = vld [vmem:[%s4765_s1 + $0xf0] sm:$0xff]  ;;  %v22_v48 = vld [vmem:[%s4766_s0 + $0x40] sm:$0xff]  ;;  %v21_v53 = vld [vmem:[%s4766_s0 + $0x38] sm:$0xff] }
  0x19   :  { %2400 = vmatpush1.bf16.msra.mxu0 %v2819_v36  ;;  %2353 = vmatprep.subr.bf16.mxu1 %v2700_v0  ;;  %v2381_v40 = vpack.c.bf16 %v412_v37, %v411_v35  ;;  %v24_v52 = vld [vmem:[%s4766_s0 + $0x50] sm:$0xff]  ;;  %v23_v54 = vld [vmem:[%s4766_s0 + $0x48] sm:$0xff]  ;;  %v449_v58 = vld [vmem:[%s4765_s1 + $0x220] sm:$0xff] }
  0x1a   :  { %2401 = vmatprep.subr.bf16.mxu0 %v2700_v0  ;;  %v450_v59 = vld [vmem:[%s4765_s1 + $0x228] sm:$0xff]  ;;  %v28_v60 = vld [vmem:[%s4766_s0 + $0x70] sm:$0xff]  ;;  %v38_v2 = vld [vmem:[%s4766_s0 + $0xc0] sm:$0xff] }
  0x1b   :  { %v36_v63 = vld [vmem:[%s4766_s0 + $0xb0] sm:$0xff]  ;;  %v2438_v1 = vpack.c.bf16 %v450_v59, %v449_v58  ;;  %v35_v6 = vld [vmem:[%s4766_s0 + $0xa8] sm:$0xff]  ;;  %v45_v10 = vld [vmem:[%s4766_s0 + $0xf8] sm:$0xff] }
  0x1c   :  { %2355 = vmatpush1.bf16.msra.mxu1 %v2354_v43  ;;  %v446_v43 = vld [vmem:[%s4765_s1 + $0x208] sm:$0xff]  ;;  %v451_v3 = vld [vmem:[%s4765_s1 + $0x230] sm:$0xff]  ;;  %v42_v15 = vld [vmem:[%s4766_s0 + $0xe0] sm:$0xff] }
  0x1d   :  { %2403 = vmatpush1.bf16.msra.mxu0 %v2842_v44  ;;  %2356 = vmatprep.subr.bf16.mxu1 %v2700_v0  ;;  %v2432_v47 = vpack.c.bf16 %v446_v43, %v445_v42  ;;  %v43_v7 = vld [vmem:[%s4766_s0 + $0xe8] sm:$0xff]  ;;  %v50_v16 = vld [vmem:[%s4766_s0 + $0x120] sm:$0xff]  ;;  %v455_v21 = vld [vmem:[%s4765_s1 + $0x250] sm:$0xff] }
  0x1e   :  { %2404 = vmatprep.subr.bf16.mxu0 %v2700_v0  ;;  %v454_v14 = vld [vmem:[%s4765_s1 + $0x248] sm:$0xff]  ;;  %v456_v22 = vld [vmem:[%s4765_s1 + $0x258] sm:$0xff]  ;;  %v457_v29 = vld [vmem:[%s4765_s1 + $0x260] sm:$0xff] }
  0x1f   :  { %v49_v23 = vld [vmem:[%s4766_s0 + $0x118] sm:$0xff]  ;;  %v59_v28 = vld [vmem:[%s4766_s0 + $0x168] sm:$0xff]  ;;  %v56_v32 = vld [vmem:[%s4766_s0 + $0x150] sm:$0xff] }
  0x20   :  { %2358 = vmatpush1.bf16.msra.mxu1 %v2357_v49  ;;  %v447_v49 = vld [vmem:[%s4765_s1 + $0x210] sm:$0xff]  ;;  %v57_v25 = vld [vmem:[%s4766_s0 + $0x158] sm:$0xff]  ;;  %v458_v31 = vld [vmem:[%s4765_s1 + $0x268] sm:$0xff] }
  0x21   :  { %2406 = vmatpush1.bf16.msra.mxu0 %v2859_v50  ;;  %2359 = vmatprep.subr.bf16.mxu1 %v2700_v0  ;;  %v2435_v57 = vpack.c.bf16 %v448_v51, %v447_v49  ;;  %v2450_v35 = vpack.c.bf16 %v458_v31, %v457_v29  ;;  %v66_v37 = vld [vmem:[%s4766_s0 + $0x1a0] sm:$0xff]  ;;  %v459_v38 = vld [vmem:[%s4765_s1 + $0x270] sm:$0xff]  ;;  %v460_v39 = vld [vmem:[%s4765_s1 + $0x278] sm:$0xff] }
  0x22   :  { %2407 = vmatprep.subr.bf16.mxu0 %v2700_v0  ;;  %v71_v42 = vld [vmem:[%s4766_s0 + $0x1c8] sm:$0xff]  ;;  %v2453_v43 = vpack.c.bf16 %v460_v39, %v459_v38  ;;  %v72_v49 = vld [vmem:[%s4766_s0 + $0x1d0] sm:$0xff]  ;;  %v78_v51 = vld [vmem:[%s4766_s0 + $0x200] sm:$0xff] }
  0x23   :  { %v87_v58 = vld [vmem:[%s4766_s0 + $0x248] sm:$0xff]  ;;  %v465_v59 = vld [vmem:[%s4765_s1 + $0x2a0] sm:$0xff]  ;;  %v1898_v31 = vld [vmem:[%s4766_s0 + $0x350] sm:$0xff] }
  0x24   :  { %2361 = vmatpush1.bf16.msra.mxu1 %v2360_v55  ;;  %v29_v55 = vld [vmem:[%s4766_s0 + $0x78] sm:$0xff]  ;;  %v1892_v29 = vld [vmem:[%s4766_s0 + $0x320] sm:$0xff]  ;;  %v1905_v38 = vld [vmem:[%s4766_s0 + $0x388] sm:$0xff] }
  0x25   :  { %2409 = vmatpush1.bf16.msra.mxu0 %v2876_v56  ;;  %2362 = vmatprep.subr.bf16.mxu1 %v2700_v0  ;;  %v1907_v39 = vld [vmem:[%s4766_s0 + $0x398] sm:$0xff] }
  0x26   :  { %2410 = vmatprep.subr.bf16.mxu0 %v2700_v0 }
  0x28   :  { %2364 = vmatpush1.bf16.msra.mxu1 %v2363_v61  ;;  %v30_v61 = vld [vmem:[%s4766_s0 + $0x80] sm:$0xff] }
  0x29   :  { %2412 = vmatpush1.bf16.msra.mxu0 %v2893_v62  ;;  %2365 = vmatprep.subr.bf16.mxu1 %v2700_v0 }
  0x2a   :  { %2413 = vmatprep.subr.bf16.mxu0 %v2700_v0 }
  0x2c   :  { %2367 = vmatpush1.bf16.msra.mxu1 %v2366_v4  ;;  %v452_v4 = vld [vmem:[%s4765_s1 + $0x238] sm:$0xff] }
  0x2d   :  { %2415 = vmatpush1.bf16.msra.mxu0 %v2910_v5  ;;  %2368 = vmatprep.subr.bf16.mxu1 %v2700_v0  ;;  %v2441_v9 = vpack.c.bf16 %v452_v4, %v451_v3  ;;  %v467_v3 = vld [vmem:[%s4765_s1 + $0x2b0] sm:$0xff]  ;;  %v468_v4 = vld [vmem:[%s4765_s1 + $0x2b8] sm:$0xff] }
  0x2e   :  { %2416 = vmatprep.subr.bf16.mxu0 %v2700_v0 }
  0x30   :  { %2370 = vmatpush1.bf16.msra.mxu1 %v2369_v11  ;;  %v453_v11 = vld [vmem:[%s4765_s1 + $0x240] sm:$0xff] }
  0x31   :  { %2418 = vmatpush1.bf16.msra.mxu0 %v2927_v13  ;;  %2371 = vmatprep.subr.bf16.mxu1 %v2700_v0  ;;  %v2444_v17 = vpack.c.bf16 %v454_v14, %v453_v11  ;;  %v470_v11 = vld [vmem:[%s4765_s1 + $0x2c8] sm:$0xff]  ;;  %v98_v14 = vld [vmem:[%s4766_s0 + $0x2a0] sm:$0xff] }
  0x32   :  { %2419 = vmatprep.subr.bf16.mxu0 %v2700_v0 }
  0x34   :  { %2373 = vmatpush1.bf16.msra.mxu1 %v2372_v19  ;;  %v52_v19 = vld [vmem:[%s4766_s0 + $0x130] sm:$0xff] }
  0x35   :  { %2421 = vmatpush1.bf16.msra.mxu0 %v2944_v20  ;;  %2374 = vmatprep.subr.bf16.mxu1 %v2700_v0 }
  0x36   :  { %2422 = vmatprep.subr.bf16.mxu0 %v2700_v0 }
  0x38   :  { %2376 = vmatpush1.bf16.msra.mxu1 %v2375_v26  ;;  %v2447_v26 = vpack.c.bf16 %v456_v22, %v455_v21  ;;  %v1883_v21 = vld [vmem:[%s4766_s0 + $0x2d8] sm:$0xff]  ;;  %v1885_v22 = vld [vmem:[%s4766_s0 + $0x2e8] sm:$0xff] }
  0x39   :  { %2424 = vmatpush1.bf16.msra.mxu0 %v2961_v27  ;;  %2377 = vmatprep.subr.bf16.mxu1 %v2700_v0 }
  0x3a   :  { %2425 = vmatprep.subr.bf16.mxu0 %v2700_v0 }
  0x3c   :  { %2379 = vmatpush1.bf16.msra.mxu1 %v2378_v33  ;;  %v64_v33 = vld [vmem:[%s4766_s0 + $0x190] sm:$0xff] }
  0x3d   :  { %2427 = vmatpush1.bf16.msra.mxu0 %v2978_v34  ;;  %2380 = vmatprep.subr.bf16.mxu1 %v2700_v0 }
  0x3e   :  { %2428 = vmatprep.subr.bf16.mxu0 %v2700_v0 }
  0x40   :  { %2382 = vmatpush1.bf16.msra.mxu1 %v2381_v40  ;;  %v63_v40 = vld [vmem:[%s4766_s0 + $0x188] sm:$0xff] }
  0x41   :  { %2430 = vmatpush1.bf16.msra.mxu0 %v2995_v41  ;;  %2511 = vmatprep.subr.bf16.mxu1 %v2700_v0 }
  0x42   :  { %2431 = vmatprep.subr.bf16.mxu0 %v2700_v0 }
  0x43   :  { %558 = vmatmul.mubr.f32.vlgmr.msra.gmra.mrb[0].mxu1 %v14_v45  ;;  %v73_v45 = vld [vmem:[%s4766_s0 + $0x1d8] sm:$0xff] }
  0x44   :  { %883 = vmatmul.mubr.f32.vlgmr.msra.gmra.mrb[0].mxu0 %v16_v46  ;;  %2527 = vmatpush1.bf16.msra.mxu1 %v2741_v8  ;;  %v31_v8 = vld [vmem:[%s4766_s0 + $0x88] sm:$0xff]  ;;  %v461_v46 = vld [vmem:[%s4765_s1 + $0x280] sm:$0xff] }
  0x45   :  { %2433 = vmatpush1.bf16.msra.mxu0 %v2432_v47  ;;  %562 = vmatprep.mubr.f32.mxu1 %v22_v48  ;;  %v462_v47 = vld [vmem:[%s4765_s1 + $0x288] sm:$0xff]  ;;  %v70_v48 = vld [vmem:[%s4766_s0 + $0x1c0] sm:$0xff] }
  0x46   :  { %887 = vmatprep.mubr.f32.mxu0 %v24_v52  ;;  %2434 = vmatprep.subr.bf16.mxu0 %v2700_v0  ;;  %v80_v52 = vld [vmem:[%s4766_s0 + $0x210] sm:$0xff] }
  0x47   :  { %563 = vmatmul.mubr.f32.gmra.mrb[2].mxu1 %v21_v53  ;;  %2512 = vmatprep.subr.bf16.mxu1 %v2700_v0  ;;  %v463_v53 = vld [vmem:[%s4765_s1 + $0x290] sm:$0xff] }
  0x48   :  { %888 = vmatmul.mubr.f32.gmra.mrb[2].mxu0 %v23_v54  ;;  %567 = vmatprep.mubr.f32.mxu1 %v29_v55  ;;  %v464_v54 = vld [vmem:[%s4765_s1 + $0x298] sm:$0xff] }
  0x49   :  { %892 = vmatprep.mubr.f32.mxu0 %v31_v8  ;;  %2436 = vmatpush1.bf16.msra.mxu0 %v2435_v57  ;;  %v77_v55 = vld [vmem:[%s4766_s0 + $0x1f8] sm:$0xff]  ;;  %v79_v57 = vld [vmem:[%s4766_s0 + $0x208] sm:$0xff] }
  0x4a   :  { %2528 = vmatpush1.bf16.msra.mxu1 %v2751_v12  ;;  %2437 = vmatprep.subr.bf16.mxu0 %v2700_v0  ;;  %v37_v12 = vld [vmem:[%s4766_s0 + $0xb8] sm:$0xff] }
  0x4b   :  { %568 = vmatmul.mubr.f32.gmra.mrb[4].mxu1 %v28_v60  ;;  %2513 = vmatprep.subr.bf16.mxu1 %v2700_v0  ;;  %v85_v8 = vld [vmem:[%s4766_s0 + $0x238] sm:$0xff]  ;;  %v466_v60 = vld [vmem:[%s4765_s1 + $0x2a8] sm:$0xff] }
  0x4c   :  { %893 = vmatmul.mubr.f32.gmra.mrb[4].mxu0 %v30_v61  ;;  %572 = vmatprep.mubr.f32.mxu1 %v36_v63  ;;  %v84_v61 = vld [vmem:[%s4766_s0 + $0x230] sm:$0xff]  ;;  %v86_v63 = vld [vmem:[%s4766_s0 + $0x240] sm:$0xff] }
  0x4d   :  { %897 = vmatprep.mubr.f32.mxu0 %v38_v2  ;;  %2439 = vmatpush1.bf16.msra.mxu0 %v2438_v1  ;;  %v92_v1 = vld [vmem:[%s4766_s0 + $0x270] sm:$0xff]  ;;  %v94_v2 = vld [vmem:[%s4766_s0 + $0x280] sm:$0xff] }
  0x4e   :  { %2529 = vmatpush1.bf16.msra.mxu1 %v2768_v18  ;;  %2440 = vmatprep.subr.bf16.mxu0 %v2700_v0  ;;  %v44_v18 = vld [vmem:[%s4766_s0 + $0xf0] sm:$0xff] }
  0x4f   :  { %573 = vmatmul.mubr.f32.gmra.mrb[6].mxu1 %v35_v6  ;;  %2514 = vmatprep.subr.bf16.mxu1 %v2700_v0  ;;  %v91_v6 = vld [vmem:[%s4766_s0 + $0x268] sm:$0xff] }
  0x50   :  { %898 = vmatmul.mubr.f32.gmra.mrb[6].mxu0 %v37_v12  ;;  %577 = vmatprep.mubr.f32.mxu1 %v43_v7  ;;  %v93_v12 = vld [vmem:[%s4766_s0 + $0x278] sm:$0xff]  ;;  %v99_v7 = vld [vmem:[%s4766_s0 + $0x2a8] sm:$0xff] }
  0x51   :  { %902 = vmatprep.mubr.f32.mxu0 %v45_v10  ;;  %2442 = vmatpush1.bf16.msra.mxu0 %v2441_v9  ;;  %v101_v9 = vld [vmem:[%s4766_s0 + $0x2b8] sm:$0xff]  ;;  %v469_v10 = vld [vmem:[%s4765_s1 + $0x2c0] sm:$0xff] }
  0x52   :  { %2443 = vmatprep.subr.bf16.mxu0 %v2700_v0  ;;  %2530 = vmatpush1.bf16.msra.mxu1 %v2785_v24  ;;  %v51_v24 = vld [vmem:[%s4766_s0 + $0x128] sm:$0xff] }
  0x53   :  { %578 = vmatmul.mubr.f32.gmra.mrb[8].mxu1 %v42_v15  ;;  %2515 = vmatprep.subr.bf16.mxu1 %v2700_v0  ;;  %v100_v15 = vld [vmem:[%s4766_s0 + $0x2b0] sm:$0xff] }
  0x54   :  { %903 = vmatmul.mubr.f32.gmra.mrb[8].mxu0 %v44_v18  ;;  %582 = vmatprep.mubr.f32.mxu1 %v50_v16  ;;  %v1884_v18 = vld [vmem:[%s4766_s0 + $0x2e0] sm:$0xff]  ;;  %v1886_v16 = vld [vmem:[%s4766_s0 + $0x2f0] sm:$0xff] }
  0x55   :  { %907 = vmatprep.mubr.f32.mxu0 %v52_v19  ;;  %2445 = vmatpush1.bf16.msra.mxu0 %v2444_v17  ;;  %v471_v17 = vld [vmem:[%s4765_s1 + $0x2d0] sm:$0xff]  ;;  %v472_v19 = vld [vmem:[%s4765_s1 + $0x2d8] sm:$0xff] }
  0x56   :  { %2446 = vmatprep.subr.bf16.mxu0 %v2700_v0  ;;  %2531 = vmatpush1.bf16.msra.mxu1 %v2802_v30  ;;  %v58_v30 = vld [vmem:[%s4766_s0 + $0x160] sm:$0xff] }
  0x57   :  { %583 = vmatmul.mubr.f32.gmra.mrb[10].mxu1 %v49_v23  ;;  %2516 = vmatprep.subr.bf16.mxu1 %v2700_v0  ;;  %v1891_v23 = vld [vmem:[%s4766_s0 + $0x318] sm:$0xff] }
  0x58   :  { %908 = vmatmul.mubr.f32.gmra.mrb[10].mxu0 %v51_v24  ;;  %587 = vmatprep.mubr.f32.mxu1 %v57_v25  ;;  %v1893_v24 = vld [vmem:[%s4766_s0 + $0x328] sm:$0xff]  ;;  %v473_v25 = vld [vmem:[%s4765_s1 + $0x2e0] sm:$0xff] }
  0x59   :  { %912 = vmatprep.mubr.f32.mxu0 %v59_v28  ;;  %2448 = vmatpush1.bf16.msra.mxu0 %v2447_v26  ;;  %v474_v26 = vld [vmem:[%s4765_s1 + $0x2e8] sm:$0xff]  ;;  %v1890_v28 = vld [vmem:[%s4766_s0 + $0x310] sm:$0xff] }
  0x5a   :  { %2449 = vmatprep.subr.bf16.mxu0 %v2700_v0  ;;  %2532 = vmatpush1.bf16.msra.mxu1 %v2819_v36  ;;  %v65_v36 = vld [vmem:[%s4766_s0 + $0x198] sm:$0xff] }
  0x5b   :  { %588 = vmatmul.mubr.f32.gmra.mrb[12].mxu1 %v56_v32  ;;  %2517 = vmatprep.subr.bf16.mxu1 %v2700_v0  ;;  %v1900_v32 = vld [vmem:[%s4766_s0 + $0x360] sm:$0xff] }
  0x5c   :  { %913 = vmatmul.mubr.f32.gmra.mrb[12].mxu0 %v58_v30  ;;  %592 = vmatprep.mubr.f32.mxu1 %v64_v33  ;;  %v475_v30 = vld [vmem:[%s4765_s1 + $0x2f0] sm:$0xff]  ;;  %v476_v33 = vld [vmem:[%s4765_s1 + $0x2f8] sm:$0xff] }
  0x5d   :  { %917 = vmatprep.mubr.f32.mxu0 %v66_v37  ;;  %2451 = vmatpush1.bf16.msra.mxu0 %v2450_v35  ;;  %v1897_v35 = vld [vmem:[%s4766_s0 + $0x348] sm:$0xff]  ;;  %v1899_v37 = vld [vmem:[%s4766_s0 + $0x358] sm:$0xff] }
  0x5e   :  { %2452 = vmatprep.subr.bf16.mxu0 %v2700_v0  ;;  %2533 = vmatpush1.bf16.msra.mxu1 %v2842_v44  ;;  %v2456_v44 = vpack.c.bf16 %v462_v47, %v461_v46  ;;  %v1918_v46 = vld [vmem:[%s4766_s0 + $0x3f0] sm:$0xff]  ;;  %v1920_v47 = vld [vmem:[%s4766_s0 + $0x400] sm:$0xff] }
  0x5f   :  { %593 = vmatmul.mubr.f32.gmra.mrb[14].mxu1 %v63_v40  ;;  %2518 = vmatprep.subr.bf16.mxu1 %v2700_v0  ;;  %v1904_v40 = vld [vmem:[%s4766_s0 + $0x380] sm:$0xff] }
  0x60   :  { %918 = vmatmul.mubr.f32.gmra.mrb[14].mxu0 %v65_v36  ;;  %597 = vmatprep.mubr.f32.mxu1 %v71_v42  ;;  %v1906_v36 = vld [vmem:[%s4766_s0 + $0x390] sm:$0xff]  ;;  %v1912_v42 = vld [vmem:[%s4766_s0 + $0x3c0] sm:$0xff] }
  0x61   :  { %922 = vmatprep.mubr.f32.mxu0 %v73_v45  ;;  %2454 = vmatpush1.bf16.msra.mxu0 %v2453_v43  ;;  %v1913_v43 = vld [vmem:[%s4766_s0 + $0x3c8] sm:$0xff]  ;;  %v1919_v45 = vld [vmem:[%s4766_s0 + $0x3f8] sm:$0xff] }
  0x62   :  { %2455 = vmatprep.subr.bf16.mxu0 %v2700_v0  ;;  %2534 = vmatpush1.bf16.msra.mxu1 %v2859_v50  ;;  %v2459_v50 = vpack.c.bf16 %v464_v54, %v463_v53  ;;  %v1935_v53 = vld [vmem:[%s4766_s0 + $0x478] sm:$0xff]  ;;  %v1932_v54 = vld [vmem:[%s4766_s0 + $0x460] sm:$0xff] }
  0x63   :  { %598 = vmatmul.mubr.f32.gmra.mrb[16].mxu1 %v70_v48  ;;  %2519 = vmatprep.subr.bf16.mxu1 %v2700_v0  ;;  %v1926_v48 = vld [vmem:[%s4766_s0 + $0x430] sm:$0xff] }
  0x64   :  { %923 = vmatmul.mubr.f32.gmra.mrb[16].mxu0 %v72_v49  ;;  %602 = vmatprep.mubr.f32.mxu1 %v78_v51  ;;  %v1928_v49 = vld [vmem:[%s4766_s0 + $0x440] sm:$0xff]  ;;  %v1925_v51 = vld [vmem:[%s4766_s0 + $0x428] sm:$0xff] }
  0x65   :  { %927 = vmatprep.mubr.f32.mxu0 %v80_v52  ;;  %2457 = vmatpush1.bf16.msra.mxu0 %v2456_v44  ;;  %v1927_v44 = vld [vmem:[%s4766_s0 + $0x438] sm:$0xff]  ;;  %v1933_v52 = vld [vmem:[%s4766_s0 + $0x468] sm:$0xff] }
  0x66   :  { %2458 = vmatprep.subr.bf16.mxu0 %v2700_v0  ;;  %2535 = vmatpush1.bf16.msra.mxu1 %v2876_v56  ;;  %v2462_v56 = vpack.c.bf16 %v466_v60, %v465_v59  ;;  %v478_v59 = vld [vmem:[%s4765_s1 + $0x308] sm:$0xff] }
  0x67   :  { %603 = vmatmul.mubr.f32.gmra.mrb[18].mxu1 %v77_v55  ;;  %2520 = vmatprep.subr.bf16.mxu1 %v2700_v0  ;;  %v1934_v55 = vld [vmem:[%s4766_s0 + $0x470] sm:$0xff]  ;;  %v1941_v60 = vld [vmem:[%s4766_s0 + $0x4a8] sm:$0xff] }
  0x68   :  { %928 = vmatmul.mubr.f32.gmra.mrb[18].mxu0 %v79_v57  ;;  %607 = vmatprep.mubr.f32.mxu1 %v85_v8  ;;  %v1940_v57 = vld [vmem:[%s4766_s0 + $0x4a0] sm:$0xff]  ;;  %v1942_v8 = vld [vmem:[%s4766_s0 + $0x4b0] sm:$0xff] }
  0x69   :  { %932 = vmatprep.mubr.f32.mxu0 %v87_v58  ;;  %2460 = vmatpush1.bf16.msra.mxu0 %v2459_v50  ;;  %v1939_v50 = vld [vmem:[%s4766_s0 + $0x498] sm:$0xff]  ;;  %v477_v58 = vld [vmem:[%s4765_s1 + $0x300] sm:$0xff] }
  0x6a   :  { %2461 = vmatprep.subr.bf16.mxu0 %v2700_v0  ;;  %2536 = vmatpush1.bf16.msra.mxu1 %v2893_v62  ;;  %v2465_v62 = vpack.c.bf16 %v468_v4, %v467_v3  ;;  %v1954_v3 = vld [vmem:[%s4766_s0 + $0x510] sm:$0xff]  ;;  %v1956_v4 = vld [vmem:[%s4766_s0 + $0x520] sm:$0xff] }
  0x6b   :  { %608 = vmatmul.mubr.f32.gmra.mrb[20].mxu1 %v84_v61  ;;  %2521 = vmatprep.subr.bf16.mxu1 %v2700_v0  ;;  %v1947_v61 = vld [vmem:[%s4766_s0 + $0x4d8] sm:$0xff] }
  0x6c   :  { %933 = vmatmul.mubr.f32.gmra.mrb[20].mxu0 %v86_v63  ;;  %612 = vmatprep.mubr.f32.mxu1 %v92_v1  ;;  %v3410_v63 = vpack.c.bf16 %v478_v59, %v477_v58  ;;  %v1949_v1 = vld [vmem:[%s4766_s0 + $0x4e8] sm:$0xff]  ;;  %v2052_v58 = vld [vmem:[%s4766_s0 + $0x820] sm:$0xff]  ;;  %v2054_v59 = vld [vmem:[%s4766_s0 + $0x830] sm:$0xff] }
  0x6d   :  { %937 = vmatprep.mubr.f32.mxu0 %v94_v2  ;;  %2463 = vmatpush1.bf16.msra.mxu0 %v2462_v56  ;;  %v1946_v56 = vld [vmem:[%s4766_s0 + $0x4d0] sm:$0xff]  ;;  %v1948_v2 = vld [vmem:[%s4766_s0 + $0x4e0] sm:$0xff] }
  0x6e   :  { %2464 = vmatprep.subr.bf16.mxu0 %v2700_v0  ;;  %2537 = vmatpush1.bf16.msra.mxu1 %v2910_v5  ;;  %v2468_v5 = vpack.c.bf16 %v470_v11, %v469_v10  ;;  %v1962_v10 = vld [vmem:[%s4766_s0 + $0x550] sm:$0xff]  ;;  %v1968_v11 = vld [vmem:[%s4766_s0 + $0x580] sm:$0xff] }
  0x6f   :  { %613 = vmatmul.mubr.f32.gmra.mrb[22].mxu1 %v91_v6  ;;  %2522 = vmatprep.subr.bf16.mxu1 %v2700_v0  ;;  %v1953_v6 = vld [vmem:[%s4766_s0 + $0x508] sm:$0xff] }
  0x70   :  { %938 = vmatmul.mubr.f32.gmra.mrb[22].mxu0 %v93_v12  ;;  %617 = vmatprep.mubr.f32.mxu1 %v99_v7  ;;  %v1955_v12 = vld [vmem:[%s4766_s0 + $0x518] sm:$0xff]  ;;  %v1961_v7 = vld [vmem:[%s4766_s0 + $0x548] sm:$0xff] }
  0x71   :  { %942 = vmatprep.mubr.f32.mxu0 %v101_v9  ;;  %2466 = vmatpush1.bf16.msra.mxu0 %v2465_v62  ;;  %v1963_v62 = vld [vmem:[%s4766_s0 + $0x558] sm:$0xff]  ;;  %v1960_v9 = vld [vmem:[%s4766_s0 + $0x540] sm:$0xff] }
  0x72   :  { %2467 = vmatprep.subr.bf16.mxu0 %v2700_v0  ;;  %2538 = vmatpush1.bf16.msra.mxu1 %v2927_v13  ;;  %v2471_v13 = vpack.c.bf16 %v472_v19, %v471_v17  ;;  %v1974_v17 = vld [vmem:[%s4766_s0 + $0x5b0] sm:$0xff]  ;;  %v1976_v19 = vld [vmem:[%s4766_s0 + $0x5c0] sm:$0xff] }
  0x73   :  { %618 = vmatmul.mubr.f32.gmra.mrb[24].mxu1 %v98_v14  ;;  %2523 = vmatprep.subr.bf16.mxu1 %v2700_v0  ;;  %v1970_v14 = vld [vmem:[%s4766_s0 + $0x590] sm:$0xff] }
  0x74   :  { %943 = vmatmul.mubr.f32.gmra.mrb[24].mxu0 %v100_v15  ;;  %622 = vmatprep.mubr.f32.mxu1 %v1884_v18  ;;  %v1967_v15 = vld [vmem:[%s4766_s0 + $0x578] sm:$0xff]  ;;  %v1969_v18 = vld [vmem:[%s4766_s0 + $0x588] sm:$0xff] }
  0x75   :  { %947 = vmatprep.mubr.f32.mxu0 %v1886_v16  ;;  %2469 = vmatpush1.bf16.msra.mxu0 %v2468_v5  ;;  %v1975_v5 = vld [vmem:[%s4766_s0 + $0x5b8] sm:$0xff]  ;;  %v1977_v16 = vld [vmem:[%s4766_s0 + $0x5c8] sm:$0xff] }
  0x76   :  { %2470 = vmatprep.subr.bf16.mxu0 %v2700_v0  ;;  %2539 = vmatpush1.bf16.msra.mxu1 %v2944_v20  ;;  %v2474_v20 = vpack.c.bf16 %v474_v26, %v473_v25  ;;  %v1991_v25 = vld [vmem:[%s4766_s0 + $0x638] sm:$0xff]  ;;  %v1988_v26 = vld [vmem:[%s4766_s0 + $0x620] sm:$0xff] }
  0x77   :  { %623 = vmatmul.mubr.f32.gmra.mrb[26].mxu1 %v1883_v21  ;;  %2524 = vmatprep.subr.bf16.mxu1 %v2700_v0  ;;  %v1982_v21 = vld [vmem:[%s4766_s0 + $0x5f0] sm:$0xff] }
  0x78   :  { %948 = vmatmul.mubr.f32.gmra.mrb[26].mxu0 %v1885_v22  ;;  %627 = vmatprep.mubr.f32.mxu1 %v1891_v23  ;;  %v1984_v22 = vld [vmem:[%s4766_s0 + $0x600] sm:$0xff]  ;;  %v1981_v23 = vld [vmem:[%s4766_s0 + $0x5e8] sm:$0xff] }
  0x79   :  { %952 = vmatprep.mubr.f32.mxu0 %v1893_v24  ;;  %2472 = vmatpush1.bf16.msra.mxu0 %v2471_v13  ;;  %v1983_v13 = vld [vmem:[%s4766_s0 + $0x5f8] sm:$0xff]  ;;  %v1989_v24 = vld [vmem:[%s4766_s0 + $0x628] sm:$0xff] }
  0x7a   :  { %2473 = vmatprep.subr.bf16.mxu0 %v2700_v0  ;;  %2540 = vmatpush1.bf16.msra.mxu1 %v2961_v27  ;;  %v2477_v27 = vpack.c.bf16 %v476_v33, %v475_v30  ;;  %v2003_v30 = vld [vmem:[%s4766_s0 + $0x698] sm:$0xff]  ;;  %v2005_v33 = vld [vmem:[%s4766_s0 + $0x6a8] sm:$0xff] }
  0x7b   :  { %628 = vmatmul.mubr.f32.gmra.mrb[28].mxu1 %v1890_v28  ;;  %2525 = vmatprep.subr.bf16.mxu1 %v2700_v0  ;;  %v1990_v28 = vld [vmem:[%s4766_s0 + $0x630] sm:$0xff] }
  0x7c   :  { %953 = vmatmul.mubr.f32.gmra.mrb[28].mxu0 %v1892_v29  ;;  %632 = vmatprep.mubr.f32.mxu1 %v1898_v31  ;;  %v1996_v29 = vld [vmem:[%s4766_s0 + $0x660] sm:$0xff]  ;;  %v1998_v31 = vld [vmem:[%s4766_s0 + $0x670] sm:$0xff] }
  0x7d   :  { %957 = vmatprep.mubr.f32.mxu0 %v1900_v32  ;;  %2475 = vmatpush1.bf16.msra.mxu0 %v2474_v20  ;;  %v1995_v20 = vld [vmem:[%s4766_s0 + $0x658] sm:$0xff]  ;;  %v1997_v32 = vld [vmem:[%s4766_s0 + $0x668] sm:$0xff] }
  0x7e   :  { %2476 = vmatprep.subr.bf16.mxu0 %v2700_v0  ;;  %2541 = vmatpush1.bf16.msra.mxu1 %v2978_v34  ;;  %v1911_v34 = vld [vmem:[%s4766_s0 + $0x3b8] sm:$0xff] }
  0x7f   :  { %633 = vmatmul.mubr.f32.gmra.mrb[30].mxu1 %v1897_v35  ;;  %2526 = vmatprep.subr.bf16.mxu1 %v2700_v0  ;;  %v1914_v0 = vld [vmem:[%s4766_s0 + $0x3d0] sm:$0xff] }
  0x80   :  { %958 = vmatmul.mubr.f32.gmra.mrb[30].mxu0 %v1899_v37  ;;  %637 = vmatprep.mubr.f32.mxu1 %v1905_v38  ;;  %v2002_v35 = vld [vmem:[%s4766_s0 + $0x690] sm:$0xff]  ;;  %v2004_v37 = vld [vmem:[%s4766_s0 + $0x6a0] sm:$0xff] }
  0x81   :  { %962 = vmatprep.mubr.f32.mxu0 %v1907_v39  ;;  %2478 = vmatpush1.bf16.msra.mxu0 %v2477_v27  ;;  %v2010_v38 = vld [vmem:[%s4766_s0 + $0x6d0] sm:$0xff]  ;;  %v2012_v27 = vld [vmem:[%s4766_s0 + $0x6e0] sm:$0xff]  ;;  %v2009_v39 = vld [vmem:[%s4766_s0 + $0x6c8] sm:$0xff] }
  0x82   :  { %2542 = vmatpush1.bf16.msra.mxu1 %v2995_v41  ;;  %v1921_v41 = vld [vmem:[%s4766_s0 + $0x408] sm:$0xff] }
  0x83   :  { %638 = vmatmul.mubr.f32.gmra.mrb[32].mxu1 %v1904_v40  ;;  %2480 = vmatprep.subr.bf16.mxu1 %v3410_v63  ;;  %v2011_v40 = vld [vmem:[%s4766_s0 + $0x6d8] sm:$0xff] }
  0x84   :  { %963 = vmatmul.mubr.f32.gmra.mrb[32].mxu0 %v1906_v36  ;;  %642 = vmatprep.mubr.f32.mxu1 %v1912_v42  ;;  %v2017_v36 = vld [vmem:[%s4766_s0 + $0x708] sm:$0xff]  ;;  %v2019_v42 = vld [vmem:[%s4766_s0 + $0x718] sm:$0xff] }
  0x85   :  { %967 = vmatprep.mubr.f32.mxu0 %v1914_v0  ;;  %v2016_v0 = vld [vmem:[%s4766_s0 + $0x700] sm:$0xff] }
  0x87   :  { %643 = vmatmul.mubr.f32.gmra.mrb[34].mxu1 %v1911_v34  ;;  %v2018_v34 = vld [vmem:[%s4766_s0 + $0x710] sm:$0xff] }
  0x88   :  { %968 = vmatmul.mubr.f32.gmra.mrb[34].mxu0 %v1913_v43  ;;  %647 = vmatprep.mubr.f32.mxu1 %v1919_v45  ;;  %v2024_v43 = vld [vmem:[%s4766_s0 + $0x740] sm:$0xff]  ;;  %v2026_v45 = vld [vmem:[%s4766_s0 + $0x750] sm:$0xff] }
  0x89   :  { %972 = vmatprep.mubr.f32.mxu0 %v1921_v41  ;;  %v2023_v41 = vld [vmem:[%s4766_s0 + $0x738] sm:$0xff] }
  0x8b   :  { %648 = vmatmul.mubr.f32.gmra.mrb[36].mxu1 %v1918_v46  ;;  %v2025_v46 = vld [vmem:[%s4766_s0 + $0x748] sm:$0xff] }
  0x8c   :  { %973 = vmatmul.mubr.f32.gmra.mrb[36].mxu0 %v1920_v47  ;;  %652 = vmatprep.mubr.f32.mxu1 %v1926_v48  ;;  %v2031_v47 = vld [vmem:[%s4766_s0 + $0x778] sm:$0xff]  ;;  %v2033_v48 = vld [vmem:[%s4766_s0 + $0x788] sm:$0xff] }
  0x8d   :  { %977 = vmatprep.mubr.f32.mxu0 %v1928_v49  ;;  %v2030_v49 = vld [vmem:[%s4766_s0 + $0x770] sm:$0xff] }
  0x8f   :  { %653 = vmatmul.mubr.f32.gmra.mrb[38].mxu1 %v1925_v51  ;;  %v2032_v51 = vld [vmem:[%s4766_s0 + $0x780] sm:$0xff] }
  0x90   :  { %978 = vmatmul.mubr.f32.gmra.mrb[38].mxu0 %v1927_v44  ;;  %657 = vmatprep.mubr.f32.mxu1 %v1933_v52  ;;  %v2038_v44 = vld [vmem:[%s4766_s0 + $0x7b0] sm:$0xff]  ;;  %v2040_v52 = vld [vmem:[%s4766_s0 + $0x7c0] sm:$0xff] }
  0x91   :  { %982 = vmatprep.mubr.f32.mxu0 %v1935_v53  ;;  %v2037_v53 = vld [vmem:[%s4766_s0 + $0x7a8] sm:$0xff] }
  0x93   :  { %658 = vmatmul.mubr.f32.gmra.mrb[40].mxu1 %v1932_v54  ;;  %v2039_v54 = vld [vmem:[%s4766_s0 + $0x7b8] sm:$0xff] }
  0x94   :  { %983 = vmatmul.mubr.f32.gmra.mrb[40].mxu0 %v1934_v55  ;;  %662 = vmatprep.mubr.f32.mxu1 %v1940_v57  ;;  %v2045_v55 = vld [vmem:[%s4766_s0 + $0x7e8] sm:$0xff]  ;;  %v2047_v57 = vld [vmem:[%s4766_s0 + $0x7f8] sm:$0xff] }
  0x95   :  { %987 = vmatprep.mubr.f32.mxu0 %v1942_v8  ;;  %v2044_v8 = vld [vmem:[%s4766_s0 + $0x7e0] sm:$0xff] }
  0x97   :  { %663 = vmatmul.mubr.f32.gmra.mrb[42].mxu1 %v1939_v50  ;;  %v2046_v50 = vld [vmem:[%s4766_s0 + $0x7f0] sm:$0xff] }
  0x98   :  { %988 = vmatmul.mubr.f32.gmra.mrb[42].mxu0 %v1941_v60  ;;  %667 = vmatprep.mubr.f32.mxu1 %v1947_v61  ;;  %v2051_v60 = vld [vmem:[%s4766_s0 + $0x818] sm:$0xff]  ;;  %v2053_v61 = vld [vmem:[%s4766_s0 + $0x828] sm:$0xff] }
  0x99   :  { %992 = vmatprep.mubr.f32.mxu0 %v1949_v1  ;;  %v2059_v1 = vld [vmem:[%s4766_s0 + $0x858] sm:$0xff] }
  0x9b   :  { %668 = vmatmul.mubr.f32.gmra.mrb[44].mxu1 %v1946_v56  ;;  %v2061_v56 = vld [vmem:[%s4766_s0 + $0x868] sm:$0xff] }
  0x9c   :  { %993 = vmatmul.mubr.f32.gmra.mrb[44].mxu0 %v1948_v2  ;;  %672 = vmatprep.mubr.f32.mxu1 %v1954_v3  ;;  %v2058_v2 = vld [vmem:[%s4766_s0 + $0x850] sm:$0xff]  ;;  %v2060_v3 = vld [vmem:[%s4766_s0 + $0x860] sm:$0xff] }
  0x9d   :  { %997 = vmatprep.mubr.f32.mxu0 %v1956_v4  ;;  %v2066_v4 = vld [vmem:[%s4766_s0 + $0x890] sm:$0xff] }
  0x9f   :  { %673 = vmatmul.mubr.f32.gmra.mrb[46].mxu1 %v1953_v6  ;;  %v19_v6 = vld [vmem:[%s4766_s0 + $0x28] sm:$0xff] }
  0xa0   :  { %998 = vmatmul.mubr.f32.gmra.mrb[46].mxu0 %v1955_v12  ;;  %677 = vmatprep.mubr.f32.mxu1 %v1961_v7  ;;  %v2065_v12 = vld [vmem:[%s4766_s0 + $0x888] sm:$0xff]  ;;  %v18_v7 = vld [vmem:[%s4766_s0 + $0x20] sm:$0xff] }
  0xa1   :  { %1002 = vmatprep.mubr.f32.mxu0 %v1963_v62  ;;  %v2073_v62 = vld [vmem:[%s4766_s0 + $0x8c8] sm:$0xff] }
  0xa3   :  { %678 = vmatmul.mubr.f32.gmra.mrb[48].mxu1 %v1960_v9  ;;  %v26_v9 = vld [vmem:[%s4766_s0 + $0x60] sm:$0xff] }
  0xa4   :  { %1003 = vmatmul.mubr.f32.gmra.mrb[48].mxu0 %v1962_v10  ;;  %682 = vmatprep.mubr.f32.mxu1 %v1968_v11  ;;  %v2072_v10 = vld [vmem:[%s4766_s0 + $0x8c0] sm:$0xff]  ;;  %v25_v11 = vld [vmem:[%s4766_s0 + $0x58] sm:$0xff] }
  0xa5   :  { %1007 = vmatprep.mubr.f32.mxu0 %v1970_v14  ;;  %v2080_v14 = vld [vmem:[%s4766_s0 + $0x900] sm:$0xff] }
  0xa7   :  { %683 = vmatmul.mubr.f32.gmra.mrb[50].mxu1 %v1967_v15  ;;  %v33_v15 = vld [vmem:[%s4766_s0 + $0x98] sm:$0xff] }
  0xa8   :  { %1008 = vmatmul.mubr.f32.gmra.mrb[50].mxu0 %v1969_v18  ;;  %687 = vmatprep.mubr.f32.mxu1 %v1975_v5  ;;  %v2079_v18 = vld [vmem:[%s4766_s0 + $0x8f8] sm:$0xff]  ;;  %v32_v5 = vld [vmem:[%s4766_s0 + $0x90] sm:$0xff] }
  0xa9   :  { %1012 = vmatprep.mubr.f32.mxu0 %v1977_v16  ;;  %v2087_v16 = vld [vmem:[%s4766_s0 + $0x938] sm:$0xff] }
  0xab   :  { %688 = vmatmul.mubr.f32.gmra.mrb[52].mxu1 %v1974_v17  ;;  %v40_v17 = vld [vmem:[%s4766_s0 + $0xd0] sm:$0xff] }
  0xac   :  { %1013 = vmatmul.mubr.f32.gmra.mrb[52].mxu0 %v1976_v19  ;;  %692 = vmatprep.mubr.f32.mxu1 %v1982_v21  ;;  %v2086_v19 = vld [vmem:[%s4766_s0 + $0x930] sm:$0xff]  ;;  %v39_v21 = vld [vmem:[%s4766_s0 + $0xc8] sm:$0xff] }
  0xad   :  { %1017 = vmatprep.mubr.f32.mxu0 %v1984_v22  ;;  %v2094_v22 = vld [vmem:[%s4766_s0 + $0x970] sm:$0xff] }
  0xaf   :  { %693 = vmatmul.mubr.f32.gmra.mrb[54].mxu1 %v1981_v23  ;;  %v47_v23 = vld [vmem:[%s4766_s0 + $0x108] sm:$0xff] }
  0xb0   :  { %1018 = vmatmul.mubr.f32.gmra.mrb[54].mxu0 %v1983_v13  ;;  %697 = vmatprep.mubr.f32.mxu1 %v1989_v24  ;;  %v2093_v13 = vld [vmem:[%s4766_s0 + $0x968] sm:$0xff]  ;;  %v46_v24 = vld [vmem:[%s4766_s0 + $0x100] sm:$0xff] }
  0xb1   :  { %1022 = vmatprep.mubr.f32.mxu0 %v1991_v25  ;;  %v2101_v25 = vld [vmem:[%s4766_s0 + $0x9a8] sm:$0xff] }
  0xb3   :  { %698 = vmatmul.mubr.f32.gmra.mrb[56].mxu1 %v1988_v26  ;;  %v54_v26 = vld [vmem:[%s4766_s0 + $0x140] sm:$0xff] }
  0xb4   :  { %1023 = vmatmul.mubr.f32.gmra.mrb[56].mxu0 %v1990_v28  ;;  %702 = vmatprep.mubr.f32.mxu1 %v1996_v29  ;;  %v2100_v28 = vld [vmem:[%s4766_s0 + $0x9a0] sm:$0xff]  ;;  %v53_v29 = vld [vmem:[%s4766_s0 + $0x138] sm:$0xff] }
  0xb5   :  { %1027 = vmatprep.mubr.f32.mxu0 %v1998_v31  ;;  %v2108_v31 = vld [vmem:[%s4766_s0 + $0x9e0] sm:$0xff] }
  0xb7   :  { %703 = vmatmul.mubr.f32.gmra.mrb[58].mxu1 %v1995_v20  ;;  %v61_v20 = vld [vmem:[%s4766_s0 + $0x178] sm:$0xff] }
  0xb8   :  { %1028 = vmatmul.mubr.f32.gmra.mrb[58].mxu0 %v1997_v32  ;;  %707 = vmatprep.mubr.f32.mxu1 %v2003_v30  ;;  %v2107_v32 = vld [vmem:[%s4766_s0 + $0x9d8] sm:$0xff]  ;;  %v60_v30 = vld [vmem:[%s4766_s0 + $0x170] sm:$0xff] }
  0xb9   :  { %1032 = vmatprep.mubr.f32.mxu0 %v2005_v33  ;;  %v2115_v33 = vld [vmem:[%s4766_s0 + $0xa18] sm:$0xff] }
  0xbb   :  { %708 = vmatmul.mubr.f32.gmra.mrb[60].mxu1 %v2002_v35  ;;  %v68_v35 = vld [vmem:[%s4766_s0 + $0x1b0] sm:$0xff] }
  0xbc   :  { %1033 = vmatmul.mubr.f32.gmra.mrb[60].mxu0 %v2004_v37  ;;  %712 = vmatprep.mubr.f32.mxu1 %v2010_v38  ;;  %v2114_v37 = vld [vmem:[%s4766_s0 + $0xa10] sm:$0xff]  ;;  %v67_v38 = vld [vmem:[%s4766_s0 + $0x1a8] sm:$0xff] }
  0xbd   :  { %1037 = vmatprep.mubr.f32.mxu0 %v2012_v27  ;;  %v2122_v27 = vld [vmem:[%s4766_s0 + $0xa50] sm:$0xff] }
  0xbf   :  { %713 = vmatmul.mubr.f32.gmra.mrb[62].mxu1 %v2009_v39  ;;  %v75_v39 = vld [vmem:[%s4766_s0 + $0x1e8] sm:$0xff] }
  0xc0   :  { %1038 = vmatmul.mubr.f32.gmra.mrb[62].mxu0 %v2011_v40  ;;  %717 = vmatprep.mubr.f32.mxu1 %v2017_v36  ;;  %v2121_v40 = vld [vmem:[%s4766_s0 + $0xa48] sm:$0xff]  ;;  %v74_v36 = vld [vmem:[%s4766_s0 + $0x1e0] sm:$0xff] }
  0xc1   :  { %1042 = vmatprep.mubr.f32.mxu0 %v2019_v42  ;;  %v2129_v42 = vld [vmem:[%s4766_s0 + $0xa88] sm:$0xff] }
  0xc3   :  { %718 = vmatmul.mubr.f32.gmra.mrb[64].mxu1 %v2016_v0  ;;  %v82_v0 = vld [vmem:[%s4766_s0 + $0x220] sm:$0xff] }
  0xc4   :  { %1043 = vmatmul.mubr.f32.gmra.mrb[64].mxu0 %v2018_v34  ;;  %722 = vmatprep.mubr.f32.mxu1 %v2024_v43  ;;  %v2128_v34 = vld [vmem:[%s4766_s0 + $0xa80] sm:$0xff]  ;;  %v81_v43 = vld [vmem:[%s4766_s0 + $0x218] sm:$0xff] }
  0xc5   :  { %1047 = vmatprep.mubr.f32.mxu0 %v2026_v45  ;;  %v2136_v45 = vld [vmem:[%s4766_s0 + $0xac0] sm:$0xff] }
  0xc7   :  { %723 = vmatmul.mubr.f32.gmra.mrb[66].mxu1 %v2023_v41  ;;  %v89_v41 = vld [vmem:[%s4766_s0 + $0x258] sm:$0xff] }
  0xc8   :  { %1048 = vmatmul.mubr.f32.gmra.mrb[66].mxu0 %v2025_v46  ;;  %727 = vmatprep.mubr.f32.mxu1 %v2031_v47  ;;  %v2135_v46 = vld [vmem:[%s4766_s0 + $0xab8] sm:$0xff]  ;;  %v88_v47 = vld [vmem:[%s4766_s0 + $0x250] sm:$0xff] }
  0xc9   :  { %1052 = vmatprep.mubr.f32.mxu0 %v2033_v48  ;;  %v2143_v48 = vld [vmem:[%s4766_s0 + $0xaf8] sm:$0xff] }
  0xcb   :  { %728 = vmatmul.mubr.f32.gmra.mrb[68].mxu1 %v2030_v49  ;;  %v96_v49 = vld [vmem:[%s4766_s0 + $0x290] sm:$0xff] }
  0xcc   :  { %1053 = vmatmul.mubr.f32.gmra.mrb[68].mxu0 %v2032_v51  ;;  %732 = vmatprep.mubr.f32.mxu1 %v2038_v44  ;;  %v2142_v51 = vld [vmem:[%s4766_s0 + $0xaf0] sm:$0xff]  ;;  %v95_v44 = vld [vmem:[%s4766_s0 + $0x288] sm:$0xff] }
  0xcd   :  { %1057 = vmatprep.mubr.f32.mxu0 %v2040_v52  ;;  %v2150_v52 = vld [vmem:[%s4766_s0 + $0xb30] sm:$0xff] }
  0xcf   :  { %733 = vmatmul.mubr.f32.gmra.mrb[70].mxu1 %v2037_v53  ;;  %v103_v53 = vld [vmem:[%s4766_s0 + $0x2c8] sm:$0xff] }
  0xd0   :  { %1058 = vmatmul.mubr.f32.gmra.mrb[70].mxu0 %v2039_v54  ;;  %737 = vmatprep.mubr.f32.mxu1 %v2045_v55  ;;  %v2149_v54 = vld [vmem:[%s4766_s0 + $0xb28] sm:$0xff]  ;;  %v102_v55 = vld [vmem:[%s4766_s0 + $0x2c0] sm:$0xff] }
  0xd1   :  { %1062 = vmatprep.mubr.f32.mxu0 %v2047_v57  ;;  %v2068_v57 = vld [vmem:[%s4766_s0 + $0x8a0] sm:$0xff] }
  0xd3   :  { %738 = vmatmul.mubr.f32.gmra.mrb[72].mxu1 %v2044_v8  ;;  %v1888_v8 = vld [vmem:[%s4766_s0 + $0x300] sm:$0xff] }
  0xd4   :  { %1063 = vmatmul.mubr.f32.gmra.mrb[72].mxu0 %v2046_v50  ;;  %742 = vmatprep.mubr.f32.mxu1 %v2052_v58  ;;  %v479_v50 = vld [vmem:[%s4765_s1 + $0x310] sm:$0xff]  ;;  %v480_v58 = vld [vmem:[%s4765_s1 + $0x318] sm:$0xff] }
  0xd5   :  { %1067 = vmatprep.mubr.f32.mxu0 %v2054_v59  ;;  %v2067_v59 = vld [vmem:[%s4766_s0 + $0x898] sm:$0xff] }
  0xd7   :  { %743 = vmatmul.mubr.f32.gmra.mrb[74].mxu1 %v2051_v60  ;;  %v1887_v60 = vld [vmem:[%s4766_s0 + $0x2f8] sm:$0xff] }
  0xd8   :  { %1068 = vmatmul.mubr.f32.gmra.mrb[74].mxu0 %v2053_v61  ;;  %747 = vmatprep.mubr.f32.mxu1 %v2059_v1  ;;  %v2075_v61 = vld [vmem:[%s4766_s0 + $0x8d8] sm:$0xff] }
  0xd9   :  { %1072 = vmatprep.mubr.f32.mxu0 %v2061_v56  ;;  %v1895_v1 = vld [vmem:[%s4766_s0 + $0x338] sm:$0xff]  ;;  %v2483_v56 = vpack.c.bf16 %v480_v58, %v479_v50  ;;  %v1944_v58 = vld [vmem:[%s4766_s0 + $0x4c0] sm:$0xff] }
  0xdb   :  { %748 = vmatmul.mubr.f32.gmra.mrb[76].mxu1 %v2058_v2  ;;  %v481_v2 = vld [vmem:[%s4765_s1 + $0x320] sm:$0xff] }
  0xdc   :  { %1073 = vmatmul.mubr.f32.gmra.mrb[76].mxu0 %v2060_v3  ;;  %752 = vmatprep.mubr.f32.mxu1 %v2066_v4  ;;  %v482_v3 = vld [vmem:[%s4765_s1 + $0x328] sm:$0xff]  ;;  %v2074_v4 = vld [vmem:[%s4766_s0 + $0x8d0] sm:$0xff] }
  0xdd   :  { %1207 = vmatprep.mubr.f32.mxu0 %v19_v6  ;;  %v1894_v6 = vld [vmem:[%s4766_s0 + $0x330] sm:$0xff] }
  0xdf   :  { %753 = vmatmul.mubr.f32.gmra.mrb[78].mxu1 %v2065_v12  ;;  %v2082_v12 = vld [vmem:[%s4766_s0 + $0x910] sm:$0xff] }
  0xe0   :  { %1208 = vmatmul.mubr.f32.vlgmr.msra.gmra.mrb[0].mxu0 %v18_v7  ;;  %757 = vmatprep.mubr.f32.mxu1 %v2073_v62  ;;  %v2487_v62 = vpack.c.bf16 %v482_v3, %v481_v2  ;;  %v1951_v2 = vld [vmem:[%s4766_s0 + $0x4f8] sm:$0xff] }
  0xe1   :  { %1212 = vmatprep.mubr.f32.mxu0 %v26_v9 }
  0xe3   :  { %758 = vmatmul.mubr.f32.gmra.mrb[80].mxu1 %v2072_v10  ;;  %v483_v10 = vld [vmem:[%s4765_s1 + $0x330] sm:$0xff] }
  0xe4   :  { %1213 = vmatmul.mubr.f32.gmra.mrb[2].mxu0 %v25_v11  ;;  %762 = vmatprep.mubr.f32.mxu1 %v2080_v14  ;;  %v484_v11 = vld [vmem:[%s4765_s1 + $0x338] sm:$0xff]  ;;  %v2081_v14 = vld [vmem:[%s4766_s0 + $0x908] sm:$0xff] }
  0xe5   :  { %1217 = vmatprep.mubr.f32.mxu0 %v33_v15  ;;  %v1901_v15 = vld [vmem:[%s4766_s0 + $0x368] sm:$0xff] }
  0xe7   :  { %763 = vmatmul.mubr.f32.gmra.mrb[82].mxu1 %v2079_v18  ;;  %v2089_v18 = vld [vmem:[%s4766_s0 + $0x948] sm:$0xff] }
  0xe8   :  { %1218 = vmatmul.mubr.f32.gmra.mrb[4].mxu0 %v32_v5  ;;  %767 = vmatprep.mubr.f32.mxu1 %v2087_v16  ;;  %v1909_v16 = vld [vmem:[%s4766_s0 + $0x3a8] sm:$0xff] }
  0xe9   :  { %1222 = vmatprep.mubr.f32.mxu0 %v40_v17  ;;  %v2491_v17 = vpack.c.bf16 %v484_v11, %v483_v10  ;;  %v2137_v10 = vld [vmem:[%s4766_s0 + $0xac8] sm:$0xff] }
  0xea   :  { %v1957_v11 = vld [vmem:[%s4766_s0 + $0x528] sm:$0xff] }
  0xeb   :  { %768 = vmatmul.mubr.f32.gmra.mrb[84].mxu1 %v2086_v19 }
  0xec   :  { %1223 = vmatmul.mubr.f32.gmra.mrb[6].mxu0 %v39_v21  ;;  %772 = vmatprep.mubr.f32.mxu1 %v2094_v22  ;;  %v485_v21 = vld [vmem:[%s4765_s1 + $0x340] sm:$0xff]  ;;  %v486_v22 = vld [vmem:[%s4765_s1 + $0x348] sm:$0xff] }
  0xed   :  { %1227 = vmatprep.mubr.f32.mxu0 %v47_v23  ;;  %v2088_v23 = vld [vmem:[%s4766_s0 + $0x940] sm:$0xff] }
  0xef   :  { %773 = vmatmul.mubr.f32.gmra.mrb[86].mxu1 %v2093_v13  ;;  %v1908_v13 = vld [vmem:[%s4766_s0 + $0x3a0] sm:$0xff] }
  0xf0   :  { %1228 = vmatmul.mubr.f32.gmra.mrb[8].mxu0 %v46_v24  ;;  %777 = vmatprep.mubr.f32.mxu1 %v2101_v25  ;;  %v2096_v24 = vld [vmem:[%s4766_s0 + $0x980] sm:$0xff] }
  0xf1   :  { %1232 = vmatprep.mubr.f32.mxu0 %v54_v26  ;;  %v1916_v26 = vld [vmem:[%s4766_s0 + $0x3e0] sm:$0xff] }
  0xf3   :  { %778 = vmatmul.mubr.f32.gmra.mrb[88].mxu1 %v2100_v28  ;;  %v2495_v28 = vpack.c.bf16 %v486_v22, %v485_v21  ;;  %v2152_v21 = vld [vmem:[%s4766_s0 + $0xb40] sm:$0xff] }
  0xf4   :  { %1233 = vmatmul.mubr.f32.gmra.mrb[10].mxu0 %v53_v29  ;;  %782 = vmatprep.mubr.f32.mxu1 %v2108_v31  ;;  %v487_v31 = vld [vmem:[%s4765_s1 + $0x350] sm:$0xff] }
  0xf5   :  { %1237 = vmatprep.mubr.f32.mxu0 %v61_v20  ;;  %v488_v20 = vld [vmem:[%s4765_s1 + $0x358] sm:$0xff] }
  0xf7   :  { %783 = vmatmul.mubr.f32.gmra.mrb[90].mxu1 %v2107_v32  ;;  %v2095_v32 = vld [vmem:[%s4766_s0 + $0x978] sm:$0xff] }
  0xf8   :  { %1238 = vmatmul.mubr.f32.gmra.mrb[12].mxu0 %v60_v30  ;;  %787 = vmatprep.mubr.f32.mxu1 %v2115_v33  ;;  %v1915_v30 = vld [vmem:[%s4766_s0 + $0x3d8] sm:$0xff] }
  0xf9   :  { %1242 = vmatprep.mubr.f32.mxu0 %v68_v35  ;;  %v2103_v33 = vld [vmem:[%s4766_s0 + $0x9b8] sm:$0xff] }
  0xfb   :  { %788 = vmatmul.mubr.f32.gmra.mrb[92].mxu1 %v2114_v37  ;;  %v1923_v37 = vld [vmem:[%s4766_s0 + $0x418] sm:$0xff] }
  0xfc   :  { %1243 = vmatmul.mubr.f32.gmra.mrb[14].mxu0 %v67_v38  ;;  %792 = vmatprep.mubr.f32.mxu1 %v2122_v27  ;;  %v2499_v38 = vpack.c.bf16 %v488_v20, %v487_v31  ;;  %v1979_v31 = vld [vmem:[%s4766_s0 + $0x5d8] sm:$0xff] }
  0xfd   :  { %1247 = vmatprep.mubr.f32.mxu0 %v75_v39  ;;  %v489_v39 = vld [vmem:[%s4765_s1 + $0x360] sm:$0xff] }
  0xff   :  { %793 = vmatmul.mubr.f32.gmra.mrb[94].mxu1 %v2121_v40  ;;  %v490_v40 = vld [vmem:[%s4765_s1 + $0x368] sm:$0xff] }
 0x100   :  { %1248 = vmatmul.mubr.f32.gmra.mrb[16].mxu0 %v74_v36  ;;  %797 = vmatprep.mubr.f32.mxu1 %v2129_v42  ;;  %v2102_v36 = vld [vmem:[%s4766_s0 + $0x9b0] sm:$0xff] }
 0x101   :  { %1252 = vmatprep.mubr.f32.mxu0 %v82_v0  ;;  %v1922_v42 = vld [vmem:[%s4766_s0 + $0x410] sm:$0xff] }
 0x102   :  { %v2110_v0 = vld [vmem:[%s4766_s0 + $0x9f0] sm:$0xff] }
 0x103   :  { %798 = vmatmul.mubr.f32.gmra.mrb[96].mxu1 %v2128_v34 }
 0x104   :  { %1253 = vmatmul.mubr.f32.gmra.mrb[18].mxu0 %v81_v43  ;;  %802 = vmatprep.mubr.f32.mxu1 %v2136_v45  ;;  %v1930_v43 = vld [vmem:[%s4766_s0 + $0x450] sm:$0xff]  ;;  %v2503_v45 = vpack.c.bf16 %v490_v40, %v489_v39  ;;  %v41_v39 = vld [vmem:[%s4766_s0 + $0xd8] sm:$0xff]  ;;  %v1985_v40 = vld [vmem:[%s4766_s0 + $0x608] sm:$0xff] }
 0x105   :  { %1257 = vmatprep.mubr.f32.mxu0 %v89_v41 }
 0x107   :  { %803 = vmatmul.mubr.f32.gmra.mrb[98].mxu1 %v2135_v46  ;;  %v491_v46 = vld [vmem:[%s4765_s1 + $0x370] sm:$0xff] }
 0x108   :  { %1258 = vmatmul.mubr.f32.gmra.mrb[20].mxu0 %v88_v47  ;;  %807 = vmatprep.mubr.f32.mxu1 %v2143_v48  ;;  %v492_v47 = vld [vmem:[%s4765_s1 + $0x378] sm:$0xff]  ;;  %v2109_v48 = vld [vmem:[%s4766_s0 + $0x9e8] sm:$0xff] }
 0x109   :  { %1262 = vmatprep.mubr.f32.mxu0 %v96_v49  ;;  %v1929_v49 = vld [vmem:[%s4766_s0 + $0x448] sm:$0xff] }
 0x10b   :  { %808 = vmatmul.mubr.f32.gmra.mrb[100].mxu1 %v2142_v51  ;;  %v2117_v51 = vld [vmem:[%s4766_s0 + $0xa28] sm:$0xff] }
 0x10c   :  { %1263 = vmatmul.mubr.f32.gmra.mrb[22].mxu0 %v95_v44  ;;  %812 = vmatprep.mubr.f32.mxu1 %v2150_v52  ;;  %v1937_v52 = vld [vmem:[%s4766_s0 + $0x488] sm:$0xff] }
 0x10d   :  { %1267 = vmatprep.mubr.f32.mxu0 %v103_v53  ;;  %v2507_v53 = vpack.c.bf16 %v492_v47, %v491_v46  ;;  %v62_v46 = vld [vmem:[%s4766_s0 + $0x180] sm:$0xff] }
 0x10f   :  { %813 = vmatmul.mubr.f32.gmra.mrb[102].mxu1 %v2149_v54 }
 0x110   :  { %1268 = vmatmul.mubr.f32.gmra.mrb[24].mxu0 %v102_v55  ;;  %1077 = vmatprep.mubr.f32.mxu1 %v2068_v57  ;;  %v2116_v55 = vld [vmem:[%s4766_s0 + $0xa20] sm:$0xff] }
 0x111   :  { %1272 = vmatprep.mubr.f32.mxu0 %v1888_v8  ;;  %v1936_v57 = vld [vmem:[%s4766_s0 + $0x480] sm:$0xff] }
 0x112   :  { %v2124_v8 = vld [vmem:[%s4766_s0 + $0xa60] sm:$0xff] }
 0x113   :  { %1078 = vmatmul.mubr.f32.vlgmr.msra.gmra.mrb[78].mxu1 %v2067_v59 }
 0x114   :  { %1273 = vmatmul.mubr.f32.gmra.mrb[26].mxu0 %v1887_v60  ;;  %2482 = vmatpush3.bf16.msra.mxu1 %v3410_v63  ;;  %v1902_v63 = vld [vmem:[%s4766_s0 + $0x370] sm:$0xff]  ;;  %v2123_v60 = vld [vmem:[%s4766_s0 + $0xa58] sm:$0xff] }
 0x115   :  { %1082 = vmatprep.mubr.f32.mxu1 %v2075_v61  ;;  %1277 = vmatprep.mubr.f32.mxu0 %v1895_v1  ;;  %v1943_v61 = vld [vmem:[%s4766_s0 + $0x4b8] sm:$0xff] }
 0x116   :  { %v3810_v7 = vpop.f32.mrb[0].mxu1  ;;  %2484 = vmatprep.subr.bf16.mxu1 %v2483_v56  ;;  %v2131_v1 = vld [vmem:[%s4766_s0 + $0xa98] sm:$0xff] }
 0x117   :  { %1083 = vmatmul.mubr.f32.gmra.mrb[80].mxu1 %v2074_v4  ;;  %v561_v9 = vpop.f32.mrb[1].mxu1  ;;  %v2130_v4 = vld [vmem:[%s4766_s0 + $0xa90] sm:$0xff] }
 0x118   :  { %1278 = vmatmul.mubr.f32.gmra.mrb[28].mxu0 %v1894_v6  ;;  %1087 = vmatprep.mubr.f32.mxu1 %v2082_v12  ;;  %v1950_v6 = vld [vmem:[%s4766_s0 + $0x4f0] sm:$0xff] }
 0x119   :  { %1282 = vmatprep.mubr.f32.mxu0 %v1902_v63  ;;  %2486 = vmatpush3.bf16.msra.mxu1 %v2483_v56  ;;  %v2138_v12 = vld [vmem:[%s4766_s0 + $0xad0] sm:$0xff] }
 0x11a   :  { %v3830_v5 = vpop.f32.mrb[2].mxu1  ;;  %2488 = vmatprep.subr.bf16.mxu1 %v2487_v62 }
 0x11b   :  { %1088 = vmatmul.mubr.f32.gmra.mrb[82].mxu1 %v2081_v14  ;;  %v566_v19 = vpop.f32.mrb[3].mxu1  ;;  %v2145_v14 = vld [vmem:[%s4766_s0 + $0xb08] sm:$0xff] }
 0x11c   :  { %1283 = vmatmul.mubr.f32.gmra.mrb[30].mxu0 %v1901_v15  ;;  %1092 = vmatprep.mubr.f32.mxu1 %v2089_v18  ;;  %v1965_v18 = vld [vmem:[%s4766_s0 + $0x568] sm:$0xff]  ;;  %v1964_v19 = vld [vmem:[%s4766_s0 + $0x560] sm:$0xff] }
 0x11d   :  { %1287 = vmatprep.mubr.f32.mxu0 %v1909_v16  ;;  %2490 = vmatpush3.bf16.msra.mxu1 %v2487_v62  ;;  %v1958_v62 = vld [vmem:[%s4766_s0 + $0x530] sm:$0xff] }
 0x11e   :  { %v3850_v25 = vpop.f32.mrb[4].mxu1  ;;  %2492 = vmatprep.subr.bf16.mxu1 %v2491_v17 }
 0x11f   :  { %1093 = vmatmul.mubr.f32.gmra.mrb[84].mxu1 %v2088_v23  ;;  %v571_v29 = vpop.f32.mrb[5].mxu1  ;;  %v1972_v23 = vld [vmem:[%s4766_s0 + $0x5a0] sm:$0xff] }
 0x120   :  { %1288 = vmatmul.mubr.f32.gmra.mrb[32].mxu0 %v1908_v13  ;;  %1097 = vmatprep.mubr.f32.mxu1 %v2096_v24  ;;  %v2151_v24 = vld [vmem:[%s4766_s0 + $0xb38] sm:$0xff] }
 0x121   :  { %1292 = vmatprep.mubr.f32.mxu0 %v1916_v26  ;;  %2494 = vmatpush3.bf16.msra.mxu1 %v2491_v17  ;;  %v2144_v17 = vld [vmem:[%s4766_s0 + $0xb00] sm:$0xff]  ;;  %v1971_v26 = vld [vmem:[%s4766_s0 + $0x598] sm:$0xff] }
 0x122   :  { %v3870_v35 = vpop.f32.mrb[6].mxu1  ;;  %2496 = vmatprep.subr.bf16.mxu1 %v2495_v28 }
 0x123   :  { %1098 = vmatmul.mubr.f32.gmra.mrb[86].mxu1 %v2095_v32  ;;  %v576_v27 = vpop.f32.mrb[7].mxu1  ;;  %v27_v32 = vld [vmem:[%s4766_s0 + $0x68] sm:$0xff] }
 0x124   :  { %1293 = vmatmul.mubr.f32.gmra.mrb[34].mxu0 %v1915_v30  ;;  %1102 = vmatprep.mubr.f32.mxu1 %v2103_v33  ;;  %v1978_v30 = vld [vmem:[%s4766_s0 + $0x5d0] sm:$0xff]  ;;  %v34_v33 = vld [vmem:[%s4766_s0 + $0xa0] sm:$0xff] }
 0x125   :  { %1297 = vmatprep.mubr.f32.mxu0 %v1923_v37  ;;  %2498 = vmatpush3.bf16.msra.mxu1 %v2495_v28  ;;  %v20_v28 = vld [vmem:[%s4766_s0 + $0x30] sm:$0xff] }
 0x126   :  { %v3890_v34 = vpop.f32.mrb[8].mxu1  ;;  %2500 = vmatprep.subr.bf16.mxu1 %v2499_v38 }
 0x127   :  { %1103 = vmatmul.mubr.f32.gmra.mrb[88].mxu1 %v2102_v36  ;;  %v581_v41 = vpop.f32.mrb[9].mxu1  ;;  %v48_v36 = vld [vmem:[%s4766_s0 + $0x110] sm:$0xff] }
 0x128   :  { %1298 = vmatmul.mubr.f32.gmra.mrb[36].mxu0 %v1922_v42  ;;  %1107 = vmatprep.mubr.f32.mxu1 %v2110_v0  ;;  %v1993_v0 = vld [vmem:[%s4766_s0 + $0x648] sm:$0xff]  ;;  %v1992_v41 = vld [vmem:[%s4766_s0 + $0x640] sm:$0xff] }
 0x129   :  { %1302 = vmatprep.mubr.f32.mxu0 %v1930_v43  ;;  %2502 = vmatpush3.bf16.msra.mxu1 %v2499_v38  ;;  %v1986_v38 = vld [vmem:[%s4766_s0 + $0x610] sm:$0xff] }
 0x12a   :  { %v3910_v44 = vpop.f32.mrb[10].mxu1  ;;  %2504 = vmatprep.subr.bf16.mxu1 %v2503_v45 }
 0x12b   :  { %1108 = vmatmul.mubr.f32.gmra.mrb[90].mxu1 %v2109_v48  ;;  %v586_v54 = vpop.f32.mrb[11].mxu1  ;;  %v2000_v48 = vld [vmem:[%s4766_s0 + $0x680] sm:$0xff] }
 0x12c   :  { %1303 = vmatmul.mubr.f32.gmra.mrb[38].mxu0 %v1929_v49  ;;  %1112 = vmatprep.mubr.f32.mxu1 %v2117_v51  ;;  %v69_v51 = vld [vmem:[%s4766_s0 + $0x1b8] sm:$0xff] }
 0x12d   :  { %1307 = vmatprep.mubr.f32.mxu0 %v1937_v52  ;;  %2506 = vmatpush3.bf16.msra.mxu1 %v2503_v45  ;;  %v55_v45 = vld [vmem:[%s4766_s0 + $0x148] sm:$0xff]  ;;  %v1999_v52 = vld [vmem:[%s4766_s0 + $0x678] sm:$0xff] }
 0x12e   :  { %v3924_v50 = vpop.f32.mrb[12].mxu1  ;;  %2508 = vmatprep.subr.bf16.mxu1 %v2507_v53 }
 0x12f   :  { %1113 = vmatmul.mubr.f32.gmra.mrb[92].mxu1 %v2116_v55  ;;  %v591_v59 = vpop.f32.mrb[13].mxu1  ;;  %v2007_v55 = vld [vmem:[%s4766_s0 + $0x6b8] sm:$0xff] }
 0x130   :  { %1308 = vmatmul.mubr.f32.gmra.mrb[40].mxu0 %v1936_v57  ;;  %1117 = vmatprep.mubr.f32.mxu1 %v2124_v8  ;;  %v83_v8 = vld [vmem:[%s4766_s0 + $0x228] sm:$0xff]  ;;  %v90_v59 = vld [vmem:[%s4766_s0 + $0x260] sm:$0xff] }
 0x131   :  { %1312 = vmatprep.mubr.f32.mxu0 %v1944_v58  ;;  %2510 = vmatpush3.bf16.msra.mxu1 %v2507_v53  ;;  %v76_v53 = vld [vmem:[%s4766_s0 + $0x1f0] sm:$0xff] }
 0x132   :  { %v3938_v56 = vpop.f32.mrb[14].mxu1  ;;  %v2006_v58 = vld [vmem:[%s4766_s0 + $0x6b0] sm:$0xff] }
 0x133   :  { %1118 = vmatmul.mubr.f32.gmra.mrb[94].mxu1 %v2123_v60  ;;  %v596_v3 = vpop.f32.mrb[15].mxu1 }
 0x134   :  { %1313 = vmatmul.mubr.f32.gmra.mrb[42].mxu0 %v1943_v61  ;;  %1122 = vmatprep.mubr.f32.mxu1 %v2131_v1  ;;  %v2014_v61 = vld [vmem:[%s4766_s0 + $0x6f0] sm:$0xff]  ;;  %v2013_v3 = vld [vmem:[%s4766_s0 + $0x6e8] sm:$0xff] }
 0x135   :  { %1317 = vmatprep.mubr.f32.mxu0 %v1951_v2  ;;  %v97_v2 = vld [vmem:[%s4766_s0 + $0x298] sm:$0xff] }
 0x136   :  { %v3952_v63 = vpop.f32.mrb[16].mxu1 }
 0x137   :  { %1123 = vmatmul.mubr.f32.gmra.mrb[96].mxu1 %v2130_v4  ;;  %v601_v9 = vpop.f32.mrb[17].mxu1  ;;  %v104_v4 = vld [vmem:[%s4766_s0 + $0x2d0] sm:$0xff] }
 0x138   :  { %1318 = vmatmul.mubr.f32.gmra.mrb[44].mxu0 %v1950_v6  ;;  %1127 = vmatprep.mubr.f32.mxu1 %v2138_v12  ;;  %v2021_v12 = vld [vmem:[%s4766_s0 + $0x728] sm:$0xff] }
 0x139   :  { %1322 = vmatprep.mubr.f32.mxu0 %v1958_v62  ;;  %v1889_v9 = vld [vmem:[%s4766_s0 + $0x308] sm:$0xff] }
 0x13a   :  { %v3966_v15 = vpop.f32.mrb[18].mxu1 }
 0x13b   :  { %1128 = vmatmul.mubr.f32.gmra.mrb[98].mxu1 %v2137_v10  ;;  %v606_v16 = vpop.f32.mrb[19].mxu1  ;;  %v2020_v10 = vld [vmem:[%s4766_s0 + $0x720] sm:$0xff] }
 0x13c   :  { %1323 = vmatmul.mubr.f32.gmra.mrb[46].mxu0 %v1957_v11  ;;  %1132 = vmatprep.mubr.f32.mxu1 %v2145_v14  ;;  %v1896_v11 = vld [vmem:[%s4766_s0 + $0x340] sm:$0xff] }
 0x13d   :  { %1327 = vmatprep.mubr.f32.mxu0 %v1965_v18  ;;  %v2028_v18 = vld [vmem:[%s4766_s0 + $0x760] sm:$0xff] }
 0x13e   :  { %v3980_v22 = vpop.f32.mrb[20].mxu1 }
 0x13f   :  { %1133 = vmatmul.mubr.f32.gmra.mrb[100].mxu1 %v2144_v17  ;;  %v611_v13 = vpop.f32.mrb[21].mxu1  ;;  %v1903_v17 = vld [vmem:[%s4766_s0 + $0x378] sm:$0xff] }
 0x140   :  { %1328 = vmatmul.mubr.f32.gmra.mrb[48].mxu0 %v1964_v19  ;;  %1137 = vmatprep.mubr.f32.mxu1 %v2152_v21  ;;  %v2027_v19 = vld [vmem:[%s4766_s0 + $0x758] sm:$0xff]  ;;  %v1910_v21 = vld [vmem:[%s4766_s0 + $0x3b0] sm:$0xff] }
 0x141   :  { %1332 = vmatprep.mubr.f32.mxu0 %v1972_v23  ;;  %v2035_v13 = vld [vmem:[%s4766_s0 + $0x798] sm:$0xff] }
 0x142   :  { %v3994_v29 = vpop.f32.mrb[22].mxu1 }
 0x143   :  { %1138 = vmatmul.mubr.f32.gmra.mrb[102].mxu1 %v2151_v24  ;;  %v616_v20 = vpop.f32.mrb[23].mxu1 }
 0x144   :  { %1333 = vmatmul.mubr.f32.gmra.mrb[50].mxu0 %v1971_v26  ;;  %2257 = vmatprep.mubr.f32.mxu1 %v20_v28  ;;  %v1917_v26 = vld [vmem:[%s4766_s0 + $0x3e8] sm:$0xff]  ;;  %v2034_v28 = vld [vmem:[%s4766_s0 + $0x790] sm:$0xff] }
 0x145   :  { %1337 = vmatprep.mubr.f32.mxu0 %v1979_v31  ;;  %v1924_v31 = vld [vmem:[%s4766_s0 + $0x420] sm:$0xff] }
 0x146   :  { %v4008_v37 = vpop.f32.mrb[24].mxu1 }
 0x147   :  { %2258 = vmatmul.mubr.f32.vlgmr.msra.gmra.mrb[104].mxu1 %v27_v32  ;;  %v621_v27 = vpop.f32.mrb[25].mxu1  ;;  %v2042_v32 = vld [vmem:[%s4766_s0 + $0x7d0] sm:$0xff] }
 0x148   :  { %1338 = vmatmul.mubr.f32.gmra.mrb[52].mxu0 %v1978_v30  ;;  %2260 = vmatprep.mubr.f32.mxu1 %v34_v33  ;;  %v1931_v33 = vld [vmem:[%s4766_s0 + $0x458] sm:$0xff]  ;;  %v1938_v27 = vld [vmem:[%s4766_s0 + $0x490] sm:$0xff] }
 0x149   :  { %1342 = vmatprep.mubr.f32.mxu0 %v1986_v38  ;;  %v2041_v38 = vld [vmem:[%s4766_s0 + $0x7c8] sm:$0xff] }
 0x14a   :  { %v4022_v42 = vpop.f32.mrb[26].mxu1 }
 0x14b   :  { %2261 = vmatmul.mubr.f32.gmra.mrb[106].mxu1 %v41_v39  ;;  %v626_v43 = vpop.f32.mrb[27].mxu1 }
 0x14c   :  { %1343 = vmatmul.mubr.f32.gmra.mrb[54].mxu0 %v1985_v40  ;;  %2263 = vmatprep.mubr.f32.mxu1 %v48_v36  ;;  %v2049_v40 = vld [vmem:[%s4766_s0 + $0x808] sm:$0xff]  ;;  %v2048_v43 = vld [vmem:[%s4766_s0 + $0x800] sm:$0xff] }
 0x14d   :  { %1347 = vmatprep.mubr.f32.mxu0 %v1993_v0  ;;  %v1945_v0 = vld [vmem:[%s4766_s0 + $0x4c8] sm:$0xff] }
 0x14e   :  { %v4036_v47 = vpop.f32.mrb[28].mxu1 }
 0x14f   :  { %2264 = vmatmul.mubr.f32.gmra.mrb[108].mxu1 %v55_v45  ;;  %v631_v49 = vpop.f32.mrb[29].mxu1  ;;  %v1952_v45 = vld [vmem:[%s4766_s0 + $0x500] sm:$0xff] }
 0x150   :  { %1348 = vmatmul.mubr.f32.gmra.mrb[56].mxu0 %v1992_v41  ;;  %2266 = vmatprep.mubr.f32.mxu1 %v62_v46  ;;  %v2056_v46 = vld [vmem:[%s4766_s0 + $0x840] sm:$0xff]  ;;  %v1959_v49 = vld [vmem:[%s4766_s0 + $0x538] sm:$0xff] }
 0x151   :  { %1352 = vmatprep.mubr.f32.mxu0 %v2000_v48 }
 0x152   :  { %v4050_v54 = vpop.f32.mrb[30].mxu1 }
 0x153   :  { %2267 = vmatmul.mubr.f32.gmra.mrb[110].mxu1 %v69_v51  ;;  %v636_v57 = vpop.f32.mrb[31].mxu1  ;;  %v2055_v51 = vld [vmem:[%s4766_s0 + $0x838] sm:$0xff] }
 0x154   :  { %1353 = vmatmul.mubr.f32.gmra.mrb[58].mxu0 %v1999_v52  ;;  %2269 = vmatprep.mubr.f32.mxu1 %v76_v53  ;;  %v1966_v52 = vld [vmem:[%s4766_s0 + $0x570] sm:$0xff] }
 0x155   :  { %1357 = vmatprep.mubr.f32.mxu0 %v2007_v55  ;;  %v2063_v55 = vld [vmem:[%s4766_s0 + $0x878] sm:$0xff] }
 0x156   :  { %v4064_v60 = vpop.f32.mrb[32].mxu1 }
 0x157   :  { %2270 = vmatmul.mubr.f32.gmra.mrb[112].mxu1 %v83_v8  ;;  %v641_v1 = vpop.f32.mrb[33].mxu1  ;;  %v1973_v8 = vld [vmem:[%s4766_s0 + $0x5a8] sm:$0xff] }
 0x158   :  { %1358 = vmatmul.mubr.f32.gmra.mrb[60].mxu0 %v2006_v58  ;;  %2272 = vmatprep.mubr.f32.mxu1 %v90_v59  ;;  %v2062_v58 = vld [vmem:[%s4766_s0 + $0x870] sm:$0xff]  ;;  %v1980_v59 = vld [vmem:[%s4766_s0 + $0x5e0] sm:$0xff] }
 0x159   :  { %1362 = vmatprep.mubr.f32.mxu0 %v2014_v61  ;;  %v2070_v1 = vld [vmem:[%s4766_s0 + $0x8b0] sm:$0xff] }
 0x15a   :  { %v4078_v6 = vpop.f32.mrb[34].mxu1 }
 0x15b   :  { %2273 = vmatmul.mubr.f32.gmra.mrb[114].mxu1 %v97_v2  ;;  %v646_v62 = vpop.f32.mrb[35].mxu1 }
 0x15c   :  { %1363 = vmatmul.mubr.f32.gmra.mrb[62].mxu0 %v2013_v3  ;;  %2275 = vmatprep.mubr.f32.mxu1 %v104_v4  ;;  %v1987_v3 = vld [vmem:[%s4766_s0 + $0x618] sm:$0xff]  ;;  %v2069_v4 = vld [vmem:[%s4766_s0 + $0x8a8] sm:$0xff] }
 0x15d   :  { %1367 = vmatprep.mubr.f32.mxu0 %v2021_v12  ;;  %v1994_v12 = vld [vmem:[%s4766_s0 + $0x650] sm:$0xff] }
 0x15e   :  { %v4092_v14 = vpop.f32.mrb[36].mxu1 }
 0x15f   :  { %2276 = vmatmul.mubr.f32.gmra.mrb[116].mxu1 %v1889_v9  ;;  %v651_v16 = vpop.f32.mrb[37].mxu1  ;;  %v2077_v9 = vld [vmem:[%s4766_s0 + $0x8e8] sm:$0xff] }
 0x160   :  { %1368 = vmatmul.mubr.f32.gmra.mrb[64].mxu0 %v2020_v10  ;;  %2278 = vmatprep.mubr.f32.mxu1 %v1896_v11  ;;  %v2001_v11 = vld [vmem:[%s4766_s0 + $0x688] sm:$0xff]  ;;  %v2008_v16 = vld [vmem:[%s4766_s0 + $0x6c0] sm:$0xff] }
 0x161   :  { %1372 = vmatprep.mubr.f32.mxu0 %v2028_v18  ;;  %v2076_v18 = vld [vmem:[%s4766_s0 + $0x8e0] sm:$0xff] }
 0x162   :  { %v4106_v23 = vpop.f32.mrb[38].mxu1 }
 0x163   :  { %2279 = vmatmul.mubr.f32.gmra.mrb[118].mxu1 %v1903_v17  ;;  %v656_v24 = vpop.f32.mrb[39].mxu1 }
 0x164   :  { %1373 = vmatmul.mubr.f32.gmra.mrb[66].mxu0 %v2027_v19  ;;  %2281 = vmatprep.mubr.f32.mxu1 %v1910_v21  ;;  %v2084_v19 = vld [vmem:[%s4766_s0 + $0x920] sm:$0xff]  ;;  %v2083_v24 = vld [vmem:[%s4766_s0 + $0x918] sm:$0xff] }
 0x165   :  { %1377 = vmatprep.mubr.f32.mxu0 %v2035_v13  ;;  %v2015_v13 = vld [vmem:[%s4766_s0 + $0x6f8] sm:$0xff] }
 0x166   :  { %v4120_v20 = vpop.f32.mrb[40].mxu1 }
 0x167   :  { %2282 = vmatmul.mubr.f32.gmra.mrb[120].mxu1 %v1917_v26  ;;  %v661_v30 = vpop.f32.mrb[41].mxu1  ;;  %v2022_v26 = vld [vmem:[%s4766_s0 + $0x730] sm:$0xff] }
 0x168   :  { %1378 = vmatmul.mubr.f32.gmra.mrb[68].mxu0 %v2034_v28  ;;  %2284 = vmatprep.mubr.f32.mxu1 %v1924_v31  ;;  %v2091_v31 = vld [vmem:[%s4766_s0 + $0x958] sm:$0xff]  ;;  %v2029_v30 = vld [vmem:[%s4766_s0 + $0x768] sm:$0xff] }
 0x169   :  { %1382 = vmatprep.mubr.f32.mxu0 %v2042_v32 }
 0x16a   :  { %v4134_v39 = vpop.f32.mrb[42].mxu1 }
 0x16b   :  { %2285 = vmatmul.mubr.f32.gmra.mrb[122].mxu1 %v1931_v33  ;;  %v666_v36 = vpop.f32.mrb[43].mxu1  ;;  %v2090_v33 = vld [vmem:[%s4766_s0 + $0x950] sm:$0xff] }
 0x16c   :  { %1383 = vmatmul.mubr.f32.gmra.mrb[70].mxu0 %v2041_v38  ;;  %2287 = vmatprep.mubr.f32.mxu1 %v1938_v27  ;;  %v2036_v38 = vld [vmem:[%s4766_s0 + $0x7a0] sm:$0xff] }
 0x16d   :  { %1387 = vmatprep.mubr.f32.mxu0 %v2049_v40  ;;  %v2098_v40 = vld [vmem:[%s4766_s0 + $0x990] sm:$0xff] }
 0x16e   :  { %v4148_v41 = vpop.f32.mrb[44].mxu1 }
 0x16f   :  { %2288 = vmatmul.mubr.f32.gmra.mrb[124].mxu1 %v1945_v0  ;;  %v671_v48 = vpop.f32.mrb[45].mxu1  ;;  %v2043_v0 = vld [vmem:[%s4766_s0 + $0x7d8] sm:$0xff] }
 0x170   :  { %1388 = vmatmul.mubr.f32.gmra.mrb[72].mxu0 %v2048_v43  ;;  %2290 = vmatprep.mubr.f32.mxu1 %v1952_v45  ;;  %v2097_v43 = vld [vmem:[%s4766_s0 + $0x988] sm:$0xff]  ;;  %v2050_v45 = vld [vmem:[%s4766_s0 + $0x810] sm:$0xff] }
 0x171   :  { %1392 = vmatprep.mubr.f32.mxu0 %v2056_v46  ;;  %v2105_v48 = vld [vmem:[%s4766_s0 + $0x9c8] sm:$0xff] }
 0x172   :  { %v4162_v53 = vpop.f32.mrb[46].mxu1 }
 0x173   :  { %2291 = vmatmul.mubr.f32.gmra.mrb[126].mxu1 %v1959_v49  ;;  %v676_v57 = vpop.f32.mrb[47].mxu1 }
 0x174   :  { %1393 = vmatmul.mubr.f32.gmra.mrb[74].mxu0 %v2055_v51  ;;  %2293 = vmatprep.mubr.f32.mxu1 %v1966_v52  ;;  %v2057_v51 = vld [vmem:[%s4766_s0 + $0x848] sm:$0xff]  ;;  %v2104_v52 = vld [vmem:[%s4766_s0 + $0x9c0] sm:$0xff] }
 0x175   :  { %1397 = vmatprep.mubr.f32.mxu0 %v2063_v55  ;;  %v2064_v55 = vld [vmem:[%s4766_s0 + $0x880] sm:$0xff] }
 0x176   :  { %v4176_v61 = vpop.f32.mrb[48].mxu1 }
 0x177   :  { %2294 = vmatmul.mubr.f32.gmra.mrb[128].mxu1 %v1973_v8  ;;  %v681_v2 = vpop.f32.mrb[49].mxu1  ;;  %v2112_v8 = vld [vmem:[%s4766_s0 + $0xa00] sm:$0xff] }
 0x178   :  { %1398 = vmatmul.mubr.f32.gmra.mrb[76].mxu0 %v2062_v58  ;;  %2296 = vmatprep.mubr.f32.mxu1 %v1980_v59  ;;  %v2071_v59 = vld [vmem:[%s4766_s0 + $0x8b8] sm:$0xff]  ;;  %v2078_v2 = vld [vmem:[%s4766_s0 + $0x8f0] sm:$0xff] }
 0x179   :  { %1402 = vmatprep.mubr.f32.mxu0 %v2070_v1  ;;  %v2111_v1 = vld [vmem:[%s4766_s0 + $0x9f8] sm:$0xff] }
 0x17a   :  { %v4190_v62 = vpop.f32.mrb[50].mxu1 }
 0x17b   :  { %2297 = vmatmul.mubr.f32.gmra.mrb[130].mxu1 %v1987_v3  ;;  %v686_v10 = vpop.f32.mrb[51].mxu1 }
 0x17c   :  { %1403 = vmatmul.mubr.f32.gmra.mrb[78].mxu0 %v2069_v4  ;;  %2299 = vmatprep.mubr.f32.mxu1 %v1994_v12  ;;  %v2119_v4 = vld [vmem:[%s4766_s0 + $0xa38] sm:$0xff]  ;;  %v2118_v10 = vld [vmem:[%s4766_s0 + $0xa30] sm:$0xff] }
 0x17d   :  { %1407 = vmatprep.mubr.f32.mxu0 %v2077_v9  ;;  %v2085_v9 = vld [vmem:[%s4766_s0 + $0x928] sm:$0xff] }
 0x17e   :  { %v4204_v17 = vpop.f32.mrb[52].mxu1 }
 0x17f   :  { %2300 = vmatmul.mubr.f32.gmra.mrb[132].mxu1 %v2001_v11  ;;  %v691_v21 = vpop.f32.mrb[53].mxu1  ;;  %v2092_v11 = vld [vmem:[%s4766_s0 + $0x960] sm:$0xff] }
 0x180   :  { %1408 = vmatmul.mubr.f32.gmra.mrb[80].mxu0 %v2076_v18  ;;  %2302 = vmatprep.mubr.f32.mxu1 %v2008_v16  ;;  %v2126_v16 = vld [vmem:[%s4766_s0 + $0xa70] sm:$0xff]  ;;  %v2099_v21 = vld [vmem:[%s4766_s0 + $0x998] sm:$0xff] }
 0x181   :  { %1412 = vmatprep.mubr.f32.mxu0 %v2084_v19 }
 0x182   :  { %v4218_v28 = vpop.f32.mrb[54].mxu1 }
 0x183   :  { %2303 = vmatmul.mubr.f32.gmra.mrb[134].mxu1 %v2015_v13  ;;  %v696_v32 = vpop.f32.mrb[55].mxu1  ;;  %v2125_v13 = vld [vmem:[%s4766_s0 + $0xa68] sm:$0xff] }
 0x184   :  { %1413 = vmatmul.mubr.f32.gmra.mrb[82].mxu0 %v2083_v24  ;;  %2305 = vmatprep.mubr.f32.mxu1 %v2022_v26  ;;  %v2106_v24 = vld [vmem:[%s4766_s0 + $0x9d0] sm:$0xff] }
 0x185   :  { %1417 = vmatprep.mubr.f32.mxu0 %v2091_v31  ;;  %v2133_v31 = vld [vmem:[%s4766_s0 + $0xaa8] sm:$0xff] }
 0x186   :  { %v4232_v27 = vpop.f32.mrb[56].mxu1 }
 0x187   :  { %2306 = vmatmul.mubr.f32.gmra.mrb[136].mxu1 %v2029_v30  ;;  %v701_v36 = vpop.f32.mrb[57].mxu1  ;;  %v2113_v30 = vld [vmem:[%s4766_s0 + $0xa08] sm:$0xff] }
 0x188   :  { %1418 = vmatmul.mubr.f32.gmra.mrb[84].mxu0 %v2090_v33  ;;  %2308 = vmatprep.mubr.f32.mxu1 %v2036_v38  ;;  %v2132_v33 = vld [vmem:[%s4766_s0 + $0xaa0] sm:$0xff] }
 0x189   :  { %1422 = vmatprep.mubr.f32.mxu0 %v2098_v40  ;;  %v2120_v38 = vld [vmem:[%s4766_s0 + $0xa40] sm:$0xff] }
 0x18a   :  { %v4246_v46 = vpop.f32.mrb[58].mxu1  ;;  %v2140_v36 = vld [vmem:[%s4766_s0 + $0xae0] sm:$0xff] }
 0x18b   :  { %2309 = vmatmul.mubr.f32.gmra.mrb[138].mxu1 %v2043_v0  ;;  %v706_v49 = vpop.f32.mrb[59].mxu1 }
 0x18c   :  { %1423 = vmatmul.mubr.f32.gmra.mrb[86].mxu0 %v2097_v43  ;;  %2311 = vmatprep.mubr.f32.mxu1 %v2050_v45  ;;  %v2127_v43 = vld [vmem:[%s4766_s0 + $0xa78] sm:$0xff] }
 0x18d   :  { %1427 = vmatprep.mubr.f32.mxu0 %v2105_v48  ;;  %v2139_v45 = vld [vmem:[%s4766_s0 + $0xad8] sm:$0xff]  ;;  %v2134_v48 = vld [vmem:[%s4766_s0 + $0xab0] sm:$0xff] }
 0x18e   :  { %v4260_v57 = vpop.f32.mrb[60].mxu1 }
 0x18f   :  { %2312 = vmatmul.mubr.f32.gmra.mrb[140].mxu1 %v2057_v51  ;;  %v711_v58 = vpop.f32.mrb[61].mxu1  ;;  %v2147_v51 = vld [vmem:[%s4766_s0 + $0xb18] sm:$0xff] }
 0x190   :  { %1428 = vmatmul.mubr.f32.gmra.mrb[88].mxu0 %v2104_v52  ;;  %2314 = vmatprep.mubr.f32.mxu1 %v2064_v55  ;;  %v2141_v55 = vld [vmem:[%s4766_s0 + $0xae8] sm:$0xff]  ;;  %v2148_v58 = vld [vmem:[%s4766_s0 + $0xb20] sm:$0xff] }
 0x191   :  { %1432 = vmatprep.mubr.f32.mxu0 %v2112_v8  ;;  %v2146_v8 = vld [vmem:[%s4766_s0 + $0xb10] sm:$0xff] }
 0x192   :  { %v4274_v3 = vpop.f32.mrb[62].mxu1 }
 0x193   :  { %2315 = vmatmul.mubr.f32.gmra.mrb[142].mxu1 %v2071_v59  ;;  %v716_v12 = vpop.f32.mrb[63].mxu1 }
 0x194   :  { %1433 = vmatmul.mubr.f32.gmra.mrb[90].mxu0 %v2111_v1  ;;  %2317 = vmatprep.mubr.f32.mxu1 %v2078_v2  ;;  %v2154_v1 = vld [vmem:[%s4766_s0 + $0xb50] sm:$0xff]  ;;  %v2153_v12 = vld [vmem:[%s4766_s0 + $0xb48] sm:$0xff] }
 0x195   :  { %1437 = vmatprep.mubr.f32.mxu0 %v2119_v4  ;;  %v2155_v4 = vld [vmem:[%s4766_s0 + $0xb58] sm:$0xff] }
 0x196   :  { %v4288_v18 = vpop.f32.mrb[64].mxu1 }
 0x197   :  { %2318 = vmatmul.mubr.f32.gmra.mrb[144].mxu1 %v2085_v9  ;;  %v721_v19 = vpop.f32.mrb[65].mxu1 }
 0x198   :  { %1438 = vmatmul.mubr.f32.gmra.mrb[92].mxu0 %v2118_v10  ;;  %2320 = vmatprep.mubr.f32.mxu1 %v2092_v11 }
 0x199   :  { %1442 = vmatprep.mubr.f32.mxu0 %v2126_v16 }
 0x19a   :  { %v4302_v26 = vpop.f32.mrb[66].mxu1 }
 0x19b   :  { %2321 = vmatmul.mubr.f32.gmra.mrb[146].mxu1 %v2099_v21  ;;  %v726_v32 = vpop.f32.mrb[67].mxu1 }
 0x19c   :  { %1443 = vmatmul.mubr.f32.gmra.mrb[94].mxu0 %v2125_v13  ;;  %2323 = vmatprep.mubr.f32.mxu1 %v2106_v24 }
 0x19d   :  { %1447 = vmatprep.mubr.f32.mxu0 %v2133_v31 }
 0x19e   :  { %v4316_v40 = vpop.f32.mrb[68].mxu1 }
 0x19f   :  { %2324 = vmatmul.mubr.f32.gmra.mrb[148].mxu1 %v2113_v30  ;;  %v731_v0 = vpop.f32.mrb[69].mxu1 }
 0x1a0   :  { %1448 = vmatmul.mubr.f32.gmra.mrb[96].mxu0 %v2132_v33  ;;  %2326 = vmatprep.mubr.f32.mxu1 %v2120_v38 }
 0x1a1   :  { %1452 = vmatprep.mubr.f32.mxu0 %v2140_v36 }
 0x1a2   :  { %v4330_v49 = vpop.f32.mrb[70].mxu1 }
 0x1a3   :  { %2327 = vmatmul.mubr.f32.gmra.mrb[150].mxu1 %v2127_v43  ;;  %v736_v52 = vpop.f32.mrb[71].mxu1 }
 0x1a4   :  { %1453 = vmatmul.mubr.f32.gmra.mrb[98].mxu0 %v2139_v45  ;;  %2329 = vmatprep.mubr.f32.mxu1 %v2134_v48 }
 0x1a5   :  { %1457 = vmatprep.mubr.f32.mxu0 %v2147_v51 }
 0x1a6   :  { %v4344_v59 = vpop.f32.mrb[72].mxu1 }
 0x1a7   :  { %2330 = vmatmul.mubr.f32.gmra.mrb[152].mxu1 %v2141_v55  ;;  %v741_v2 = vpop.f32.mrb[73].mxu1 }
 0x1a8   :  { %1458 = vmatmul.mubr.f32.gmra.mrb[100].mxu0 %v2146_v8  ;;  %2332 = vmatprep.mubr.f32.mxu1 %v2148_v58 }
 0x1a9   :  { %1462 = vmatprep.mubr.f32.mxu0 %v2154_v1 }
 0x1aa   :  { %v4355_v9 = vpop.f32.mrb[74].mxu1 }
 0x1ab   :  { %2333 = vmatmul.mubr.f32.gmra.mrb[154].mxu1 %v2155_v4  ;;  %v746_v10 = vpop.f32.mrb[75].mxu1 }
 0x1ac   :  { %1463 = vmatmul.mubr.f32.gmra.mrb[102].mxu0 %v2153_v12 }
 0x1ae   :  { %v4357_v11 = vpop.f32.mrb[76].mxu1 }
 0x1af   :  { %v751_v16 = vpop.f32.mrb[77].mxu1 }
 0x1b3   :  { %v1209_v19 = vpop.f32.mrb[0].mxu0 }
 0x1b4   :  { %v4360_v21 = vadd.f32 %v1209_v19, %v3810_v7  ;;  %v1211_v13 = vpop.f32.mrb[1].mxu0 }
 0x1b7   :  { %v1214_v24 = vpop.f32.mrb[2].mxu0 }
 0x1b8   :  { %v4363_v31 = vadd.f32 %v1214_v24, %v3830_v5  ;;  %v1216_v32 = vpop.f32.mrb[3].mxu0 }
 0x1bb   :  { %v1219_v30 = vpop.f32.mrb[4].mxu0 }
 0x1bc   :  { %v4366_v33 = vadd.f32 %v1219_v30, %v3850_v25  ;;  %v1221_v38 = vpop.f32.mrb[5].mxu0 }
 0x1bf   :  { %v1224_v36 = vpop.f32.mrb[6].mxu0 }
 0x1c0   :  { %v4369_v0 = vadd.f32 %v1224_v36, %v3870_v35  ;;  %v1226_v43 = vpop.f32.mrb[7].mxu0 }
 0x1c3   :  { %v1229_v45 = vpop.f32.mrb[8].mxu0 }
 0x1c4   :  { %v4372_v7 = vadd.f32 %v1229_v45, %v3890_v34  ;;  %v1231_v48 = vpop.f32.mrb[9].mxu0 }
 0x1c7   :  { %v1234_v51 = vpop.f32.mrb[10].mxu0 }
 0x1c8   :  { %v4375_v5 = vadd.f32 %v1234_v51, %v3910_v44  ;;  %v1236_v52 = vpop.f32.mrb[11].mxu0 }
 0x1cb   :  { %v1239_v55 = vpop.f32.mrb[12].mxu0 }
 0x1cc   :  { %v4378_v25 = vadd.f32 %v1239_v55, %v3924_v50  ;;  %v1241_v8 = vpop.f32.mrb[13].mxu0 }
 0x1cf   :  { %v1244_v58 = vpop.f32.mrb[14].mxu0 }
 0x1d0   :  { %v4381_v35 = vadd.f32 %v1244_v58, %v3938_v56  ;;  %v1246_v1 = vpop.f32.mrb[15].mxu0 }
 0x1d3   :  { %v1249_v2 = vpop.f32.mrb[16].mxu0 }
 0x1d4   :  { %v4384_v34 = vadd.f32 %v1249_v2, %v3952_v63  ;;  %v1251_v4 = vpop.f32.mrb[17].mxu0 }
 0x1d7   :  { %v1254_v12 = vpop.f32.mrb[18].mxu0 }
 0x1d8   :  { %v4387_v44 = vadd.f32 %v1254_v12, %v3966_v15  ;;  %v1256_v10 = vpop.f32.mrb[19].mxu0 }
 0x1db   :  { %v1259_v16 = vpop.f32.mrb[20].mxu0 }
 0x1dc   :  { %v4390_v50 = vadd.f32 %v1259_v16, %v3980_v22  ;;  %v1261_v19 = vpop.f32.mrb[21].mxu0 }
 0x1df   :  { %v1264_v13 = vpop.f32.mrb[22].mxu0 }
 0x1e0   :  { %v4393_v56 = vadd.f32 %v1264_v13, %v3994_v29  ;;  %v1266_v24 = vpop.f32.mrb[23].mxu0 }
 0x1e3   :  { %v1269_v32 = vpop.f32.mrb[24].mxu0 }
 0x1e4   :  { %v4396_v63 = vadd.f32 %v1269_v32, %v4008_v37  ;;  %v1271_v30 = vpop.f32.mrb[25].mxu0 }
 0x1e6   :  { %v4398_v38 = vpop.f32.mrb[78].mxu1 }
 0x1e7   :  { %v1274_v15 = vpop.f32.mrb[26].mxu0  ;;  %v1081_v36 = vpop.f32.mrb[79].mxu1 }
 0x1e8   :  { %v4401_v43 = vadd.f32 %v1274_v15, %v4022_v42  ;;  %v1276_v22 = vpop.f32.mrb[27].mxu0 }
 0x1ea   :  { %v4403_v45 = vpop.f32.mrb[80].mxu1 }
 0x1eb   :  { %v1279_v48 = vpop.f32.mrb[28].mxu0  ;;  %v1086_v51 = vpop.f32.mrb[81].mxu1 }
 0x1ec   :  { %v4406_v29 = vadd.f32 %v1279_v48, %v4036_v47  ;;  %v1281_v52 = vpop.f32.mrb[29].mxu0 }
 0x1ee   :  { %v4408_v55 = vpop.f32.mrb[82].mxu1 }
 0x1ef   :  { %v1284_v37 = vpop.f32.mrb[30].mxu0  ;;  %v1091_v8 = vpop.f32.mrb[83].mxu1 }
 0x1f0   :  { %v4411_v58 = vadd.f32 %v1284_v37, %v4050_v54  ;;  %v1286_v1 = vpop.f32.mrb[31].mxu0 }
 0x1f2   :  { %v4413_v2 = vpop.f32.mrb[84].mxu1 }
 0x1f3   :  { %v1289_v42 = vpop.f32.mrb[32].mxu0  ;;  %v1096_v4 = vpop.f32.mrb[85].mxu1 }
 0x1f4   :  { %v4416_v12 = vadd.f32 %v1289_v42, %v4064_v60  ;;  %v1291_v10 = vpop.f32.mrb[33].mxu0 }
 0x1f6   :  { %v4418_v16 = vpop.f32.mrb[86].mxu1 }
 0x1f7   :  { %v1294_v47 = vpop.f32.mrb[34].mxu0  ;;  %v1101_v19 = vpop.f32.mrb[87].mxu1 }
 0x1f8   :  { %v4421_v13 = vadd.f32 %v1294_v47, %v4078_v6  ;;  %v1296_v24 = vpop.f32.mrb[35].mxu0 }
 0x1fa   :  { %v4423_v32 = vpop.f32.mrb[88].mxu1 }
 0x1fb   :  { %v1299_v54 = vpop.f32.mrb[36].mxu0  ;;  %v1106_v30 = vpop.f32.mrb[89].mxu1 }
 0x1fc   :  { %v4426_v15 = vadd.f32 %v1299_v54, %v4092_v14  ;;  %v1301_v36 = vpop.f32.mrb[37].mxu0 }
 0x1fe   :  { %v4428_v22 = vpop.f32.mrb[90].mxu1 }
 0x1ff   :  { %v1304_v60 = vpop.f32.mrb[38].mxu0  ;;  %v1111_v48 = vpop.f32.mrb[91].mxu1 }
 0x200   :  { %v4431_v51 = vadd.f32 %v1304_v60, %v4106_v23  ;;  %v1306_v52 = vpop.f32.mrb[39].mxu0 }
 0x202   :  { %v4433_v37 = vpop.f32.mrb[92].mxu1 }
 0x203   :  { %v1309_v6 = vpop.f32.mrb[40].mxu0  ;;  %v1116_v8 = vpop.f32.mrb[93].mxu1 }
 0x204   :  { %v4436_v1 = vadd.f32 %v1309_v6, %v4120_v20  ;;  %v1311_v42 = vpop.f32.mrb[41].mxu0 }
 0x206   :  { %v4438_v4 = vpop.f32.mrb[94].mxu1 }
 0x207   :  { %v1314_v14 = vpop.f32.mrb[42].mxu0  ;;  %v1121_v10 = vpop.f32.mrb[95].mxu1 }
 0x208   :  { %v4441_v47 = vadd.f32 %v1314_v14, %v4134_v39  ;;  %v1316_v19 = vpop.f32.mrb[43].mxu0 }
 0x20a   :  { %v4443_v24 = vpop.f32.mrb[96].mxu1 }
 0x20b   :  { %v1319_v23 = vpop.f32.mrb[44].mxu0  ;;  %v1126_v54 = vpop.f32.mrb[97].mxu1 }
 0x20c   :  { %v4446_v30 = vadd.f32 %v1319_v23, %v4148_v41  ;;  %v1321_v36 = vpop.f32.mrb[45].mxu0 }
 0x20e   :  { %v4448_v60 = vpop.f32.mrb[98].mxu1 }
 0x20f   :  { %v1324_v20 = vpop.f32.mrb[46].mxu0  ;;  %v1131_v48 = vpop.f32.mrb[99].mxu1 }
 0x210   :  { %v4451_v52 = vadd.f32 %v1324_v20, %v4162_v53  ;;  %v1326_v6 = vpop.f32.mrb[47].mxu0 }
 0x212   :  { %v4453_v8 = vpop.f32.mrb[100].mxu1 }
 0x213   :  { %v1329_v39 = vpop.f32.mrb[48].mxu0  ;;  %v1136_v42 = vpop.f32.mrb[101].mxu1 }
 0x214   :  { %v4456_v14 = vadd.f32 %v1329_v39, %v4176_v61  ;;  %v1331_v10 = vpop.f32.mrb[49].mxu0 }
 0x216   :  { %v4458_v19 = vpop.f32.mrb[102].mxu1 }
 0x217   :  { %4772 = vst [vmem:[#allocation2_spill] sm:$0xff] %v4458_v19  ;;  %v1334_v41 = vpop.f32.mrb[50].mxu0  ;;  %v1141_v23 = vpop.f32.mrb[103].mxu1 }
 0x218   :  { %v4461_v54 = vadd.f32 %v1334_v41, %v4190_v62  ;;  %v1336_v36 = vpop.f32.mrb[51].mxu0 }
 0x21a   :  { %v2259_v48 = vpop.f32.mrb[104].mxu1 }
 0x21b   :  { %v1339_v53 = vpop.f32.mrb[52].mxu0  ;;  %v4464_v20 = vadd.f32 %v4363_v31, %v2259_v48  ;;  %v1534_v6 = vpop.f32.mrb[105].mxu1 }
 0x21c   :  { %v4467_v42 = vadd.f32 %v1339_v53, %v4204_v17  ;;  %v1341_v61 = vpop.f32.mrb[53].mxu0  ;;  %v4470_v39 = vadd.f32 %v4360_v21, %v1534_v6 }
 0x21e   :  { %v2262_v10 = vpop.f32.mrb[106].mxu1 }
 0x21f   :  { %v1344_v19 = vpop.f32.mrb[54].mxu0  ;;  %v4473_v23 = vadd.f32 %v4369_v0, %v2262_v10  ;;  %v1544_v62 = vpop.f32.mrb[107].mxu1 }
 0x220   :  { %v4476_v41 = vadd.f32 %v1344_v19, %v4218_v28  ;;  %v1346_v36 = vpop.f32.mrb[55].mxu0  ;;  %v4479_v31 = vadd.f32 %v4366_v33, %v1544_v62 }
 0x222   :  { %v2265_v48 = vpop.f32.mrb[108].mxu1 }
 0x223   :  { %v1349_v17 = vpop.f32.mrb[56].mxu0  ;;  %v4482_v53 = vadd.f32 %v4375_v5, %v2265_v48  ;;  %v1554_v21 = vpop.f32.mrb[109].mxu1 }
 0x224   :  { %v4485_v6 = vadd.f32 %v1349_v17, %v4232_v27  ;;  %v1351_v61 = vpop.f32.mrb[57].mxu0  ;;  %v4488_v0 = vadd.f32 %v4372_v7, %v1554_v21 }
 0x226   :  { %v2268_v10 = vpop.f32.mrb[110].mxu1 }
 0x227   :  { %v1354_v28 = vpop.f32.mrb[58].mxu0  ;;  %v4491_v19 = vadd.f32 %v4381_v35, %v2268_v10  ;;  %v1564_v33 = vpop.f32.mrb[111].mxu1 }
 0x228   :  { %v4494_v62 = vadd.f32 %v1354_v28, %v4246_v46  ;;  %v1356_v36 = vpop.f32.mrb[59].mxu0  ;;  %v4497_v5 = vadd.f32 %v4378_v25, %v1564_v33 }
 0x22a   :  { %v2271_v48 = vpop.f32.mrb[112].mxu1 }
 0x22b   :  { %v1359_v27 = vpop.f32.mrb[60].mxu0  ;;  %v4500_v17 = vadd.f32 %v4387_v44, %v2271_v48  ;;  %v1574_v7 = vpop.f32.mrb[113].mxu1 }
 0x22c   :  { %v4503_v21 = vadd.f32 %v1359_v27, %v4260_v57  ;;  %v1361_v61 = vpop.f32.mrb[61].mxu0  ;;  %v4506_v35 = vadd.f32 %v4384_v34, %v1574_v7 }
 0x22e   :  { %v2274_v10 = vpop.f32.mrb[114].mxu1 }
 0x22f   :  { %v1364_v46 = vpop.f32.mrb[62].mxu0  ;;  %v4509_v28 = vadd.f32 %v4393_v56, %v2274_v10  ;;  %v1584_v25 = vpop.f32.mrb[115].mxu1 }
 0x230   :  { %v4512_v33 = vadd.f32 %v1364_v46, %v4274_v3  ;;  %v1366_v36 = vpop.f32.mrb[63].mxu0  ;;  %v4515_v44 = vadd.f32 %v4390_v50, %v1584_v25 }
 0x232   :  { %v2277_v48 = vpop.f32.mrb[116].mxu1 }
 0x233   :  { %v1369_v57 = vpop.f32.mrb[64].mxu0  ;;  %v4518_v27 = vadd.f32 %v4401_v43, %v2277_v48  ;;  %v1594_v34 = vpop.f32.mrb[117].mxu1 }
 0x234   :  { %v4521_v7 = vadd.f32 %v1369_v57, %v4288_v18  ;;  %v1371_v61 = vpop.f32.mrb[65].mxu0  ;;  %v4524_v56 = vadd.f32 %v4396_v63, %v1594_v34 }
 0x236   :  { %4773 = vst [vmem:[#allocation3_spill] sm:$0xff] %v4524_v56  ;;  %v2280_v10 = vpop.f32.mrb[118].mxu1 }
 0x237   :  { %v1374_v46 = vpop.f32.mrb[66].mxu0  ;;  %v4529_v50 = vadd.f32 %v4411_v58, %v2280_v10  ;;  %v1604_v25 = vpop.f32.mrb[119].mxu1 }
 0x238   :  { %v4532_v43 = vadd.f32 %v1374_v46, %v4302_v26  ;;  %v1376_v36 = vpop.f32.mrb[67].mxu0  ;;  %v4535_v18 = vadd.f32 %v4406_v29, %v1604_v25 }
 0x23a   :  { %v2283_v57 = vpop.f32.mrb[120].mxu1 }
 0x23b   :  { %v1379_v34 = vpop.f32.mrb[68].mxu0  ;;  %v4542_v61 = vadd.f32 %v4421_v13, %v2283_v57  ;;  %v1614_v58 = vpop.f32.mrb[121].mxu1 }
 0x23c   :  { %v4545_v10 = vadd.f32 %v1379_v34, %v4316_v40  ;;  %v1381_v26 = vpop.f32.mrb[69].mxu0  ;;  %v4548_v46 = vadd.f32 %v4416_v12, %v1614_v58 }
 0x23e   :  { %v2286_v36 = vpop.f32.mrb[122].mxu1 }
 0x23f   :  { %v1384_v48 = vpop.f32.mrb[70].mxu0  ;;  %v4555_v63 = vadd.f32 %v4431_v51, %v2286_v36  ;;  %v1624_v13 = vpop.f32.mrb[123].mxu1 }
 0x240   :  { %v2578_v57 = vadd.f32 %v1384_v48, %v4330_v49  ;;  %v1386_v40 = vpop.f32.mrb[71].mxu0  ;;  %v4559_v34 = vadd.f32 %v4426_v15, %v1624_v13 }
 0x242   :  { %v2289_v26 = vpop.f32.mrb[124].mxu1 }
 0x243   :  { %v1389_v25 = vpop.f32.mrb[72].mxu0  ;;  %v4566_v29 = vadd.f32 %v4441_v47, %v2289_v26  ;;  %v1634_v51 = vpop.f32.mrb[125].mxu1 }
 0x244   :  { %v4569_v36 = vadd.f32 %v1389_v25, %v4344_v59  ;;  %v1391_v49 = vpop.f32.mrb[73].mxu0  ;;  %v4572_v48 = vadd.f32 %v4436_v1, %v1634_v51 }
 0x246   :  { %v2292_v40 = vpop.f32.mrb[126].mxu1 }
 0x247   :  { %v1394_v58 = vpop.f32.mrb[74].mxu0  ;;  %v4579_v12 = vadd.f32 %v4451_v52, %v2292_v40  ;;  %v1644_v47 = vpop.f32.mrb[127].mxu1 }
 0x248   :  { %v2580_v26 = vadd.f32 %v1394_v58, %v4355_v9  ;;  %v1396_v59 = vpop.f32.mrb[75].mxu0  ;;  %v4583_v25 = vadd.f32 %v4446_v30, %v1644_v47 }
 0x24a   :  { %v2295_v49 = vpop.f32.mrb[128].mxu1 }
 0x24b   :  { %v1399_v13 = vpop.f32.mrb[76].mxu0  ;;  %v4590_v15 = vadd.f32 %v4461_v54, %v2295_v49  ;;  %v1654_v52 = vpop.f32.mrb[129].mxu1 }
 0x24c   :  { %v2581_v40 = vadd.f32 %v1399_v13, %v4357_v11  ;;  %v1401_v3 = vpop.f32.mrb[77].mxu0  ;;  %v4594_v9 = vadd.f32 %v4456_v14, %v1654_v52 }
 0x24d   :  { %4774 = vst [vmem:[#allocation4_spill] sm:$0xff] %v4590_v15 }
 0x24e   :  { %4775 = vst [vmem:[#allocation5_spill] sm:$0xff] %v4594_v9  ;;  %v2298_v47 = vpop.f32.mrb[130].mxu1 }
 0x24f   :  { %v1404_v59 = vpop.f32.mrb[78].mxu0  ;;  %v4601_v51 = vadd.f32 %v4476_v41, %v2298_v47  ;;  %v1664_v54 = vpop.f32.mrb[131].mxu1 }
 0x250   :  { %v2582_v49 = vadd.f32 %v1404_v59, %v4398_v38  ;;  %v1406_v1 = vpop.f32.mrb[79].mxu0  ;;  %v1665_v11 = vadd.f32 %v4467_v42, %v1664_v54 }
 0x252   :  { %v2301_v3 = vpop.f32.mrb[132].mxu1 }
 0x253   :  { %v1409_v14 = vpop.f32.mrb[80].mxu0  ;;  %v4606_v13 = vadd.f32 %v4494_v62, %v2301_v3  ;;  %v1674_v52 = vpop.f32.mrb[133].mxu1 }
 0x254   :  { %v2583_v30 = vadd.f32 %v1409_v14, %v4403_v45  ;;  %v1411_v58 = vpop.f32.mrb[81].mxu0  ;;  %v1675_v15 = vadd.f32 %v4485_v6, %v1674_v52 }
 0x256   :  { %v2304_v56 = vpop.f32.mrb[134].mxu1 }
 0x257   :  { %v1414_v41 = vpop.f32.mrb[82].mxu0  ;;  %v4611_v47 = vadd.f32 %v4512_v33, %v2304_v56  ;;  %v1684_v38 = vpop.f32.mrb[135].mxu1 }
 0x258   :  { %v2584_v1 = vadd.f32 %v1414_v41, %v4408_v55  ;;  %v1416_v42 = vpop.f32.mrb[83].mxu0  ;;  %v4615_v59 = vadd.f32 %v4503_v21, %v1684_v38 }
 0x25a   :  { %v2307_v62 = vpop.f32.mrb[136].mxu1 }
 0x25b   :  { %v1419_v54 = vpop.f32.mrb[84].mxu0  ;;  %v4618_v3 = vadd.f32 %v4532_v43, %v2307_v62  ;;  %v1694_v45 = vpop.f32.mrb[137].mxu1 }
 0x25c   :  { %v2585_v6 = vadd.f32 %v1419_v54, %v4413_v2  ;;  %v1421_v58 = vpop.f32.mrb[85].mxu0  ;;  %v4622_v14 = vadd.f32 %v4521_v7, %v1694_v45 }
 0x25e   :  { %v2310_v33 = vpop.f32.mrb[138].mxu1 }
 0x25f   :  { %v1424_v56 = vpop.f32.mrb[86].mxu0  ;;  %v4624_v52 = vadd.f32 %v2578_v57, %v2310_v33  ;;  %v1704_v55 = vpop.f32.mrb[139].mxu1 }
 0x260   :  { %v2586_v21 = vadd.f32 %v1424_v56, %v4418_v16  ;;  %v1426_v41 = vpop.f32.mrb[87].mxu0  ;;  %v4628_v38 = vadd.f32 %v4545_v10, %v1704_v55 }
 0x262   :  { %v2313_v43 = vpop.f32.mrb[140].mxu1 }
 0x263   :  { %v1429_v42 = vpop.f32.mrb[88].mxu0  ;;  %v4630_v62 = vadd.f32 %v2580_v26, %v2313_v43  ;;  %v1714_v2 = vpop.f32.mrb[141].mxu1  ;;  %v4642_v26 = vld [vmem:[%s4767_s2] ss:$0 sm:$0xff] }
 0x264   :  { %v2587_v54 = vadd.f32 %v1429_v42, %v4423_v32  ;;  %v1431_v7 = vpop.f32.mrb[89].mxu0  ;;  %v4634_v45 = vadd.f32 %v4569_v36, %v1714_v2  ;;  %v4776_v36 = vmax.f32 %v4470_v39, %v4518_v27 }
 0x266   :  { %v2316_v57 = vpop.f32.mrb[142].mxu1 }
 0x267   :  { %v1434_v58 = vpop.f32.mrb[90].mxu0  ;;  %v1730_v33 = vadd.f32 %v2582_v49, %v2316_v57  ;;  %v1724_v9 = vpop.f32.mrb[143].mxu1 }
 0x268   :  { %v2588_v16 = vadd.f32 %v1434_v58, %v4428_v22  ;;  %v1436_v56 = vpop.f32.mrb[91].mxu0  ;;  %v4637_v10 = vadd.f32 %v2581_v40, %v1724_v9 }
 0x269   :  { %v1806_v55 = vmax.f32 %v1665_v11, %v1730_v33  ;;  %v4777_v33 = vmax.f32 %v4479_v31, %v4529_v50 }
 0x26a   :  { %v2319_v32 = vpop.f32.mrb[144].mxu1 }
 0x26b   :  { %v1819_v41 = vmax.f32 %v4776_v36, %v1806_v55  ;;  %v1439_v43 = vpop.f32.mrb[92].mxu0  ;;  %v1740_v42 = vadd.f32 %v2584_v1, %v2319_v32  ;;  %v1734_v49 = vpop.f32.mrb[145].mxu1 }
 0x26c   :  { %v2589_v2 = vadd.f32 %v1439_v43, %v4433_v37  ;;  %v1441_v22 = vpop.f32.mrb[93].mxu0  ;;  %v1735_v7 = vadd.f32 %v2583_v30, %v1734_v49  ;;  %v4778_v37 = vmax.f32 %v4464_v20, %v4535_v18  ;;  %v4780_v49 = vmax.f32 %v4473_v23, %v4548_v46 }
 0x26d   :  { %v1839_v40 = vadd.f32 %v4642_v26, %v1819_v41  ;;  %v1808_v9 = vmax.f32 %v1675_v15, %v1740_v42 }
 0x26e   :  { %v1807_v11 = vmax.f32 %v4601_v51, %v1735_v7  ;;  %v2322_v57 = vpop.f32.mrb[146].mxu1 }
 0x26f   :  { %v1852_v58 = vmax.f32 %v1839_v40, 0.0  ;;  %v1821_v39 = vmax.f32 %v4777_v33, %v1808_v9  ;;  %v1444_v27 = vpop.f32.mrb[94].mxu0  ;;  %v1750_v56 = vadd.f32 %v2586_v21, %v2322_v57  ;;  %v1744_v1 = vpop.f32.mrb[147].mxu1 }
 0x270   :  { %v1820_v55 = vmax.f32 %v4778_v37, %v1807_v11  ;;  %v2590_v30 = vadd.f32 %v1444_v27, %v4438_v4  ;;  %v1446_v32 = vpop.f32.mrb[95].mxu0  ;;  %v1745_v15 = vadd.f32 %v2585_v6, %v1744_v1  ;;  %v4779_v4 = vmax.f32 %v4488_v0, %v4542_v61 }
 0x271   :  { %1866 = vst.msk [vmem:[%s4768_s3] sm:$0xff] %vm1865_vm0, %v1852_v58  ;;  %v1841_v51 = vadd.f32 %v4642_v26, %v1821_v39  ;;  %v1810_v31 = vmax.f32 %v4615_v59, %v1750_v56 }
 0x272   :  { %v1840_v50 = vadd.f32 %v4642_v26, %v1820_v55  ;;  %v1809_v21 = vmax.f32 %v4606_v13, %v1745_v15  ;;  %v2325_v36 = vpop.f32.mrb[148].mxu1 }
 0x273   :  { %v1854_v20 = vmax.f32 %v1841_v51, 0.0  ;;  %v1823_v18 = vmax.f32 %v4779_v4, %v1810_v31  ;;  %v1449_v6 = vpop.f32.mrb[96].mxu0  ;;  %v1760_v41 = vadd.f32 %v2588_v16, %v2325_v36  ;;  %v1754_v43 = vpop.f32.mrb[149].mxu1 }
 0x274   :  { %v1853_v42 = vmax.f32 %v1840_v50, 0.0  ;;  %v1822_v22 = vmax.f32 %v4780_v49, %v1809_v21  ;;  %v2591_v59 = vadd.f32 %v1449_v6, %v4443_v24  ;;  %v1451_v7 = vpop.f32.mrb[97].mxu0  ;;  %v1755_v40 = vadd.f32 %v2587_v54, %v1754_v43 }
 0x275   :  { %1868 = vst.msk [vmem:[%s4768_s3 + $0x10] sm:$0xff] %vm1865_vm0, %v1854_v20  ;;  %v1843_v0 = vadd.f32 %v4642_v26, %v1823_v18  ;;  %v1812_v61 = vmax.f32 %v4622_v14, %v1760_v41  ;;  %v4781_v54 = vmax.f32 %v4497_v5, %v4555_v63  ;;  %v4782_v14 = vmax.f32 %v4482_v53, %v4559_v34  ;;  %v4787_v41 = vld [vmem:[#allocation2_spill] sm:$0xff]  ;;  %v4788_v7 = vld [vmem:[#allocation5_spill] sm:$0xff] }
 0x276   :  { %1867 = vst.msk [vmem:[%s4768_s3 + $0x8] sm:$0xff] %vm1865_vm0, %v1853_v42  ;;  %v1842_v23 = vadd.f32 %v4642_v26, %v1822_v22  ;;  %v1811_v24 = vmax.f32 %v4611_v47, %v1755_v40  ;;  %v2328_v46 = vpop.f32.mrb[150].mxu1  ;;  %v4785_v21 = vmax.f32 %v4515_v44, %v4579_v12  ;;  %v4789_v40 = vmax.f32 %v4509_v28, %v4788_v7 }
 0x277   :  { %v1856_v13 = vmax.f32 %v1843_v0, 0.0  ;;  %v1825_v16 = vmax.f32 %v4781_v54, %v1812_v61  ;;  %v1454_v9 = vpop.f32.mrb[98].mxu0  ;;  %v1770_v11 = vadd.f32 %v2590_v30, %v2328_v46  ;;  %v1764_v57 = vpop.f32.mrb[151].mxu1  ;;  %v4790_v61 = vld [vmem:[#allocation3_spill] sm:$0xff] }
 0x278   :  { %v1855_v58 = vmax.f32 %v1842_v23, 0.0  ;;  %v1824_v33 = vmax.f32 %v4782_v14, %v1811_v24  ;;  %v2592_v39 = vadd.f32 %v1454_v9, %v4448_v60  ;;  %v1456_v27 = vpop.f32.mrb[99].mxu0  ;;  %v1765_v56 = vadd.f32 %v2589_v2, %v1764_v57 }
 0x279   :  { %1870 = vst.msk [vmem:[%s4768_s3 + $0x20] sm:$0xff] %vm1865_vm0, %v1856_v13  ;;  %v1845_v5 = vadd.f32 %v4642_v26, %v1825_v16  ;;  %v1814_v63 = vmax.f32 %v4628_v38, %v1770_v11  ;;  %v4783_v2 = vmax.f32 %v4506_v35, %v4566_v29  ;;  %v4784_v38 = vmax.f32 %v4491_v19, %v4572_v48 }
 0x27a   :  { %1869 = vst.msk [vmem:[%s4768_s3 + $0x18] sm:$0xff] %vm1865_vm0, %v1855_v58  ;;  %v1844_v53 = vadd.f32 %v4642_v26, %v1824_v33  ;;  %v1813_v60 = vmax.f32 %v4618_v3, %v1765_v56  ;;  %v2331_v34 = vpop.f32.mrb[152].mxu1 }
 0x27b   :  { %v1858_v47 = vmax.f32 %v1845_v5, 0.0  ;;  %v1827_v1 = vmax.f32 %v4783_v2, %v1814_v63  ;;  %v1459_v37 = vpop.f32.mrb[100].mxu0  ;;  %v1780_v55 = vadd.f32 %v2592_v39, %v2331_v34  ;;  %v1774_v30 = vpop.f32.mrb[153].mxu1 }
 0x27c   :  { %v1857_v32 = vmax.f32 %v1844_v53, 0.0  ;;  %v1826_v15 = vmax.f32 %v4784_v38, %v1813_v60  ;;  %v2593_v51 = vadd.f32 %v1459_v37, %v4453_v8  ;;  %v1461_v31 = vpop.f32.mrb[101].mxu0  ;;  %v1775_v50 = vadd.f32 %v2591_v59, %v1774_v30 }
 0x27d   :  { %1872 = vst.msk [vmem:[%s4768_s3 + $0x30] sm:$0xff] %vm1865_vm0, %v1858_v47  ;;  %v1847_v35 = vadd.f32 %v4642_v26, %v1827_v1  ;;  %v1816_v29 = vmax.f32 %v4634_v45, %v1780_v55  ;;  %v4786_v45 = vmax.f32 %v4500_v17, %v4583_v25 }
 0x27e   :  { %1871 = vst.msk [vmem:[%s4768_s3 + $0x28] sm:$0xff] %vm1865_vm0, %v1857_v32  ;;  %v1846_v19 = vadd.f32 %v4642_v26, %v1826_v15  ;;  %v1815_v8 = vmax.f32 %v4624_v52, %v1775_v50  ;;  %v2334_v48 = vpop.f32.mrb[154].mxu1 }
 0x27f   :  { %v1860_v3 = vmax.f32 %v1847_v35, 0.0  ;;  %v1829_v36 = vmax.f32 %v4785_v21, %v1816_v29  ;;  %v1464_v20 = vpop.f32.mrb[102].mxu0  ;;  %v1784_v4 = vpop.f32.mrb[155].mxu1 }
 0x280   :  { %v1859_v18 = vmax.f32 %v1846_v19, 0.0  ;;  %v1828_v6 = vmax.f32 %v4786_v45, %v1815_v8  ;;  %v2594_v43 = vadd.f32 %v1464_v20, %v4787_v41  ;;  %v1466_v42 = vpop.f32.mrb[103].mxu0  ;;  %v1785_v49 = vadd.f32 %v2593_v51, %v1784_v4 }
 0x281   :  { %1874 = vst.msk [vmem:[%s4768_s3 + $0x40] sm:$0xff] %vm1865_vm0, %v1860_v3  ;;  %v1849_v52 = vadd.f32 %v4642_v26, %v1829_v36 }
 0x282   :  { %1873 = vst.msk [vmem:[%s4768_s3 + $0x38] sm:$0xff] %vm1865_vm0, %v1859_v18  ;;  %v1848_v44 = vadd.f32 %v4642_v26, %v1828_v6  ;;  %v1790_v17 = vadd.f32 %v2594_v43, %v2334_v48  ;;  %v1817_v12 = vmax.f32 %v4630_v62, %v1785_v49  ;;  %v4791_v62 = vld [vmem:[#allocation4_spill] sm:$0xff] }
 0x283   :  { %v1862_v25 = vmax.f32 %v1849_v52, 0.0  ;;  %v4792_v23 = vmax.f32 %v4790_v61, %v4791_v62 }
 0x284   :  { %v1861_v22 = vmax.f32 %v1848_v44, 0.0  ;;  %v1818_v59 = vmax.f32 %v4637_v10, %v1790_v17  ;;  %v1830_v0 = vmax.f32 %v4789_v40, %v1817_v12 }
 0x285   :  { %1876 = vst.msk [vmem:[%s4768_s3 + $0x50] sm:$0xff] %vm1865_vm0, %v1862_v25 }
 0x286   :  { %1875 = vst.msk [vmem:[%s4768_s3 + $0x48] sm:$0xff] %vm1865_vm0, %v1861_v22  ;;  %v1831_v24 = vmax.f32 %v4792_v23, %v1818_v59  ;;  %v1850_v10 = vadd.f32 %v4642_v26, %v1830_v0 }
 0x288   :  { %v1851_v46 = vadd.f32 %v4642_v26, %v1831_v24  ;;  %v1863_v28 = vmax.f32 %v1850_v10, 0.0 }
 0x28a   :  { %v1864_v13 = vmax.f32 %v1851_v46, 0.0  ;;  %1877 = vst.msk [vmem:[%s4768_s3 + $0x58] sm:$0xff] %vm1865_vm0, %v1863_v28 }
 0x28c   :  { %1878 = vst.msk [vmem:[%s4768_s3 + $0x60] sm:$0xff] %vm1865_vm0, %v1864_v13 }

// kernel: _lambda_.5
= control target key start
LH: loop header
LB: loop body
LE: loop exit
PB: predicated region body
PF: predicated region fallthrough
CT: control target
= control target key end

     0   :  { %v1378_v43 = vmov 1983009808   ;;  %v236_v45 = vlaneseq  ;;  %s2073_s0 = inlined_call_operand.vmem [shape: f32[2,1568], index: 0, kind: input, shape index: {}]   ;;  %s2074_s1 = inlined_call_operand.vmem [shape: f32[1568,32], index: 1, kind: input, shape index: {}]   ;;  %s2075_s2 = inlined_call_operand.vmem [shape: f32[1,32], index: 2, kind: input, shape index: {}]   ;;  %s2076_s3 = inlined_call_operand.vmem [shape: f32[32,10], index: 3, kind: input, shape index: {}]   ;;  %s2077_s4 = inlined_call_operand.vmem [shape: f32[1,10], index: 4, kind: input, shape index: {}]   ;;  %s2078_s5 = inlined_call_operand.hbm [shape: f32[2,10], index: 5, kind: output, shape index: {}]  }
   0x1   :  { %v41_v0 = vld [vmem:[%s2074_s1 + $0x80] sm:$0xff]  ;;  %v42_v1 = vld [vmem:[%s2074_s1 + $0x88] sm:$0xff]  ;;  %v43_v11 = vld [vmem:[%s2074_s1 + $0x90] sm:$0xff]  ;;  %v234_v44 = vunpack.c.l.s4 %v1378_v43 }
   0x2   :  { %v25_v2 = vld [vmem:[%s2074_s1] sm:$0xff]  ;;  %v1142_v3 = vpack.c.bf16 %v42_v1, %v41_v0  ;;  %v26_v4 = vld [vmem:[%s2074_s1 + $0x8] sm:$0xff]  ;;  %v44_v13 = vld [vmem:[%s2074_s1 + $0x98] sm:$0xff]  ;;  %v237_v60 = vshrl.u32 %v236_v45, 7 }
   0x3   :  { %v73_v5 = vld [vmem:[%s2074_s1 + $0x180] sm:$0xff]  ;;  %v74_v6 = vld [vmem:[%s2074_s1 + $0x188] sm:$0xff]  ;;  %v1144_v7 = vpack.c.bf16 %v26_v4, %v25_v2  ;;  %v27_v14 = vld [vmem:[%s2074_s1 + $0x10] sm:$0xff]  ;;  %v1146_v16 = vpack.c.bf16 %v44_v13, %v43_v11  ;;  %v235_v59 = vunpack.c.0.s8 %v234_v44 }
   0x4   :  { %v1174_v8 = vpack.c.bf16 %v74_v6, %v73_v5  ;;  %v57_v9 = vld [vmem:[%s2074_s1 + $0x100] sm:$0xff]  ;;  %v58_v10 = vld [vmem:[%s2074_s1 + $0x108] sm:$0xff]  ;;  %1143 = vmatprep.subr.bf16.mxu0 %v1142_v3  ;;  %v28_v15 = vld [vmem:[%s2074_s1 + $0x18] sm:$0xff] }
   0x5   :  { %v1176_v12 = vpack.c.bf16 %v58_v10, %v57_v9  ;;  %1145 = vmatpush3.bf16.msra.mxu0 %v1144_v7  ;;  %v1148_v17 = vpack.c.bf16 %v28_v15, %v27_v14  ;;  %v75_v18 = vld [vmem:[%s2074_s1 + $0x190] sm:$0xff]  ;;  %v76_v19 = vld [vmem:[%s2074_s1 + $0x198] sm:$0xff]  ;;  %v45_v23 = vld [vmem:[%s2074_s1 + $0xa0] sm:$0xff]  ;;  %v1557_v10 = vsub.s32 %v235_v59, %v237_v60 }
   0x6   :  { %1175 = vmatprep.subr.bf16.mxu1 %v1174_v8  ;;  %v59_v20 = vld [vmem:[%s2074_s1 + $0x110] sm:$0xff]  ;;  %v1178_v21 = vpack.c.bf16 %v76_v19, %v75_v18  ;;  %v60_v22 = vld [vmem:[%s2074_s1 + $0x118] sm:$0xff]  ;;  %v46_v24 = vld [vmem:[%s2074_s1 + $0xa8] sm:$0xff]  ;;  %1147 = vmatprep.subr.bf16.mxu0 %v1146_v16 }
   0x7   :  { %1177 = vmatpush3.bf16.msra.mxu1 %v1176_v12  ;;  %v1180_v25 = vpack.c.bf16 %v60_v22, %v59_v20  ;;  %v1150_v26 = vpack.c.bf16 %v46_v24, %v45_v23  ;;  %v29_v27 = vld [vmem:[%s2074_s1 + $0x20] sm:$0xff]  ;;  %v30_v28 = vld [vmem:[%s2074_s1 + $0x28] sm:$0xff]  ;;  %v47_v35 = vld [vmem:[%s2074_s1 + $0xb0] sm:$0xff] }
   0x8   :  { %v77_v29 = vld [vmem:[%s2074_s1 + $0x1a0] sm:$0xff]  ;;  %1179 = vmatprep.subr.bf16.mxu1 %v1178_v21  ;;  %v78_v30 = vld [vmem:[%s2074_s1 + $0x1a8] sm:$0xff]  ;;  %v1152_v33 = vpack.c.bf16 %v30_v28, %v29_v27  ;;  %v48_v36 = vld [vmem:[%s2074_s1 + $0xb8] sm:$0xff] }
   0x9   :  { %v61_v31 = vld [vmem:[%s2074_s1 + $0x120] sm:$0xff]  ;;  %v62_v32 = vld [vmem:[%s2074_s1 + $0x128] sm:$0xff]  ;;  %1149 = vmatpush3.bf16.msra.mxu0 %v1148_v17  ;;  %v1182_v34 = vpack.c.bf16 %v78_v30, %v77_v29  ;;  %v31_v37 = vld [vmem:[%s2074_s1 + $0x30] sm:$0xff]  ;;  %v1154_v39 = vpack.c.bf16 %v48_v36, %v47_v35 }
   0xa   :  { %1151 = vmatprep.subr.bf16.mxu0 %v1150_v26  ;;  %v1184_v38 = vpack.c.bf16 %v62_v32, %v61_v31  ;;  %v32_v40 = vld [vmem:[%s2074_s1 + $0x38] sm:$0xff]  ;;  %v79_v41 = vld [vmem:[%s2074_s1 + $0x1b0] sm:$0xff]  ;;  %v49_v49 = vld [vmem:[%s2074_s1 + $0xc0] sm:$0xff] }
   0xb   :  { %1181 = vmatpush3.bf16.msra.mxu1 %v1180_v25  ;;  %v80_v42 = vld [vmem:[%s2074_s1 + $0x1b8] sm:$0xff]  ;;  %v63_v47 = vld [vmem:[%s2074_s1 + $0x130] sm:$0xff]  ;;  %v50_v50 = vld [vmem:[%s2074_s1 + $0xc8] sm:$0xff]  ;;  %v1156_v51 = vpack.c.bf16 %v32_v40, %v31_v37 }
   0xc   :  { %1183 = vmatprep.subr.bf16.mxu1 %v1182_v34  ;;  %v1186_v46 = vpack.c.bf16 %v80_v42, %v79_v41  ;;  %v64_v48 = vld [vmem:[%s2074_s1 + $0x138] sm:$0xff]  ;;  %v81_v52 = vld [vmem:[%s2074_s1 + $0x1c0] sm:$0xff]  ;;  %v82_v53 = vld [vmem:[%s2074_s1 + $0x1c8] sm:$0xff]  ;;  %v1158_v55 = vpack.c.bf16 %v50_v50, %v49_v49 }
   0xd   :  { %1153 = vmatpush3.bf16.msra.mxu0 %v1152_v33  ;;  %v1188_v54 = vpack.c.bf16 %v64_v48, %v63_v47  ;;  %v33_v56 = vld [vmem:[%s2074_s1 + $0x40] sm:$0xff]  ;;  %v34_v57 = vld [vmem:[%s2074_s1 + $0x48] sm:$0xff]  ;;  %v1190_v61 = vpack.c.bf16 %v82_v53, %v81_v52  ;;  %v51_v63 = vld [vmem:[%s2074_s1 + $0xd0] sm:$0xff] }
   0xe   :  { %1155 = vmatprep.subr.bf16.mxu0 %v1154_v39  ;;  %v65_v58 = vld [vmem:[%s2074_s1 + $0x140] sm:$0xff]  ;;  %v66_v62 = vld [vmem:[%s2074_s1 + $0x148] sm:$0xff]  ;;  %v52_v0 = vld [vmem:[%s2074_s1 + $0xd8] sm:$0xff]  ;;  %v1160_v3 = vpack.c.bf16 %v34_v57, %v33_v56 }
   0xf   :  { %1185 = vmatpush3.bf16.msra.mxu1 %v1184_v38  ;;  %v83_v1 = vld [vmem:[%s2074_s1 + $0x1d0] sm:$0xff]  ;;  %v84_v2 = vld [vmem:[%s2074_s1 + $0x1d8] sm:$0xff]  ;;  %v1192_v5 = vpack.c.bf16 %v66_v62, %v65_v58  ;;  %v1162_v6 = vpack.c.bf16 %v52_v0, %v51_v63  ;;  %v53_v12 = vld [vmem:[%s2074_s1 + $0xe0] sm:$0xff] }
  0x10   :  { %1187 = vmatprep.subr.bf16.mxu1 %v1186_v46  ;;  %v35_v4 = vld [vmem:[%s2074_s1 + $0x50] sm:$0xff]  ;;  %v36_v7 = vld [vmem:[%s2074_s1 + $0x58] sm:$0xff]  ;;  %v1194_v11 = vpack.c.bf16 %v84_v2, %v83_v1  ;;  %v54_v13 = vld [vmem:[%s2074_s1 + $0xe8] sm:$0xff] }
  0x11   :  { %1157 = vmatpush3.bf16.msra.mxu0 %v1156_v51  ;;  %v67_v8 = vld [vmem:[%s2074_s1 + $0x150] sm:$0xff]  ;;  %v68_v9 = vld [vmem:[%s2074_s1 + $0x158] sm:$0xff]  ;;  %v85_v14 = vld [vmem:[%s2074_s1 + $0x1e0] sm:$0xff]  ;;  %v1164_v16 = vpack.c.bf16 %v36_v7, %v35_v4  ;;  %v1166_v19 = vpack.c.bf16 %v54_v13, %v53_v12 }
  0x12   :  { %1159 = vmatprep.subr.bf16.mxu0 %v1158_v55  ;;  %v86_v15 = vld [vmem:[%s2074_s1 + $0x1e8] sm:$0xff]  ;;  %v1196_v17 = vpack.c.bf16 %v68_v9, %v67_v8  ;;  %v21_v18 = vld [vmem:[%s2073_s0] sm:$0xff]  ;;  %v55_v27 = vld [vmem:[%s2074_s1 + $0xf0] sm:$0xff] }
  0x13   :  { %1189 = vmatpush3.bf16.msra.mxu1 %v1188_v54  ;;  %v37_v20 = vld [vmem:[%s2074_s1 + $0x60] sm:$0xff]  ;;  %v38_v21 = vld [vmem:[%s2074_s1 + $0x68] sm:$0xff]  ;;  %v239_v23 = vrot.slane %v21_v18, %v1557_v10  ;;  %v232_v24 = vcombine.high %v21_v18, %v21_v18  ;;  %v1198_v25 = vpack.c.bf16 %v86_v15, %v85_v14  ;;  %v56_v28 = vld [vmem:[%s2074_s1 + $0xf8] sm:$0xff] }
  0x14   :  { %1191 = vmatprep.subr.bf16.mxu1 %v1190_v61  ;;  %v69_v22 = vld [vmem:[%s2074_s1 + $0x160] sm:$0xff]  ;;  %v70_v26 = vld [vmem:[%s2074_s1 + $0x168] sm:$0xff]  ;;  %v87_v29 = vld [vmem:[%s2074_s1 + $0x1f0] sm:$0xff]  ;;  %v1168_v33 = vpack.c.bf16 %v38_v21, %v37_v20  ;;  %v1170_v35 = vpack.c.bf16 %v56_v28, %v55_v27 }
  0x15   :  { %1161 = vmatpush3.bf16.msra.mxu0 %v1160_v3  ;;  %v88_v30 = vld [vmem:[%s2074_s1 + $0x1f8] sm:$0xff]  ;;  %v247_v31 = vcombine.high %v239_v23, %v239_v23  ;;  %v246_v32 = vrot.slane %v232_v24, %v1557_v10  ;;  %v1200_v34 = vpack.c.bf16 %v70_v26, %v69_v22  ;;  %v39_v36 = vld [vmem:[%s2074_s1 + $0x70] sm:$0xff]  ;;  %v105_v42 = vld [vmem:[%s2074_s1 + $0x280] sm:$0xff] }
  0x16   :  { %1163 = vmatprep.subr.bf16.mxu0 %v1162_v6  ;;  %v40_v37 = vld [vmem:[%s2074_s1 + $0x78] sm:$0xff]  ;;  %v71_v38 = vld [vmem:[%s2074_s1 + $0x170] sm:$0xff]  ;;  %v1202_v40 = vpack.c.bf16 %v88_v30, %v87_v29  ;;  %v106_v43 = vld [vmem:[%s2074_s1 + $0x288] sm:$0xff] }
  0x17   :  { %1193 = vmatpush3.bf16.msra.mxu1 %v1192_v5  ;;  %v248_v39 = vcombine.high %v246_v32, %v246_v32  ;;  %369 = vmatprep.mubr.f32.mxu0 %v247_v31  ;;  %v72_v41 = vld [vmem:[%s2074_s1 + $0x178] sm:$0xff]  ;;  %v137_v44 = vld [vmem:[%s2074_s1 + $0x380] sm:$0xff]  ;;  %v138_v45 = vld [vmem:[%s2074_s1 + $0x388] sm:$0xff]  ;;  %v1172_v46 = vpack.c.bf16 %v40_v37, %v39_v36  ;;  %v1206_v48 = vpack.c.bf16 %v106_v43, %v105_v42 }
  0x18   :  { %1195 = vmatprep.subr.bf16.mxu1 %v1194_v11  ;;  %v1204_v47 = vpack.c.bf16 %v72_v41, %v71_v38  ;;  %v89_v49 = vld [vmem:[%s2074_s1 + $0x200] sm:$0xff]  ;;  %v90_v50 = vld [vmem:[%s2074_s1 + $0x208] sm:$0xff]  ;;  %v1238_v52 = vpack.c.bf16 %v138_v45, %v137_v44  ;;  %v107_v54 = vld [vmem:[%s2074_s1 + $0x290] sm:$0xff] }
  0x19   :  { %1165 = vmatpush3.bf16.msra.mxu0 %v1164_v16  ;;  %439 = vmatprep.mubr.f32.mxu1 %v248_v39  ;;  %v121_v51 = vld [vmem:[%s2074_s1 + $0x300] sm:$0xff]  ;;  %v122_v53 = vld [vmem:[%s2074_s1 + $0x308] sm:$0xff]  ;;  %v108_v55 = vld [vmem:[%s2074_s1 + $0x298] sm:$0xff]  ;;  %v1208_v58 = vpack.c.bf16 %v90_v50, %v89_v49 }
  0x1a   :  { %1167 = vmatprep.subr.bf16.mxu0 %v1166_v19  ;;  %v139_v56 = vld [vmem:[%s2074_s1 + $0x390] sm:$0xff]  ;;  %v140_v57 = vld [vmem:[%s2074_s1 + $0x398] sm:$0xff]  ;;  %v1240_v59 = vpack.c.bf16 %v122_v53, %v121_v51  ;;  %v1210_v60 = vpack.c.bf16 %v108_v55, %v107_v54  ;;  %v109_v2 = vld [vmem:[%s2074_s1 + $0x2a0] sm:$0xff] }
  0x1b   :  { %1197 = vmatpush3.bf16.msra.mxu1 %v1196_v17  ;;  %v91_v61 = vld [vmem:[%s2074_s1 + $0x210] sm:$0xff]  ;;  %v92_v62 = vld [vmem:[%s2074_s1 + $0x218] sm:$0xff]  ;;  %v1242_v0 = vpack.c.bf16 %v140_v57, %v139_v56  ;;  %v110_v3 = vld [vmem:[%s2074_s1 + $0x2a8] sm:$0xff] }
  0x1c   :  { %1199 = vmatprep.subr.bf16.mxu1 %v1198_v25  ;;  %v123_v63 = vld [vmem:[%s2074_s1 + $0x310] sm:$0xff]  ;;  %v124_v1 = vld [vmem:[%s2074_s1 + $0x318] sm:$0xff]  ;;  %v141_v4 = vld [vmem:[%s2074_s1 + $0x3a0] sm:$0xff]  ;;  %v1212_v6 = vpack.c.bf16 %v92_v62, %v91_v61  ;;  %v1214_v8 = vpack.c.bf16 %v110_v3, %v109_v2 }
  0x1d   :  { %1169 = vmatpush3.bf16.msra.mxu0 %v1168_v33  ;;  %v142_v5 = vld [vmem:[%s2074_s1 + $0x3a8] sm:$0xff]  ;;  %v1244_v7 = vpack.c.bf16 %v124_v1, %v123_v63  ;;  %v93_v9 = vld [vmem:[%s2074_s1 + $0x220] sm:$0xff]  ;;  %v111_v15 = vld [vmem:[%s2074_s1 + $0x2b0] sm:$0xff] }
  0x1e   :  { %1171 = vmatprep.subr.bf16.mxu0 %v1170_v35  ;;  %v94_v11 = vld [vmem:[%s2074_s1 + $0x228] sm:$0xff]  ;;  %v125_v12 = vld [vmem:[%s2074_s1 + $0x320] sm:$0xff]  ;;  %v1246_v13 = vpack.c.bf16 %v142_v5, %v141_v4  ;;  %v112_v16 = vld [vmem:[%s2074_s1 + $0x2b8] sm:$0xff] }
  0x1f   :  { %1201 = vmatpush3.bf16.msra.mxu1 %v1200_v34  ;;  %v126_v14 = vld [vmem:[%s2074_s1 + $0x328] sm:$0xff]  ;;  %v143_v17 = vld [vmem:[%s2074_s1 + $0x3b0] sm:$0xff]  ;;  %v144_v18 = vld [vmem:[%s2074_s1 + $0x3b8] sm:$0xff]  ;;  %v1216_v19 = vpack.c.bf16 %v94_v11, %v93_v9  ;;  %v1218_v22 = vpack.c.bf16 %v112_v16, %v111_v15 }
  0x20   :  { %1203 = vmatprep.subr.bf16.mxu1 %v1202_v40  ;;  %v95_v20 = vld [vmem:[%s2074_s1 + $0x230] sm:$0xff]  ;;  %v1248_v21 = vpack.c.bf16 %v126_v14, %v125_v12  ;;  %v128_v25 = vld [vmem:[%s2074_s1 + $0x338] sm:$0xff]  ;;  %v1250_v26 = vpack.c.bf16 %v144_v18, %v143_v17  ;;  %v113_v27 = vld [vmem:[%s2074_s1 + $0x2c0] sm:$0xff] }
  0x21   :  { %1173 = vmatpush3.bf16.msra.mxu0 %v1172_v46  ;;  %v127_v24 = vld [vmem:[%s2074_s1 + $0x330] sm:$0xff]  ;;  %v114_v28 = vld [vmem:[%s2074_s1 + $0x2c8] sm:$0xff]  ;;  %v145_v30 = vld [vmem:[%s2074_s1 + $0x3c0] sm:$0xff] }
  0x22   :  { %1207 = vmatprep.subr.bf16.mxu0 %v1206_v48  ;;  %v22_v29 = vld [vmem:[%s2073_s0 + $0x8] sm:$0xff]  ;;  %v1252_v35 = vpack.c.bf16 %v128_v25, %v127_v24  ;;  %v1222_v36 = vpack.c.bf16 %v114_v28, %v113_v27  ;;  %v97_v37 = vld [vmem:[%s2074_s1 + $0x240] sm:$0xff]  ;;  %v115_v44 = vld [vmem:[%s2074_s1 + $0x2d0] sm:$0xff] }
  0x23   :  { %1205 = vmatpush3.bf16.msra.mxu1 %v1204_v47  ;;  %v146_v31 = vld [vmem:[%s2074_s1 + $0x3c8] sm:$0xff]  ;;  %v249_v33 = vcombine.high %v22_v29, %v22_v29  ;;  %v129_v39 = vld [vmem:[%s2074_s1 + $0x340] sm:$0xff]  ;;  %v116_v45 = vld [vmem:[%s2074_s1 + $0x2d8] sm:$0xff] }
  0x24   :  { %1239 = vmatprep.subr.bf16.mxu1 %v1238_v52  ;;  %370 = vmatmul.mubr.f32.vlgmr.msra.gmra.mrb[0].mxu0 %v239_v23  ;;  %v96_v23 = vld [vmem:[%s2074_s1 + $0x238] sm:$0xff]  ;;  %v98_v38 = vld [vmem:[%s2074_s1 + $0x248] sm:$0xff]  ;;  %v1254_v42 = vpack.c.bf16 %v146_v31, %v145_v30  ;;  %v147_v46 = vld [vmem:[%s2074_s1 + $0x3d0] sm:$0xff]  ;;  %v1226_v51 = vpack.c.bf16 %v116_v45, %v115_v44 }
  0x25   :  { %1209 = vmatpush3.bf16.msra.mxu0 %v1208_v58  ;;  %v1220_v34 = vpack.c.bf16 %v96_v23, %v95_v20  ;;  %v1738_v41 = vrot.slane %v249_v33, %v1557_v10  ;;  %v130_v43 = vld [vmem:[%s2074_s1 + $0x348] sm:$0xff]  ;;  %v148_v47 = vld [vmem:[%s2074_s1 + $0x3d8] sm:$0xff]  ;;  %v1224_v49 = vpack.c.bf16 %v98_v38, %v97_v37  ;;  %v99_v52 = vld [vmem:[%s2074_s1 + $0x250] sm:$0xff] }
  0x26   :  { %440 = vmatmul.mubr.f32.vlgmr.msra.gmra.mrb[0].mxu1 %v246_v32  ;;  %1211 = vmatprep.subr.bf16.mxu0 %v1210_v60  ;;  %v1724_v32 = vrot.slane %v22_v29, %v1557_v10  ;;  %v1256_v50 = vpack.c.bf16 %v130_v43, %v129_v39  ;;  %v100_v53 = vld [vmem:[%s2074_s1 + $0x258] sm:$0xff]  ;;  %v131_v54 = vld [vmem:[%s2074_s1 + $0x350] sm:$0xff]  ;;  %v1258_v55 = vpack.c.bf16 %v148_v47, %v147_v46  ;;  %v117_v57 = vld [vmem:[%s2074_s1 + $0x2e0] sm:$0xff] }
  0x27   :  { %1241 = vmatpush3.bf16.msra.mxu1 %v1240_v59  ;;  %v265_v48 = vcombine.high %v1738_v41, %v1738_v41  ;;  %v132_v56 = vld [vmem:[%s2074_s1 + $0x358] sm:$0xff]  ;;  %v118_v58 = vld [vmem:[%s2074_s1 + $0x2e8] sm:$0xff]  ;;  %v149_v59 = vld [vmem:[%s2074_s1 + $0x3e0] sm:$0xff]  ;;  %v1228_v61 = vpack.c.bf16 %v100_v53, %v99_v52 }
  0x28   :  { %1243 = vmatprep.subr.bf16.mxu1 %v1242_v0  ;;  %v264_v40 = vcombine.high %v1724_v32, %v1724_v32  ;;  %v150_v60 = vld [vmem:[%s2074_s1 + $0x3e8] sm:$0xff]  ;;  %v1260_v62 = vpack.c.bf16 %v132_v56, %v131_v54  ;;  %v1230_v63 = vpack.c.bf16 %v118_v58, %v117_v57  ;;  %v101_v0 = vld [vmem:[%s2074_s1 + $0x260] sm:$0xff]  ;;  %v119_v5 = vld [vmem:[%s2074_s1 + $0x2f0] sm:$0xff] }
  0x29   :  { %1213 = vmatpush3.bf16.msra.mxu0 %v1212_v6  ;;  %579 = vmatprep.mubr.f32.mxu1 %v265_v48  ;;  %v102_v1 = vld [vmem:[%s2074_s1 + $0x268] sm:$0xff]  ;;  %v133_v2 = vld [vmem:[%s2074_s1 + $0x360] sm:$0xff]  ;;  %v1262_v3 = vpack.c.bf16 %v150_v60, %v149_v59  ;;  %v120_v6 = vld [vmem:[%s2074_s1 + $0x2f8] sm:$0xff] }
  0x2a   :  { %1215 = vmatprep.subr.bf16.mxu0 %v1214_v8  ;;  %509 = vmatprep.mubr.f32.mxu0 %v264_v40  ;;  %v134_v4 = vld [vmem:[%s2074_s1 + $0x368] sm:$0xff]  ;;  %v152_v8 = vld [vmem:[%s2074_s1 + $0x3f8] sm:$0xff]  ;;  %v1232_v9 = vpack.c.bf16 %v102_v1, %v101_v0  ;;  %v1234_v12 = vpack.c.bf16 %v120_v6, %v119_v5  ;;  %v135_v15 = vld [vmem:[%s2074_s1 + $0x370] sm:$0xff] }
  0x2b   :  { %1245 = vmatpush3.bf16.msra.mxu1 %v1244_v7  ;;  %v151_v7 = vld [vmem:[%s2074_s1 + $0x3f0] sm:$0xff]  ;;  %v1264_v11 = vpack.c.bf16 %v134_v4, %v133_v2  ;;  %v104_v14 = vld [vmem:[%s2074_s1 + $0x278] sm:$0xff]  ;;  %v169_v18 = vld [vmem:[%s2074_s1 + $0x480] sm:$0xff] }
  0x2c   :  { %1247 = vmatprep.subr.bf16.mxu1 %v1246_v13  ;;  %v103_v13 = vld [vmem:[%s2074_s1 + $0x270] sm:$0xff]  ;;  %v1266_v16 = vpack.c.bf16 %v152_v8, %v151_v7  ;;  %v136_v17 = vld [vmem:[%s2074_s1 + $0x378] sm:$0xff]  ;;  %v201_v20 = vld [vmem:[%s2074_s1 + $0x580] sm:$0xff] }
  0x2d   :  { %1217 = vmatpush3.bf16.msra.mxu0 %v1216_v19  ;;  %v170_v19 = vld [vmem:[%s2074_s1 + $0x488] sm:$0xff]  ;;  %v153_v23 = vld [vmem:[%s2074_s1 + $0x400] sm:$0xff]  ;;  %v1268_v24 = vpack.c.bf16 %v136_v17, %v135_v15  ;;  %v171_v30 = vld [vmem:[%s2074_s1 + $0x490] sm:$0xff] }
  0x2e   :  { %1219 = vmatprep.subr.bf16.mxu0 %v1218_v22  ;;  %v1236_v22 = vpack.c.bf16 %v104_v14, %v103_v13  ;;  %v1270_v25 = vpack.c.bf16 %v170_v19, %v169_v18  ;;  %v185_v27 = vld [vmem:[%s2074_s1 + $0x500] sm:$0xff]  ;;  %v186_v28 = vld [vmem:[%s2074_s1 + $0x508] sm:$0xff]  ;;  %v172_v31 = vld [vmem:[%s2074_s1 + $0x498] sm:$0xff] }
  0x2f   :  { %1249 = vmatpush3.bf16.msra.mxu1 %v1248_v21  ;;  %v202_v21 = vld [vmem:[%s2074_s1 + $0x588] sm:$0xff]  ;;  %v203_v33 = vld [vmem:[%s2074_s1 + $0x590] sm:$0xff]  ;;  %v1274_v38 = vpack.c.bf16 %v172_v31, %v171_v30  ;;  %v156_v40 = vld [vmem:[%s2074_s1 + $0x418] sm:$0xff] }
  0x30   :  { %1251 = vmatprep.subr.bf16.mxu1 %v1250_v26  ;;  %v154_v26 = vld [vmem:[%s2074_s1 + $0x408] sm:$0xff]  ;;  %v1302_v29 = vpack.c.bf16 %v202_v21, %v201_v20  ;;  %v23_v37 = vld [vmem:[%s2073_s0 + $0x10] sm:$0xff]  ;;  %v188_v46 = vld [vmem:[%s2074_s1 + $0x518] sm:$0xff] }
  0x31   :  { %1221 = vmatpush3.bf16.msra.mxu0 %v1220_v34  ;;  %v204_v34 = vld [vmem:[%s2074_s1 + $0x598] sm:$0xff]  ;;  %v155_v39 = vld [vmem:[%s2074_s1 + $0x410] sm:$0xff]  ;;  %v1866_v43 = vrot.slane %v23_v37, %v1557_v10  ;;  %v266_v44 = vcombine.high %v23_v37, %v23_v37  ;;  %v173_v47 = vld [vmem:[%s2074_s1 + $0x4a0] sm:$0xff] }
  0x32   :  { %1223 = vmatprep.subr.bf16.mxu0 %v1222_v36  ;;  %v1304_v36 = vpack.c.bf16 %v186_v28, %v185_v27  ;;  %v1306_v45 = vpack.c.bf16 %v204_v34, %v203_v33  ;;  %v174_v48 = vld [vmem:[%s2074_s1 + $0x4a8] sm:$0xff] }
  0x33   :  { %1253 = vmatpush3.bf16.msra.mxu1 %v1252_v35  ;;  %v1272_v35 = vpack.c.bf16 %v154_v26, %v153_v23  ;;  %v1887_v52 = vrot.slane %v266_v44, %v1557_v10 }
  0x34   :  { %1255 = vmatprep.subr.bf16.mxu1 %v1254_v42  ;;  %v187_v42 = vld [vmem:[%s2074_s1 + $0x510] sm:$0xff] }
  0x35   :  { %1225 = vmatpush3.bf16.msra.mxu0 %v1224_v49  ;;  %v205_v49 = vld [vmem:[%s2074_s1 + $0x5a0] sm:$0xff] }
  0x36   :  { %1227 = vmatprep.subr.bf16.mxu0 %v1226_v51  ;;  %v281_v51 = vcombine.high %v1866_v43, %v1866_v43 }
  0x37   :  { %1257 = vmatpush3.bf16.msra.mxu1 %v1256_v50  ;;  %v206_v50 = vld [vmem:[%s2074_s1 + $0x5a8] sm:$0xff] }
  0x38   :  { %1259 = vmatprep.subr.bf16.mxu1 %v1258_v55 }
  0x39   :  { %1229 = vmatpush3.bf16.msra.mxu0 %v1228_v61 }
  0x3a   :  { %1231 = vmatprep.subr.bf16.mxu0 %v1230_v63 }
  0x3b   :  { %1261 = vmatpush3.bf16.msra.mxu1 %v1260_v62 }
  0x3c   :  { %1263 = vmatprep.subr.bf16.mxu1 %v1262_v3 }
  0x3d   :  { %1233 = vmatpush3.bf16.msra.mxu0 %v1232_v9 }
  0x3e   :  { %1235 = vmatprep.subr.bf16.mxu0 %v1234_v12 }
  0x3f   :  { %1265 = vmatpush3.bf16.msra.mxu1 %v1264_v11 }
  0x40   :  { %1267 = vmatprep.subr.bf16.mxu1 %v1266_v16 }
  0x41   :  { %1237 = vmatpush3.bf16.msra.mxu0 %v1236_v22 }
  0x42   :  { %1271 = vmatprep.subr.bf16.mxu0 %v1270_v25 }
  0x43   :  { %1269 = vmatpush3.bf16.msra.mxu1 %v1268_v24 }
  0x44   :  { %1303 = vmatprep.subr.bf16.mxu1 %v1302_v29  ;;  %510 = vmatmul.mubr.f32.vlgmr.msra.gmra.mrb[2].mxu0 %v1724_v32 }
  0x45   :  { %10 = vsyncpa [#allocation3], 0  ;;  %1273 = vmatpush3.bf16.msra.mxu0 %v1272_v35  ;;  %v1276_v53 = vpack.c.bf16 %v156_v40, %v155_v39  ;;  %v1308_v32 = vpack.c.bf16 %v188_v46, %v187_v42  ;;  %v1278_v54 = vpack.c.bf16 %v174_v48, %v173_v47  ;;  %v157_v55 = vld [vmem:[%s2074_s1 + $0x420] sm:$0xff]  ;;  %v158_v56 = vld [vmem:[%s2074_s1 + $0x428] sm:$0xff]  ;;  %v1310_v57 = vpack.c.bf16 %v206_v50, %v205_v49  ;;  %s1382_s26 = smov [#allocation2]  }
  0x46   :  { %580 = vmatmul.mubr.f32.vlgmr.msra.gmra.mrb[2].mxu1 %v1738_v41  ;;  %1275 = vmatprep.subr.bf16.mxu0 %v1274_v38  ;;  %v189_v10 = vld [vmem:[%s2074_s1 + $0x520] sm:$0xff]  ;;  %v282_v41 = vcombine.high %v1887_v52, %v1887_v52  ;;  %v190_v58 = vld [vmem:[%s2074_s1 + $0x528] sm:$0xff]  ;;  %v175_v59 = vld [vmem:[%s2074_s1 + $0x4b0] sm:$0xff]  ;;  %v1280_v63 = vpack.c.bf16 %v158_v56, %v157_v55  ;;  %vm1380_vm0 = vmmov 0   ;;  %vm302_vm1 = vcmask 261120   ;;  %s887_s27 = sshll.u32 %s1382_s26, 4  ;;  %s888_s27 = int_to_ptr.vmem [resolvable:$true] %s887_s27 }
  0x47   :  { %1305 = vmatpush3.bf16.msra.mxu1 %v1304_v36  ;;  %v176_v60 = vld [vmem:[%s2074_s1 + $0x4b8] sm:$0xff]  ;;  %649 = vmatprep.mubr.f32.mxu0 %v281_v51  ;;  %v207_v61 = vld [vmem:[%s2074_s1 + $0x5b0] sm:$0xff]  ;;  %v1312_v0 = vpack.c.bf16 %v190_v58, %v189_v10  ;;  %v177_v7 = vld [vmem:[%s2074_s1 + $0x4c0] sm:$0xff]  ;;  %vm879_vm2 = vcmask 74752   ;;  %s1354_s28 = scalar_lea.vmem %s888_s27, 32  ;;  %p1359_p1 = scmp.lt.s32.totalorder %s888_s27, %s888_s27 }
  0x48   :  { %1307 = vmatprep.subr.bf16.mxu1 %v1306_v45  ;;  %v208_v62 = vld [vmem:[%s2074_s1 + $0x5b8] sm:$0xff]  ;;  %719 = vmatprep.mubr.f32.mxu1 %v282_v41  ;;  %v1282_v1 = vpack.c.bf16 %v176_v60, %v175_v59  ;;  %v159_v2 = vld [vmem:[%s2074_s1 + $0x430] sm:$0xff]  ;;  %v178_v8 = vld [vmem:[%s2074_s1 + $0x4c8] sm:$0xff]  ;;  %p1355_p0 = scmp.ne.s32.totalorder %s888_s27, %s1354_s28  ;;  %p1360_p2 = scmp.lt.s32.totalorder %s1354_s28, %s1354_s28 }
  0x49   :  { %1277 = vmatpush3.bf16.msra.mxu0 %v1276_v53  ;;  %v160_v3 = vld [vmem:[%s2074_s1 + $0x438] sm:$0xff]  ;;  %v191_v4 = vld [vmem:[%s2074_s1 + $0x530] sm:$0xff]  ;;  %v1314_v5 = vpack.c.bf16 %v208_v62, %v207_v61  ;;  %v209_v9 = vld [vmem:[%s2074_s1 + $0x5c0] sm:$0xff]  ;;  %v1286_v14 = vpack.c.bf16 %v178_v8, %v177_v7  ;;  %v1379_v62 = vmov 0.0|0.0  }
  0x4a   :  { %1279 = vmatprep.subr.bf16.mxu0 %v1278_v54  ;;  %v192_v6 = vld [vmem:[%s2074_s1 + $0x538] sm:$0xff]  ;;  %v210_v11 = vld [vmem:[%s2074_s1 + $0x5c8] sm:$0xff]  ;;  %v1284_v12 = vpack.c.bf16 %v160_v3, %v159_v2  ;;  %v161_v15 = vld [vmem:[%s2074_s1 + $0x440] sm:$0xff]  ;;  %v1381_v2 = vmov 0.0   ;;  %p1361_p3 = por %p1360_p2, %p1359_p1 }
  0x4b   :  { %1309 = vmatpush3.bf16.msra.mxu1 %v1308_v32  ;;  %v1316_v13 = vpack.c.bf16 %v192_v6, %v191_v4  ;;  %v162_v16 = vld [vmem:[%s2074_s1 + $0x448] sm:$0xff]  ;;  %v193_v17 = vld [vmem:[%s2074_s1 + $0x540] sm:$0xff]  ;;  %v1318_v18 = vpack.c.bf16 %v210_v11, %v209_v9  ;;  %v179_v20 = vld [vmem:[%s2074_s1 + $0x4d0] sm:$0xff] }
  0x4c   :  { %1311 = vmatprep.subr.bf16.mxu1 %v1310_v57  ;;  %v194_v19 = vld [vmem:[%s2074_s1 + $0x548] sm:$0xff]  ;;  %v180_v21 = vld [vmem:[%s2074_s1 + $0x4d8] sm:$0xff]  ;;  %v211_v22 = vld [vmem:[%s2074_s1 + $0x5d0] sm:$0xff]  ;;  %v1288_v24 = vpack.c.bf16 %v162_v16, %v161_v15  ;;  %p1362_p4 = pnand %p1361_p3, %p1355_p0 }
  0x4d   :  { %1281 = vmatpush3.bf16.msra.mxu0 %v1280_v63  ;;  %v212_v23 = vld [vmem:[%s2074_s1 + $0x5d8] sm:$0xff]  ;;  %v1320_v25 = vpack.c.bf16 %v194_v19, %v193_v17  ;;  %v1290_v26 = vpack.c.bf16 %v180_v21, %v179_v20  ;;  %v163_v27 = vld [vmem:[%s2074_s1 + $0x450] sm:$0xff]  ;;  %v181_v33 = vld [vmem:[%s2074_s1 + $0x4e0] sm:$0xff] }
  0x4e   :  { %1283 = vmatprep.subr.bf16.mxu0 %v1282_v1  ;;  %v164_v28 = vld [vmem:[%s2074_s1 + $0x458] sm:$0xff]  ;;  %v195_v29 = vld [vmem:[%s2074_s1 + $0x550] sm:$0xff]  ;;  %v1322_v30 = vpack.c.bf16 %v212_v23, %v211_v22  ;;  %v182_v34 = vld [vmem:[%s2074_s1 + $0x4e8] sm:$0xff] }
  0x4f   :  { %1313 = vmatpush3.bf16.msra.mxu1 %v1312_v0  ;;  %v196_v31 = vld [vmem:[%s2074_s1 + $0x558] sm:$0xff]  ;;  %v213_v35 = vld [vmem:[%s2074_s1 + $0x5e0] sm:$0xff]  ;;  %v214_v36 = vld [vmem:[%s2074_s1 + $0x5e8] sm:$0xff]  ;;  %v1292_v37 = vpack.c.bf16 %v164_v28, %v163_v27  ;;  %v1294_v39 = vpack.c.bf16 %v182_v34, %v181_v33 }
  0x50   :  { %1315 = vmatprep.subr.bf16.mxu1 %v1314_v5  ;;  %v1324_v38 = vpack.c.bf16 %v196_v31, %v195_v29  ;;  %v165_v40 = vld [vmem:[%s2074_s1 + $0x460] sm:$0xff]  ;;  %v166_v42 = vld [vmem:[%s2074_s1 + $0x468] sm:$0xff]  ;;  %v1326_v45 = vpack.c.bf16 %v214_v36, %v213_v35  ;;  %v183_v47 = vld [vmem:[%s2074_s1 + $0x4f0] sm:$0xff] }
  0x51   :  { %1285 = vmatpush3.bf16.msra.mxu0 %v1284_v12  ;;  %v197_v44 = vld [vmem:[%s2074_s1 + $0x560] sm:$0xff]  ;;  %v198_v46 = vld [vmem:[%s2074_s1 + $0x568] sm:$0xff]  ;;  %v184_v48 = vld [vmem:[%s2074_s1 + $0x4f8] sm:$0xff]  ;;  %v1296_v51 = vpack.c.bf16 %v166_v42, %v165_v40 }
  0x52   :  { %1287 = vmatprep.subr.bf16.mxu0 %v1286_v14  ;;  %v215_v49 = vld [vmem:[%s2074_s1 + $0x5f0] sm:$0xff]  ;;  %v216_v50 = vld [vmem:[%s2074_s1 + $0x5f8] sm:$0xff]  ;;  %v1328_v53 = vpack.c.bf16 %v198_v46, %v197_v44  ;;  %v1298_v32 = vpack.c.bf16 %v184_v48, %v183_v47  ;;  %v217_v59 = vld [vmem:[%s2074_s1 + $0x600] sm:$0xff] }
  0x53   :  { %1317 = vmatpush3.bf16.msra.mxu1 %v1316_v13  ;;  %v167_v54 = vld [vmem:[%s2074_s1 + $0x470] sm:$0xff]  ;;  %v168_v55 = vld [vmem:[%s2074_s1 + $0x478] sm:$0xff]  ;;  %v1330_v56 = vpack.c.bf16 %v216_v50, %v215_v49  ;;  %v218_v60 = vld [vmem:[%s2074_s1 + $0x608] sm:$0xff] }
  0x54   :  { %1319 = vmatprep.subr.bf16.mxu1 %v1318_v18  ;;  %v199_v10 = vld [vmem:[%s2074_s1 + $0x570] sm:$0xff]  ;;  %v200_v41 = vld [vmem:[%s2074_s1 + $0x578] sm:$0xff]  ;;  %v1300_v57 = vpack.c.bf16 %v168_v55, %v167_v54  ;;  %v1335_v61 = vpack.c.bf16 %v218_v60, %v217_v59  ;;  %v895_v9 = vld [vmem:[%s2075_s2] ss:$0 sm:$0xff] }
  0x55   :  { %1289 = vmatpush3.bf16.msra.mxu0 %v1288_v24  ;;  %v1332_v58 = vpack.c.bf16 %v200_v41, %v199_v10  ;;  %v219_v63 = vld [vmem:[%s2074_s1 + $0x610] sm:$0xff]  ;;  %v220_v0 = vld [vmem:[%s2074_s1 + $0x618] sm:$0xff] }
  0x56   :  { %1291 = vmatprep.subr.bf16.mxu0 %v1290_v26  ;;  %v1338_v1 = vpack.c.bf16 %v220_v0, %v219_v63  ;;  %v896_v3 = vld.sshfl [vmem:[%s2073_s0 + $0x18] sm:$0x3 pattern:$0x76325410]  ;;  %v797_v5 = vld [vmem:[%s2076_s3 + $0x10] sm:$0xff] }
  0x57   :  { %1321 = vmatpush3.bf16.msra.mxu1 %v1320_v25  ;;  %v798_v6 = vld [vmem:[%s2076_s3 + $0x18] sm:$0xff] }
  0x58   :  { %1323 = vmatprep.subr.bf16.mxu1 %v1322_v30  ;;  %v1344_v7 = vpack.c.bf16 %v798_v6, %v797_v5 }
  0x59   :  { %1293 = vmatpush3.bf16.msra.mxu0 %v1292_v37 }
  0x5a   :  { %1295 = vmatprep.subr.bf16.mxu0 %v1294_v39 }
  0x5b   :  { %1325 = vmatpush3.bf16.msra.mxu1 %v1324_v38  ;;  %v898_v38 = vld [vmem:[%s2077_s4] ss:$0 sm:$0xff] }
  0x5c   :  { %1327 = vmatprep.subr.bf16.mxu1 %v1326_v45 }
  0x5d   :  { %1297 = vmatpush3.bf16.msra.mxu0 %v1296_v51 }
  0x5e   :  { %1299 = vmatprep.subr.bf16.mxu0 %v1298_v32 }
  0x5f   :  { %1329 = vmatpush3.bf16.msra.mxu1 %v1328_v53 }
  0x60   :  { %1331 = vmatprep.subr.bf16.mxu1 %v1330_v56 }
  0x61   :  { %1301 = vmatpush3.bf16.msra.mxu0 %v1300_v57 }
  0x62   :  { %1334 = vmatprep.subr.bf16.mxu0 %v1379_v62 }
  0x63   :  { %1333 = vmatpush3.bf16.msra.mxu1 %v1332_v58 }
  0x64   :  { %1340 = vmatprep.subr.bf16.mxu1 %v1379_v62  ;;  %650 = vmatmul.mubr.f32.vlgmr.msra.gmra.mrb[4].mxu0 %v1866_v43  ;;  %v795_v43 = vld [vmem:[%s2076_s3] sm:$0xff] }
  0x65   :  { %1336 = vmatpush3.bf16.msra.mxu0 %v1335_v61  ;;  %1128 = vmatprep.mubr.msk.f32.mxu0 %vm1380_vm0, %v1381_v2 }
  0x66   :  { %720 = vmatmul.mubr.f32.vlgmr.msra.gmra.mrb[4].mxu1 %v1887_v52  ;;  %1337 = vmatprep.subr.bf16.mxu0 %v1379_v62  ;;  %v796_v52 = vld [vmem:[%s2076_s3 + $0x8] sm:$0xff] }
  0x67   :  { %1139 = vmatprep.mubr.msk.f32.mxu1 %vm1380_vm0, %v1381_v2  ;;  %v1341_v4 = vpack.c.bf16 %v796_v52, %v795_v43 }
  0x69   :  { %1339 = vmatpush3.bf16.msra.mxu0 %v1338_v1  ;;  %1342 = vmatpush3.bf16.msra.mxu1 %v1341_v4 }
  0x6a   :  { %1343 = vmatprep.subr.bf16.mxu1 %v1379_v62 }
  0x6c   :  { %1129 = vmatmul.mubr.msk.f32.vlgmr.msra.gmra.mrb[6].mxu0 %vm302_vm1, %v896_v3 }
  0x6d   :  { %1345 = vmatpush3.bf16.msra.mxu1 %v1344_v7 }
  0xf7   :  { %v932_v8 = vpop.f32.mrb[0].mxu0 }
  0xf8   :  { %v933_v11 = vpop.f32.mrb[1].mxu0 }
  0xf9   :  { %v967_v12 = vpop.f32.mrb[0].mxu1  ;;  %v934_v13 = vadd.f32 %v933_v11, %v932_v8 }
  0xfa   :  { %v968_v14 = vpop.f32.mrb[1].mxu1 }
  0xfb   :  { %v969_v15 = vadd.f32 %v968_v14, %v967_v12  ;;  %v372_v16 = vadd.f32 %v934_v13, %v895_v9 }
  0xfd   :  { %v442_v17 = vadd.f32 %v969_v15, %v372_v16 }
 0x117   :  { %v1002_v18 = vpop.f32.mrb[2].mxu0 }
 0x118   :  { %v1003_v19 = vpop.f32.mrb[3].mxu0 }
 0x119   :  { %v1037_v20 = vpop.f32.mrb[2].mxu1  ;;  %v1004_v21 = vadd.f32 %v1003_v19, %v1002_v18 }
 0x11a   :  { %v1038_v22 = vpop.f32.mrb[3].mxu1 }
 0x11b   :  { %v1039_v23 = vadd.f32 %v1038_v22, %v1037_v20  ;;  %v512_v24 = vadd.f32 %v1004_v21, %v442_v17 }
 0x11d   :  { %v582_v25 = vadd.f32 %v1039_v23, %v512_v24 }
 0x137   :  { %v1072_v26 = vpop.f32.mrb[4].mxu0 }
 0x138   :  { %v1073_v27 = vpop.f32.mrb[5].mxu0 }
 0x139   :  { %v1107_v28 = vpop.f32.mrb[4].mxu1  ;;  %v1074_v29 = vadd.f32 %v1073_v27, %v1072_v26 }
 0x13a   :  { %v1108_v30 = vpop.f32.mrb[5].mxu1 }
 0x13b   :  { %v1109_v31 = vadd.f32 %v1108_v30, %v1107_v28  ;;  %v652_v33 = vadd.f32 %v1074_v29, %v582_v25 }
 0x13d   :  { %v722_v34 = vadd.f32 %v1109_v31, %v652_v33 }
 0x13f   :  { %v791_v35 = vpop.f32.mrb[6].mxu0 }
 0x140   :  { %v792_v36 = vadd.f32 %v791_v35, %v722_v34  ;;  %v1130_v37 = vpop.f32.mrb[7].mxu0 }
 0x142   :  { %1140 = vmatmul.mubr.msk.f32.vlgmr.msra.gmra.mrb[6].mxu1 %vm302_vm1, %v792_v36 }
 0x215   :  { %v875_v39 = vpop.f32.mrb[6].mxu1 }
 0x216   :  { %v876_v40 = vadd.f32 %v898_v38, %v875_v39  ;;  %v1141_v42 = vpop.f32.mrb[7].mxu1 }
 0x218   :  { %880 = vst.msk [vmem:[#allocation2] sm:$0x3] %vm879_vm2, %v876_v40 }
 0x219   :  { %1365 = shalt.err (!%p1362_p4)
}
 0x21a   :  { %s1366_s6 = scalar_lea.hbm %s2078_s5, 32 }
 0x21b   :  { %p1367_p5 = scmp.ne.s32.totalorder %s2078_s5, %s1366_s6  ;;  %p1370_p6 = scmp.lt.u32.totalorder %s1366_s6, %s2078_s5 }
 0x21d   :  { %p1372_p7 = pnand %p1370_p6, %p1367_p5 }
 0x21f   :  { %1375 = shalt.err (!%p1372_p7)
}
 0x220   :  { %890 = dma.vmem_to_hbm [thread:$0]  %s888_s27, 32, %s2078_s5, [#allocation3]  }
 0x221   :  { %1376 = dma.done.wait [#allocation3], 32  }
 0x222   :  { %1377 = vsyncadd [#allocation3], 4294967264 }
 0x223   :  { %894 = vsyncpa [#allocation3], 1 }

</bundles_post_ra>
